<compile_context>
chip_gen: v7x
topology: tpu7x:2x2x1
jax: 0.10.0
libtpu: 0.0.40
codegen_flags: <defaults>
</compile_context>

<pallas_src>
import functools
import math

import jax
import jax.numpy as jnp
from jax.experimental import pallas as pl
from jax.experimental.pallas import tpu as pltpu


# ------------------------------ kernel math --------------------------------- #

def _gru(x_in, h, wx, wh, b):
    """nn.GRUCell as a sum of two MXU dots (no lane-axis concat).

    wx: (in, 3H), wh: (H, 3H), columns [r | z | n] (PyTorch order), bf16.
    b:  (1, 4H) f32 = [b_ir+b_hr | b_iz+b_hz | b_in | b_hn]  (n-gate biases kept
        separate because r multiplies the hidden part).
    """
    H = h.shape[1]
    gi = jnp.dot(x_in.astype(jnp.bfloat16), wx, preferred_element_type=jnp.float32)
    gh = jnp.dot(h.astype(jnp.bfloat16), wh, preferred_element_type=jnp.float32)
    rz = jax.nn.sigmoid(gi[:, :2 * H] + gh[:, :2 * H] + b[:, :2 * H])
    r = rz[:, :H]
    z = rz[:, H:]
    n = jnp.tanh(gi[:, 2 * H:] + b[:, 2 * H:3 * H] + r * (gh[:, 2 * H:] + b[:, 3 * H:]))
    # TODO(synk): carried h passes through a bf16 cast at the dot site; validate
    # drift at very long decode lengths (bounded here since |h| stays O(1)).
    return (1.0 - z) * n + z * h


def _attention(h1, bias_ref, ctx_ref, vp_ref, wq, wa_row, s_chunk):
    """Bahdanau attention, chunked over S with an online softmax.

    bias_ref: (B, S) precomputed additive mask (-1e30 on padded positions).
    ctx_ref:  (B, S, C) bf16.   vp_ref: (B, S, A) bf16 cached ctx@Wv + (bv+bq).
    The a2o bias is dropped (softmax shift invariance).
    """
    B = h1.shape[0]
    S = ctx_ref.shape[1]
    C = ctx_ref.shape[2]
    q = jnp.dot(h1.astype(jnp.bfloat16), wq, preferred_element_type=jnp.float32)  # (B, A)
    m = jnp.full((B, 1), -1e30, jnp.float32)
    l = jnp.zeros((B, 1), jnp.float32)
    acc = jnp.zeros((B, C), jnp.float32)
    # TODO(synk): for very large S / many chunks, switch to lax.fori_loop to
    # bound live ranges (static unroll here; collapses to one chunk at small S).
    for s0 in range(0, S, s_chunk):
        sc = min(s_chunk, S - s0)
        vp = vp_ref[:, s0:s0 + sc, :].astype(jnp.float32)        # (B, sc, A)
        bias = bias_ref[:, s0:s0 + sc]                           # (B, sc)
        ctx_c = ctx_ref[:, s0:s0 + sc, :]                        # (B, sc, C) bf16
        a = jnp.tanh(vp + q[:, None, :])                         # (B, sc, A)
        logit = jnp.sum(a * wa_row, axis=-1) + bias              # (B, sc)
        m_new = jnp.maximum(m, jnp.max(logit, axis=-1, keepdims=True))
        scale = jnp.exp(m - m_new)
        p = jnp.exp(logit - m_new)
        l = scale * l + jnp.sum(p, axis=-1, keepdims=True)
        # MXU batched matvec (flash-attention pattern with q=1); bf16 weights.
        pc = jnp.einsum('bqs,bsc->bqc', p.astype(jnp.bfloat16)[:, None, :], ctx_c,
                        preferred_element_type=jnp.float32)[:, 0, :]
        acc = scale * acc + pc
        m = m_new
    return acc * pl.reciprocal(l, approx=True)                   # (B, C)


def _readout(x, h2, attn_enc, we, wh, wc, b_ro):
    """tanh(e2o(x) + h2o(h2) + c2o(attn_enc)) as a sum of three MXU dots."""
    acc = jnp.dot(x.astype(jnp.bfloat16), we, preferred_element_type=jnp.float32)
    acc = acc + jnp.dot(h2.astype(jnp.bfloat16), wh, preferred_element_type=jnp.float32)
    acc = acc + jnp.dot(attn_enc.astype(jnp.bfloat16), wc, preferred_element_type=jnp.float32)
    return jnp.tanh(acc + b_ro)


def _decoder_step(x, h_prev, bias_ref, ctx_ref, vp_ref,
                  w1x, w1h, b1, w2x, w2h, b2, wq, wa_row,
                  we, wh, wc, b_ro, s_chunk):
    """One VallinaDecoder.forward step up to (but excluding) the vocab affine."""
    h1 = _gru(x, h_prev, w1x, w1h, b1)
    attn_enc = _attention(h1, bias_ref, ctx_ref, vp_ref, wq, wa_row, s_chunk)
    h2 = _gru(attn_enc, h1, w2x, w2h, b2)
    readout = _readout(x, h2, attn_enc, we, wh, wc, b_ro)
    # TODO(synk): nn.Dropout(readout_dropout) skipped - inference/eval identity.
    return readout, h2


# -------------------------------- kernels ------------------------------------ #

def decoder_step_kernel(x_ref, h_ref, bias_ref, ctx_ref, vp_ref,
                        w1x, w1h, b1, w2x, w2h, b2, wq, wa_row,
                        we, wh, wc, b_ro,
                        ro_ref, hout_ref, *, s_chunk):
    readout, h2 = _decoder_step(
        x_ref[...], h_ref[...], bias_ref, ctx_ref, vp_ref,
        w1x[...], w1h[...], b1[...], w2x[...], w2h[...], b2[...],
        wq[...], wa_row[...], we[...], wh[...], wc[...], b_ro[...],
        s_chunk)
    ro_ref[...] = readout.astype(ro_ref.dtype)
    hout_ref[...] = h2


def decoder_seq_kernel(x_ref, h0_ref, bias_ref, ctx_ref,
                       w1x, w1h, b1, w2x, w2h, b2,
                       wq, wv, b_attn, wa_row,
                       we, wh, wc, b_ro,
                       ro_ref, hout_ref, vp_scr, *, s_chunk):
    t = pl.program_id(1)          # grid = (batch_tiles, T); time is innermost

    @pl.when(t == 0)
    def _init():
        # The hidden carry lives in the (constant-index, VMEM-resident) output
        # block; the value projection is constant over time -> compute once.
        hout_ref[...] = h0_ref[...]
        vp_scr[...] = (jnp.einsum('bsc,ca->bsa', ctx_ref[...], wv[...],
                                  preferred_element_type=jnp.float32)
                       + b_attn[...]).astype(vp_scr.dtype)

    readout, h2 = _decoder_step(
        x_ref[0], hout_ref[...], bias_ref, ctx_ref, vp_scr,
        w1x[...], w1h[...], b1[...], w2x[...], w2h[...], b2[...],
        wq[...], wa_row[...], we[...], wh[...], wc[...], b_ro[...],
        s_chunk)
    ro_ref[0] = readout.astype(ro_ref.dtype)
    hout_ref[...] = h2


def affine_kernel(r_ref, w_ref, b_ref, o_ref):
    o_ref[...] = (jnp.dot(r_ref[...], w_ref[...],
                          preferred_element_type=jnp.float32) + b_ref[...])


def vproj_kernel(ctx_ref, wv_ref, b_ref, o_ref):
    o_ref[...] = (jnp.einsum('bsc,ca->bsa', ctx_ref[...], wv_ref[...],
                             preferred_element_type=jnp.float32)
                  + b_ref[...]).astype(o_ref.dtype)


# ------------------------------- helpers -------------------------------------- #

_STEP_PARAM_ORDER = ('w1x', 'w1h', 'b1', 'w2x', 'w2h', 'b2',
                     'wq', 'wa_row', 'we', 'wh', 'wc', 'b_ro')
_SEQ_PARAM_ORDER = ('w1x', 'w1h', 'b1', 'w2x', 'w2h', 'b2',
                    'wq', 'wv', 'b_attn', 'wa_row', 'we', 'wh', 'wc', 'b_ro')


def _attn_logit_bias(enc_mask):
    """Additive softmax mask: -1e30 on padded positions, only if mask.any().

    Finite large-negative (instead of -inf) avoids inf-inf NaNs; exp() still
    underflows to exactly 0.
    """
    keep_all = jnp.logical_not(jnp.any(enc_mask != 0))
    return jnp.where(jnp.logical_or(enc_mask != 0, keep_all),
                     jnp.float32(0.0), jnp.float32(-1e30))


def _pick_chunk(s, target=512):
    if s <= target:
        return s
    for c in (512, 256, 128, 64, 32, 16, 8):
        if s % c == 0:
            return c
    return s


def _batch_tile(b):
    if b <= 8:
        return b
    for c in (256, 128, 64, 32, 16, 8):
        if b % c == 0:
            return c
    return b


def _row_tile(m):
    for c in (512, 256, 128, 64, 32, 16, 8):
        if m % c == 0:
            return c
    return m


def _col_tile(v):
    for c in (1024, 512, 256, 128):
        if v % c == 0:
            return c
    return v


def _nbytes(a):
    return int(a.size) * a.dtype.itemsize


def _vmem_limit(nbytes, floor=32 << 20, cap=100 << 20):
    return int(max(floor, min(cap, int(nbytes * 1.3) + (2 << 20))))


# ------------------------------- wrappers ------------------------------------- #

def _affine(readout2d, waff, baff):
    """(M, D2) bf16 readouts @ (D2, Vp) bf16 + bias, tiled rows x vocab."""
    M, D2 = readout2d.shape
    Vp = waff.shape[1]
    tm = _row_tile(M)
    tn = _col_tile(Vp)
    block_bytes = 2 * (tm * D2 * readout2d.dtype.itemsize
                       + D2 * tn * waff.dtype.itemsize
                       + tn * baff.dtype.itemsize
                       + tm * tn * 4)
    return pl.pallas_call(
        affine_kernel,
        out_shape=jax.ShapeDtypeStruct((M, Vp), jnp.float32),
        grid=(M // tm, Vp // tn),
        in_specs=[pl.BlockSpec((tm, D2), lambda i, j: (i, 0)),
                  pl.BlockSpec((D2, tn), lambda i, j: (0, j)),
                  pl.BlockSpec((1, tn), lambda i, j: (0, j))],
        out_specs=pl.BlockSpec((tm, tn), lambda i, j: (i, j)),
        compiler_params=pltpu.CompilerParams(
            dimension_semantics=("parallel", "parallel"),
            vmem_limit_bytes=_vmem_limit(block_bytes)),
    )(readout2d, waff, baff)


def precompute_value_projection(enc_context, kp):
    """ctx @ Wv + (bv + bq), bf16 (B, S, A).  Reusable across decode steps."""
    B, S, _ = enc_context.shape
    A = kp['wv'].shape[1]
    ctx_bf16 = enc_context.astype(jnp.bfloat16)
    vmem = pl.BlockSpec(memory_space=pltpu.MemorySpace.VMEM)
    nbytes = _nbytes(ctx_bf16) + _nbytes(kp['wv']) + _nbytes(kp['b_attn']) + B * S * A * 2
    return pl.pallas_call(
        vproj_kernel,
        out_shape=jax.ShapeDtypeStruct((B, S, A), jnp.bfloat16),
        in_specs=[vmem, vmem, vmem],
        out_specs=vmem,
        compiler_params=pltpu.CompilerParams(
            vmem_limit_bytes=_vmem_limit(2 * nbytes)),
    )(ctx_bf16, kp['wv'], kp['b_attn'])


def vallina_decoder(x, hidden, enc_mask, enc_context, kp, vocab_size, vproj=None):
    """One decoder step (matches VallinaDecoder.forward).

    For autoregressive decode, precompute `vproj` once per encoder context via
    precompute_value_projection (or prefer vallina_decoder_seq, which keeps the
    weights VMEM-resident across steps).
    """
    B, H = hidden.shape
    S = enc_context.shape[1]
    D2 = kp['we'].shape[1]
    attn_bias = _attn_logit_bias(enc_mask)
    ctx_bf16 = enc_context.astype(jnp.bfloat16)
    if vproj is None:
        vproj = precompute_value_projection(enc_context, kp)
    weights = tuple(kp[k] for k in _STEP_PARAM_ORDER)
    inputs = (x, hidden, attn_bias, ctx_bf16, vproj) + weights
    vmem = pl.BlockSpec(memory_space=pltpu.MemorySpace.VMEM)
    nbytes = sum(_nbytes(a) for a in inputs) + B * D2 * 2 + B * H * 4
    ro, hout = pl.pallas_call(
        functools.partial(decoder_step_kernel, s_chunk=_pick_chunk(S)),
        out_shape=(jax.ShapeDtypeStruct((B, D2), jnp.bfloat16),
                   jax.ShapeDtypeStruct((B, H), jnp.float32)),
        in_specs=[vmem] * len(inputs),
        out_specs=(vmem, vmem),
        compiler_params=pltpu.CompilerParams(
            vmem_limit_bytes=_vmem_limit(2 * nbytes)),
    )(*inputs)
    out = _affine(ro, kp['waff'], kp['baff'])
    return out[:, :vocab_size], hout


def vallina_decoder_seq(x_seq, hidden, enc_mask, enc_context, kp, vocab_size):
    """T decoder steps inside ONE pallas_call; the vocab affine is deferred.

    grid = (batch_tiles["parallel"], T["arbitrary"]): weights/ctx/mask stay
    VMEM-resident across time (constant index maps, single-buffered), the value
    projection is cached at t==0, the hidden carry lives in its resident output
    block, and the per-step output is the small bf16 readout (not V logits).
    """
    T, B, E = x_seq.shape
    H = hidden.shape[1]
    S, C = enc_context.shape[1], enc_context.shape[2]
    A = kp['wq'].shape[1]
    D2 = kp['we'].shape[1]
    Vp = kp['waff'].shape[1]

    attn_bias = _attn_logit_bias(enc_mask)
    ctx_bf16 = enc_context.astype(jnp.bfloat16)
    weights = tuple(kp[k] for k in _SEQ_PARAM_ORDER)

    bt = _batch_tile(B)
    nb = B // bt
    s_chunk = _pick_chunk(S)

    def make_in_specs(single_buffer_consts):
        mode = pl.Buffered(1) if single_buffer_consts else None

        def const_spec(a):
            nd = a.ndim
            return pl.BlockSpec(a.shape, lambda b, t, _n=nd: (0,) * _n,
                                pipeline_mode=mode)

        specs = [
            pl.BlockSpec((1, bt, E), lambda b, t: (t, b, 0)),                   # x_t
            pl.BlockSpec((bt, H), lambda b, t: (b, 0), pipeline_mode=mode),     # h0
            pl.BlockSpec((bt, S), lambda b, t: (b, 0), pipeline_mode=mode),     # mask bias
            pl.BlockSpec((bt, S, C), lambda b, t: (b, 0, 0), pipeline_mode=mode),  # ctx
        ]
        specs += [const_spec(w) for w in weights]
        return specs

    out_specs = (pl.BlockSpec((1, bt, D2), lambda b, t: (t, b, 0)),  # readout_t
                 pl.BlockSpec((bt, H), lambda b, t: (b, 0)))         # hidden carry

    resident = (sum(_nbytes(w) for w in weights)
                + (_nbytes(ctx_bf16) + _nbytes(attn_bias) + _nbytes(hidden)) // nb
                + 2 * bt * (E * 4 + D2 * 2)       # streamed x_t / readout_t blocks
                + bt * H * 4                       # hidden carry block
                + bt * S * A * 2)                  # cached value projection (bf16)
    cp = pltpu.CompilerParams(
        dimension_semantics=("parallel", "arbitrary"),
        vmem_limit_bytes=_vmem_limit(resident))

    def run(single_buffer_consts):
        return pl.pallas_call(
            functools.partial(decoder_seq_kernel, s_chunk=s_chunk),
            grid=(nb, T),
            out_shape=(jax.ShapeDtypeStruct((T, B, D2), jnp.bfloat16),
                       jax.ShapeDtypeStruct((B, H), jnp.float32)),
            in_specs=make_in_specs(single_buffer_consts),
            out_specs=out_specs,
            scratch_shapes=[pltpu.VMEM((bt, S, A), jnp.bfloat16)],
            compiler_params=cp,
        )(x_seq, hidden, attn_bias, ctx_bf16, *weights)

    try:
        ro, hout = run(True)
    except Exception:
        # Fallback if single-buffered pipeline_mode is rejected by this jax rev.
        ro, hout = run(False)

    out = _affine(ro.reshape(T * B, D2), kp['waff'], kp['baff'])
    return out.reshape(T, B, Vp)[:, :, :vocab_size], hout


# -------------------------- parameter construction --------------------------- #

def _uniform(key, shape, k):
    return jax.random.uniform(key, shape, jnp.float32, -k, k)


def init_params(key, target_emb_dim, hidden_dim, enc_ncontext, atten_dim,
                dec_hidden_dim2, tgt_vob_size):
    """PyTorch-style init; weights stored as (in, out), biases as (1, out)."""
    keys = iter(jax.random.split(key, 32))
    p = {}

    def gru(prefix, input_dim):
        k = 1.0 / math.sqrt(hidden_dim)
        p['w_ih' + prefix] = _uniform(next(keys), (3 * hidden_dim, input_dim), k).T
        p['w_hh' + prefix] = _uniform(next(keys), (3 * hidden_dim, hidden_dim), k).T
        p['b_ih' + prefix] = _uniform(next(keys), (1, 3 * hidden_dim), k)
        p['b_hh' + prefix] = _uniform(next(keys), (1, 3 * hidden_dim), k)

    def linear(wname, bname, in_dim, out_dim):
        k = 1.0 / math.sqrt(in_dim)
        p[wname] = _uniform(next(keys), (out_dim, in_dim), k).T
        p[bname] = _uniform(next(keys), (1, out_dim), k)

    gru('1', target_emb_dim)                              # gru1
    gru('2', enc_ncontext)                                # gru2
    linear('wq', 'bq', hidden_dim, atten_dim)             # _query_dense
    linear('wv', 'bv', enc_ncontext, atten_dim)           # _values_dense
    linear('wa', 'ba', atten_dim, 1)                      # a2o
    linear('we', 'be', target_emb_dim, dec_hidden_dim2)   # e2o
    linear('wh', 'bh', hidden_dim, dec_hidden_dim2)       # h2o
    linear('wc', 'bc', enc_ncontext, dec_hidden_dim2)     # c2o
    linear('waff', 'baff', dec_hidden_dim2, tgt_vob_size)  # affine
    return p


def pack_params(p, hidden_dim, lane=128):
    """Repack the PyTorch tensors into the kernel layout (bf16 weights)."""
    H = hidden_dim

    def gru_pack(w_ih, w_hh, b_ih, b_hh):
        b = jnp.concatenate([b_ih[:, :2 * H] + b_hh[:, :2 * H],   # r,z pre-summed
                             b_ih[:, 2 * H:3 * H],                # i_n
                             b_hh[:, 2 * H:3 * H]], axis=1)       # h_n (kept separate)
        return w_ih.astype(jnp.bfloat16), w_hh.astype(jnp.bfloat16), b

    kp = {}
    kp['w1x'], kp['w1h'], kp['b1'] = gru_pack(p['w_ih1'], p['w_hh1'],
                                              p['b_ih1'], p['b_hh1'])
    kp['w2x'], kp['w2h'], kp['b2'] = gru_pack(p['w_ih2'], p['w_hh2'],
                                              p['b_ih2'], p['b_hh2'])
    kp['wq'] = p['wq'].astype(jnp.bfloat16)
    kp['wv'] = p['wv'].astype(jnp.bfloat16)
    kp['b_attn'] = p['bq'] + p['bv']           # folded into the value projection
    kp['wa_row'] = p['wa'].T                   # (1, A), stays f32 (VPU math)
    # a2o bias dropped: a per-row constant does not change the softmax output.
    kp['we'] = p['we'].astype(jnp.bfloat16)
    kp['wh'] = p['wh'].astype(jnp.bfloat16)
    kp['wc'] = p['wc'].astype(jnp.bfloat16)
    kp['b_ro'] = p['be'] + p['bh'] + p['bc']
    V = p['waff'].shape[1]
    Vp = ((V + lane - 1) // lane) * lane       # lane-dense output width
    kp['waff'] = jnp.pad(p['waff'], ((0, 0), (0, Vp - V))).astype(jnp.bfloat16)
    kp['baff'] = jnp.pad(p['baff'], ((0, 0), (0, Vp - V)))
    return kp


# ------------------------------ pure-JAX ref --------------------------------- #

def reference(x, hidden, enc_mask, enc_context, p):
    H = hidden.shape[1]

    def gru(x, h, w_ih, w_hh, b_ih, b_hh):
        gi = x @ w_ih + b_ih
        gh = h @ w_hh + b_hh
        r = jax.nn.sigmoid(gi[:, :H] + gh[:, :H])
        z = jax.nn.sigmoid(gi[:, H:2 * H] + gh[:, H:2 * H])
        n = jnp.tanh(gi[:, 2 * H:] + r * gh[:, 2 * H:])
        return (1 - z) * n + z * h

    h1 = gru(x, hidden, p['w_ih1'], p['w_hh1'], p['b_ih1'], p['b_hh1'])
    attn_h = jnp.einsum('bsc,ca->bsa', enc_context, p['wv']) + p['bv']
    attn_h = attn_h + (h1 @ p['wq'] + p['bq'])[:, None, :]
    logit = jnp.einsum('bsa,a->bs', jnp.tanh(attn_h), p['wa'][:, 0]) + p['ba'][0, 0]
    logit = jnp.where(jnp.logical_and(enc_mask == 0, jnp.any(enc_mask != 0)),
                      -jnp.inf, logit)
    w = jax.nn.softmax(logit, axis=1)
    attn_enc = jnp.einsum('bs,bsc->bc', w, enc_context)
    h2 = gru(attn_enc, h1, p['w_ih2'], p['w_hh2'], p['b_ih2'], p['b_hh2'])
    readout = jnp.tanh(x @ p['we'] + p['be'] + h2 @ p['wh'] + p['bh']
                       + attn_enc @ p['wc'] + p['bc'])
    out = readout @ p['waff'] + p['baff']
    return out, h2


# ---------------------------------- main -------------------------------------- #

if __name__ == "__main__":
    B, S, T = 2, 8, 4
    target_emb_dim = 16
    hidden_dim = 32
    enc_ncontext = 24
    atten_dim = 16
    dec_hidden_dim2 = 32
    tgt_vob_size = 64

    root = jax.random.PRNGKey(0)
    k_p, k_x, k_h, k_c, k_xs = jax.random.split(root, 5)

    params = init_params(k_p, target_emb_dim, hidden_dim, enc_ncontext,
                         atten_dim, dec_hidden_dim2, tgt_vob_size)
    kparams = pack_params(params, hidden_dim)

    x = jax.random.normal(k_x, (B, target_emb_dim), jnp.float32)
    x_seq = jax.random.normal(k_xs, (T, B, target_emb_dim), jnp.float32)
    hidden = jax.random.normal(k_h, (B, hidden_dim), jnp.float32)
    enc_context = jax.random.normal(k_c, (B, S, enc_ncontext), jnp.float32)
    # row 0: all valid, row 1: first 5 positions valid
    enc_mask = jnp.array([[1, 1, 1, 1, 1, 1, 1, 1],
                          [1, 1, 1, 1, 1, 0, 0, 0]], dtype=jnp.int32)

    # f32 references (faithful to the PyTorch module).
    ref_out, ref_h = reference(x, hidden, enc_mask, enc_context, params)
    h = hidden
    ref_seq = []
    for t in range(T):
        o, h = reference(x_seq[t], h, enc_mask, enc_context, params)
        ref_seq.append(o)
    ref_seq = jnp.stack(ref_seq)
    ref_seq_h = h

    # Multi-step (weight-resident) decode kernel + deferred vocab affine.
    out_seq, h_seq = vallina_decoder_seq(x_seq, hidden, enc_mask, enc_context,
                                         kparams, tgt_vob_size)
    out_seq, h_seq = jax.block_until_ready((out_seq, h_seq))

    # Single decoder step, value projection precomputed once (reusable).
    vproj = precompute_value_projection(enc_context, kparams)
    out, new_hidden = vallina_decoder(x, hidden, enc_mask, enc_context,
                                      kparams, tgt_vob_size, vproj=vproj)
    out, new_hidden = jax.block_until_ready((out, new_hidden))

    # Tolerances reflect bf16 MXU operands (f32 accumulation) vs. f32 reference.
    TOL = dict(atol=1e-1, rtol=1e-1)
    assert out.shape == (B, tgt_vob_size) and new_hidden.shape == (B, hidden_dim)
    assert jnp.all(jnp.isfinite(out)) and jnp.all(jnp.isfinite(new_hidden))
    assert jnp.allclose(out, ref_out, **TOL), float(jnp.max(jnp.abs(out - ref_out)))
    assert jnp.allclose(new_hidden, ref_h, **TOL), float(jnp.max(jnp.abs(new_hidden - ref_h)))

    assert out_seq.shape == (T, B, tgt_vob_size) and h_seq.shape == (B, hidden_dim)
    assert jnp.all(jnp.isfinite(out_seq)) and jnp.all(jnp.isfinite(h_seq))
    assert jnp.allclose(out_seq, ref_seq, **TOL), float(jnp.max(jnp.abs(out_seq - ref_seq)))
    assert jnp.allclose(h_seq, ref_seq_h, **TOL), float(jnp.max(jnp.abs(h_seq - ref_seq_h)))

    print("KERNEL_OK")
</pallas_src>

<mosaic_0001>
module attributes {stable_mosaic.version = 11 : i64} {
  func.func @decoder_seq_kernel(%arg0: i32, %arg1: i32, %arg2: memref<1x2x16xf32, #tpu.memory_space<vmem>>, %arg3: memref<2x32xf32, #tpu.memory_space<vmem>>, %arg4: memref<2x8xf32, #tpu.memory_space<vmem>>, %arg5: memref<2x8x24xbf16, #tpu.memory_space<vmem>>, %arg6: memref<16x96xbf16, #tpu.memory_space<vmem>>, %arg7: memref<32x96xbf16, #tpu.memory_space<vmem>>, %arg8: memref<1x128xf32, #tpu.memory_space<vmem>>, %arg9: memref<24x96xbf16, #tpu.memory_space<vmem>>, %arg10: memref<32x96xbf16, #tpu.memory_space<vmem>>, %arg11: memref<1x128xf32, #tpu.memory_space<vmem>>, %arg12: memref<32x16xbf16, #tpu.memory_space<vmem>>, %arg13: memref<24x16xbf16, #tpu.memory_space<vmem>>, %arg14: memref<1x16xf32, #tpu.memory_space<vmem>>, %arg15: memref<1x16xf32, #tpu.memory_space<vmem>>, %arg16: memref<16x32xbf16, #tpu.memory_space<vmem>>, %arg17: memref<32x32xbf16, #tpu.memory_space<vmem>>, %arg18: memref<24x32xbf16, #tpu.memory_space<vmem>>, %arg19: memref<1x32xf32, #tpu.memory_space<vmem>>, %arg20: memref<1x2x32xbf16, #tpu.memory_space<vmem>>, %arg21: memref<2x32xf32, #tpu.memory_space<vmem>>, %arg22: memref<2x8x16xbf16, #tpu.memory_space<vmem>>) attributes {dimension_semantics = [#tpu.dimension_semantics<parallel>, #tpu.dimension_semantics<arbitrary>], iteration_bounds = array<i64: 1, 4>, scalar_prefetch = 0 : i64, scratch_operands = 1 : i64, tpu.core_type = #tpu.core_type<tc>, window_params = [{transform_indices = @transform_0, window_bounds = array<i64: 1, 2, 16>}, {pipeline_mode = #tpu.pipeline_mode<synchronous>, transform_indices = @transform_1, window_bounds = array<i64: 2, 32>}, {pipeline_mode = #tpu.pipeline_mode<synchronous>, transform_indices = @transform_2, window_bounds = array<i64: 2, 8>}, {pipeline_mode = #tpu.pipeline_mode<synchronous>, transform_indices = @transform_3, window_bounds = array<i64: 2, 8, 24>}, {pipeline_mode = #tpu.pipeline_mode<synchronous>, transform_indices = @transform_4, window_bounds = array<i64: 16, 96>}, {pipeline_mode = #tpu.pipeline_mode<synchronous>, transform_indices = @transform_5, window_bounds = array<i64: 32, 96>}, {pipeline_mode = #tpu.pipeline_mode<synchronous>, transform_indices = @transform_6, window_bounds = array<i64: 1, 128>}, {pipeline_mode = #tpu.pipeline_mode<synchronous>, transform_indices = @transform_7, window_bounds = array<i64: 24, 96>}, {pipeline_mode = #tpu.pipeline_mode<synchronous>, transform_indices = @transform_8, window_bounds = array<i64: 32, 96>}, {pipeline_mode = #tpu.pipeline_mode<synchronous>, transform_indices = @transform_9, window_bounds = array<i64: 1, 128>}, {pipeline_mode = #tpu.pipeline_mode<synchronous>, transform_indices = @transform_10, window_bounds = array<i64: 32, 16>}, {pipeline_mode = #tpu.pipeline_mode<synchronous>, transform_indices = @transform_11, window_bounds = array<i64: 24, 16>}, {pipeline_mode = #tpu.pipeline_mode<synchronous>, transform_indices = @transform_12, window_bounds = array<i64: 1, 16>}, {pipeline_mode = #tpu.pipeline_mode<synchronous>, transform_indices = @transform_13, window_bounds = array<i64: 1, 16>}, {pipeline_mode = #tpu.pipeline_mode<synchronous>, transform_indices = @transform_14, window_bounds = array<i64: 16, 32>}, {pipeline_mode = #tpu.pipeline_mode<synchronous>, transform_indices = @transform_15, window_bounds = array<i64: 32, 32>}, {pipeline_mode = #tpu.pipeline_mode<synchronous>, transform_indices = @transform_16, window_bounds = array<i64: 24, 32>}, {pipeline_mode = #tpu.pipeline_mode<synchronous>, transform_indices = @transform_17, window_bounds = array<i64: 1, 32>}, {transform_indices = @transform_18, window_bounds = array<i64: 1, 2, 32>}, {transform_indices = @transform_19, window_bounds = array<i64: 2, 32>}]} {
    %c0_i32 = arith.constant 0 : i32
    %0 = arith.cmpi eq, %arg1, %c0_i32 : i32
    %1 = arith.extui %0 : i1 to i32
    %c0_i32_0 = arith.constant 0 : i32
    %2 = arith.cmpi ne, %1, %c0_i32_0 : i32
    scf.if %2 {
      %c0_60 = arith.constant 0 : index
      %c0_61 = arith.constant 0 : index
      %140 = vector.load %arg3[%c0_60, %c0_61] : memref<2x32xf32, #tpu.memory_space<vmem>>, vector<2x32xf32>
      %c0_62 = arith.constant 0 : index
      %c0_63 = arith.constant 0 : index
      %141 = vector.load %arg21[%c0_62, %c0_63] : memref<2x32xf32, #tpu.memory_space<vmem>>, vector<2x32xf32>
      tpu.vector_store %arg21[%c0_62, %c0_63], %140 {strides = array<i32>} : memref<2x32xf32, #tpu.memory_space<vmem>>, vector<2x32xf32>,
      %c0_64 = arith.constant 0 : index
      %c0_65 = arith.constant 0 : index
      %c0_66 = arith.constant 0 : index
      %142 = vector.load %arg5[%c0_64, %c0_65, %c0_66] : memref<2x8x24xbf16, #tpu.memory_space<vmem>>, vector<2x8x24xbf16>
      %c0_67 = arith.constant 0 : index
      %c0_68 = arith.constant 0 : index
      %143 = vector.load %arg13[%c0_67, %c0_68] : memref<24x16xbf16, #tpu.memory_space<vmem>>, vector<24x16xbf16>
      "tpu.trace_start"() <{level = 10 : i32, message = "bsc,ca->bsa"}> : () -> ()
      %cst_69 = arith.constant dense<0.000000e+00> : vector<2x8x16xf32>
      %144 = tpu.matmul %142, %143, %cst_69 {dimension_numbers = #tpu.dot_dimension_numbers<[2], [0], [0, 1], [1], [0, 0, 0, 1, 1, 1], [], []>} : vector<2x8x24xbf16>, vector<24x16xbf16>, vector<2x8x16xf32> -> vector<2x8x16xf32>
      "tpu.trace_stop"() : () -> ()
      %c0_70 = arith.constant 0 : index
      %c0_71 = arith.constant 0 : index
      %145 = vector.load %arg14[%c0_70, %c0_71] : memref<1x16xf32, #tpu.memory_space<vmem>>, vector<1x16xf32>
      %146 = vector.shape_cast %145 : vector<1x16xf32> to vector<1x1x16xf32>
      %147 = vector.broadcast %146 : vector<1x1x16xf32> to vector<2x8x16xf32>
      %148 = arith.addf %144, %147 : vector<2x8x16xf32>
      %149 = arith.truncf %148 : vector<2x8x16xf32> to vector<2x8x16xbf16>
      %c0_72 = arith.constant 0 : index
      %c0_73 = arith.constant 0 : index
      %c0_74 = arith.constant 0 : index
      %150 = vector.load %arg22[%c0_72, %c0_73, %c0_74] : memref<2x8x16xbf16, #tpu.memory_space<vmem>>, vector<2x8x16xbf16>
      tpu.vector_store %arg22[%c0_72, %c0_73, %c0_74], %149 {strides = array<i32>} : memref<2x8x16xbf16, #tpu.memory_space<vmem>>, vector<2x8x16xbf16>,
    } else {
    }
    %c0 = arith.constant 0 : index
    %c0_1 = arith.constant 0 : index
    %c0_2 = arith.constant 0 : index
    %3 = vector.load %arg2[%c0, %c0_1, %c0_2] : memref<1x2x16xf32, #tpu.memory_space<vmem>>, vector<1x2x16xf32>
    %4 = vector.shape_cast %3 : vector<1x2x16xf32> to vector<2x16xf32>
    %c0_3 = arith.constant 0 : index
    %c0_4 = arith.constant 0 : index
    %5 = vector.load %arg21[%c0_3, %c0_4] : memref<2x32xf32, #tpu.memory_space<vmem>>, vector<2x32xf32>
    %c0_5 = arith.constant 0 : index
    %c0_6 = arith.constant 0 : index
    %6 = vector.load %arg6[%c0_5, %c0_6] : memref<16x96xbf16, #tpu.memory_space<vmem>>, vector<16x96xbf16>
    %c0_7 = arith.constant 0 : index
    %c0_8 = arith.constant 0 : index
    %7 = vector.load %arg7[%c0_7, %c0_8] : memref<32x96xbf16, #tpu.memory_space<vmem>>, vector<32x96xbf16>
    %c0_9 = arith.constant 0 : index
    %c0_10 = arith.constant 0 : index
    %8 = vector.load %arg8[%c0_9, %c0_10] : memref<1x128xf32, #tpu.memory_space<vmem>>, vector<1x128xf32>
    %c0_11 = arith.constant 0 : index
    %c0_12 = arith.constant 0 : index
    %9 = vector.load %arg9[%c0_11, %c0_12] : memref<24x96xbf16, #tpu.memory_space<vmem>>, vector<24x96xbf16>
    %c0_13 = arith.constant 0 : index
    %c0_14 = arith.constant 0 : index
    %10 = vector.load %arg10[%c0_13, %c0_14] : memref<32x96xbf16, #tpu.memory_space<vmem>>, vector<32x96xbf16>
    %c0_15 = arith.constant 0 : index
    %c0_16 = arith.constant 0 : index
    %11 = vector.load %arg11[%c0_15, %c0_16] : memref<1x128xf32, #tpu.memory_space<vmem>>, vector<1x128xf32>
    %c0_17 = arith.constant 0 : index
    %c0_18 = arith.constant 0 : index
    %12 = vector.load %arg12[%c0_17, %c0_18] : memref<32x16xbf16, #tpu.memory_space<vmem>>, vector<32x16xbf16>
    %c0_19 = arith.constant 0 : index
    %c0_20 = arith.constant 0 : index
    %13 = vector.load %arg15[%c0_19, %c0_20] : memref<1x16xf32, #tpu.memory_space<vmem>>, vector<1x16xf32>
    %c0_21 = arith.constant 0 : index
    %c0_22 = arith.constant 0 : index
    %14 = vector.load %arg16[%c0_21, %c0_22] : memref<16x32xbf16, #tpu.memory_space<vmem>>, vector<16x32xbf16>
    %c0_23 = arith.constant 0 : index
    %c0_24 = arith.constant 0 : index
    %15 = vector.load %arg17[%c0_23, %c0_24] : memref<32x32xbf16, #tpu.memory_space<vmem>>, vector<32x32xbf16>
    %c0_25 = arith.constant 0 : index
    %c0_26 = arith.constant 0 : index
    %16 = vector.load %arg18[%c0_25, %c0_26] : memref<24x32xbf16, #tpu.memory_space<vmem>>, vector<24x32xbf16>
    %c0_27 = arith.constant 0 : index
    %c0_28 = arith.constant 0 : index
    %17 = vector.load %arg19[%c0_27, %c0_28] : memref<1x32xf32, #tpu.memory_space<vmem>>, vector<1x32xf32>
    %18 = arith.truncf %4 : vector<2x16xf32> to vector<2x16xbf16>
    %cst = arith.constant dense<0.000000e+00> : vector<2x96xf32>
    %19 = tpu.matmul %18, %6, %cst {dimension_numbers = #tpu.dot_dimension_numbers<[1], [0], [0], [1], [0, 0, 1, 1], [], []>} : vector<2x16xbf16>, vector<16x96xbf16>, vector<2x96xf32> -> vector<2x96xf32>
    %20 = arith.truncf %5 : vector<2x32xf32> to vector<2x32xbf16>
    %cst_29 = arith.constant dense<0.000000e+00> : vector<2x96xf32>
    %21 = tpu.matmul %20, %7, %cst_29 {dimension_numbers = #tpu.dot_dimension_numbers<[1], [0], [0], [1], [0, 0, 1, 1], [], []>} : vector<2x32xbf16>, vector<32x96xbf16>, vector<2x96xf32> -> vector<2x96xf32>
    %22 = vector.extract_strided_slice %19 {offsets = [0, 0], sizes = [2, 64], strides = [1, 1]} : vector<2x96xf32> to vector<2x64xf32>
    %23 = vector.extract_strided_slice %21 {offsets = [0, 0], sizes = [2, 64], strides = [1, 1]} : vector<2x96xf32> to vector<2x64xf32>
    %24 = arith.addf %22, %23 : vector<2x64xf32>
    %25 = vector.extract_strided_slice %8 {offsets = [0, 0], sizes = [1, 64], strides = [1, 1]} : vector<1x128xf32> to vector<1x64xf32>
    %26 = vector.broadcast %25 : vector<1x64xf32> to vector<2x64xf32>
    %27 = arith.addf %24, %26 : vector<2x64xf32>
    %28 = arith.negf %27 : vector<2x64xf32>
    %29 = math.exp %28 : vector<2x64xf32>
    %cst_30 = arith.constant 1.000000e+00 : f32
    %30 = vector.broadcast %cst_30 : f32 to vector<2x64xf32>
    %31 = arith.addf %30, %29 : vector<2x64xf32>
    %32 = arith.divf %30, %31 : vector<2x64xf32>
    %33 = vector.extract_strided_slice %32 {offsets = [0, 0], sizes = [2, 32], strides = [1, 1]} : vector<2x64xf32> to vector<2x32xf32>
    %34 = vector.extract_strided_slice %32 {offsets = [0, 32], sizes = [2, 32], strides = [1, 1]} : vector<2x64xf32> to vector<2x32xf32>
    %35 = vector.extract_strided_slice %19 {offsets = [0, 64], sizes = [2, 32], strides = [1, 1]} : vector<2x96xf32> to vector<2x32xf32>
    %36 = vector.extract_strided_slice %8 {offsets = [0, 64], sizes = [1, 32], strides = [1, 1]} : vector<1x128xf32> to vector<1x32xf32>
    %37 = vector.broadcast %36 : vector<1x32xf32> to vector<2x32xf32>
    %38 = arith.addf %35, %37 : vector<2x32xf32>
    %39 = vector.extract_strided_slice %21 {offsets = [0, 64], sizes = [2, 32], strides = [1, 1]} : vector<2x96xf32> to vector<2x32xf32>
    %40 = vector.extract_strided_slice %8 {offsets = [0, 96], sizes = [1, 32], strides = [1, 1]} : vector<1x128xf32> to vector<1x32xf32>
    %41 = vector.broadcast %40 : vector<1x32xf32> to vector<2x32xf32>
    %42 = arith.addf %39, %41 : vector<2x32xf32>
    %43 = arith.mulf %33, %42 : vector<2x32xf32>
    %44 = arith.addf %38, %43 : vector<2x32xf32>
    %45 = math.tanh %44 : vector<2x32xf32>
    %cst_31 = arith.constant 1.000000e+00 : f32
    %46 = vector.broadcast %cst_31 : f32 to vector<2x32xf32>
    %47 = arith.subf %46, %34 : vector<2x32xf32>
    %48 = arith.mulf %47, %45 : vector<2x32xf32>
    %49 = arith.mulf %34, %5 : vector<2x32xf32>
    %50 = arith.addf %48, %49 : vector<2x32xf32>
    %51 = arith.truncf %50 : vector<2x32xf32> to vector<2x32xbf16>
    %cst_32 = arith.constant dense<0.000000e+00> : vector<2x16xf32>
    %52 = tpu.matmul %51, %12, %cst_32 {dimension_numbers = #tpu.dot_dimension_numbers<[1], [0], [0], [1], [0, 0, 1, 1], [], []>} : vector<2x32xbf16>, vector<32x16xbf16>, vector<2x16xf32> -> vector<2x16xf32>
    %cst_33 = arith.constant -1.000000e+30 : f32
    %53 = vector.broadcast %cst_33 : f32 to vector<2x1xf32>
    %cst_34 = arith.constant 0.000000e+00 : f32
    %54 = vector.broadcast %cst_34 : f32 to vector<2x1xf32>
    %cst_35 = arith.constant 0.000000e+00 : f32
    %55 = vector.broadcast %cst_35 : f32 to vector<2x24xf32>
    %c0_36 = arith.constant 0 : index
    %c0_37 = arith.constant 0 : index
    %c0_38 = arith.constant 0 : index
    %56 = vector.load %arg22[%c0_36, %c0_37, %c0_38] : memref<2x8x16xbf16, #tpu.memory_space<vmem>>, vector<2x8x16xbf16>
    %57 = arith.extf %56 : vector<2x8x16xbf16> to vector<2x8x16xf32>
    %c0_39 = arith.constant 0 : index
    %c0_40 = arith.constant 0 : index
    %58 = vector.load %arg4[%c0_39, %c0_40] : memref<2x8xf32, #tpu.memory_space<vmem>>, vector<2x8xf32>
    %c0_41 = arith.constant 0 : index
    %c0_42 = arith.constant 0 : index
    %c0_43 = arith.constant 0 : index
    %59 = vector.load %arg5[%c0_41, %c0_42, %c0_43] : memref<2x8x24xbf16, #tpu.memory_space<vmem>>, vector<2x8x24xbf16>
    %60 = vector.shape_cast %52 : vector<2x16xf32> to vector<2x1x16xf32>
    %61 = vector.broadcast %60 : vector<2x1x16xf32> to vector<2x8x16xf32>
    %62 = arith.addf %57, %61 : vector<2x8x16xf32>
    %63 = math.tanh %62 : vector<2x8x16xf32>
    %64 = vector.shape_cast %13 : vector<1x16xf32> to vector<1x1x16xf32>
    %65 = vector.broadcast %64 : vector<1x1x16xf32> to vector<2x8x16xf32>
    %66 = arith.mulf %63, %65 : vector<2x8x16xf32>
    %cst_44 = arith.constant dense<0.000000e+00> : vector<2x8xf32>
    %67 = vector.multi_reduction <add>, %66, %cst_44 [2] : vector<2x8x16xf32> to vector<2x8xf32>
    %68 = arith.addf %67, %58 : vector<2x8xf32>
    %cst_45 = arith.constant dense<0xFF800000> : vector<2xf32>
    %69 = vector.multi_reduction <maximumf>, %68, %cst_45 [1] : vector<2x8xf32> to vector<2xf32>
    %70 = vector.shape_cast %69 : vector<2xf32> to vector<2x1xf32>
    %71 = arith.maximumf %53, %70 : vector<2x1xf32>
    %72 = arith.subf %53, %71 : vector<2x1xf32>
    %73 = math.exp %72 : vector<2x1xf32>
    %74 = vector.broadcast %71 : vector<2x1xf32> to vector<2x8xf32>
    %75 = arith.subf %68, %74 : vector<2x8xf32>
    %76 = math.exp %75 : vector<2x8xf32>
    %77 = arith.mulf %73, %54 : vector<2x1xf32>
    %cst_46 = arith.constant dense<0.000000e+00> : vector<2xf32>
    %78 = vector.multi_reduction <add>, %76, %cst_46 [1] : vector<2x8xf32> to vector<2xf32>
    %79 = vector.shape_cast %78 : vector<2xf32> to vector<2x1xf32>
    %80 = arith.addf %77, %79 : vector<2x1xf32>
    %81 = arith.truncf %76 : vector<2x8xf32> to vector<2x8xbf16>
    %82 = vector.shape_cast %81 : vector<2x8xbf16> to vector<2x1x8xbf16>
    "tpu.trace_start"() <{level = 10 : i32, message = "bqs,bsc->bqc"}> : () -> ()
    %cst_47 = arith.constant dense<0.000000e+00> : vector<2x1x24xf32>
    %83 = tpu.matmul %82, %59, %cst_47 {dimension_numbers = #tpu.dot_dimension_numbers<[2], [1], [1], [2], [0, 0, 0, 1, 1, 2], [0], [0]>} : vector<2x1x8xbf16>, vector<2x8x24xbf16>, vector<2x1x24xf32> -> vector<2x1x24xf32>
    "tpu.trace_stop"() : () -> ()
    %84 = vector.shape_cast %83 : vector<2x1x24xf32> to vector<2x24xf32>
    %85 = vector.broadcast %73 : vector<2x1xf32> to vector<2x24xf32>
    %86 = arith.mulf %85, %55 : vector<2x24xf32>
    %87 = arith.addf %86, %84 : vector<2x24xf32>
    %88 = tpu.reciprocal %80 {approx = true} : vector<2x1xf32> -> vector<2x1xf32>
    %89 = vector.broadcast %88 : vector<2x1xf32> to vector<2x24xf32>
    %90 = arith.mulf %87, %89 : vector<2x24xf32>
    %91 = arith.truncf %90 : vector<2x24xf32> to vector<2x24xbf16>
    %cst_48 = arith.constant dense<0.000000e+00> : vector<2x96xf32>
    %92 = tpu.matmul %91, %9, %cst_48 {dimension_numbers = #tpu.dot_dimension_numbers<[1], [0], [0], [1], [0, 0, 1, 1], [], []>} : vector<2x24xbf16>, vector<24x96xbf16>, vector<2x96xf32> -> vector<2x96xf32>
    %93 = arith.truncf %50 : vector<2x32xf32> to vector<2x32xbf16>
    %cst_49 = arith.constant dense<0.000000e+00> : vector<2x96xf32>
    %94 = tpu.matmul %93, %10, %cst_49 {dimension_numbers = #tpu.dot_dimension_numbers<[1], [0], [0], [1], [0, 0, 1, 1], [], []>} : vector<2x32xbf16>, vector<32x96xbf16>, vector<2x96xf32> -> vector<2x96xf32>
    %95 = vector.extract_strided_slice %92 {offsets = [0, 0], sizes = [2, 64], strides = [1, 1]} : vector<2x96xf32> to vector<2x64xf32>
    %96 = vector.extract_strided_slice %94 {offsets = [0, 0], sizes = [2, 64], strides = [1, 1]} : vector<2x96xf32> to vector<2x64xf32>
    %97 = arith.addf %95, %96 : vector<2x64xf32>
    %98 = vector.extract_strided_slice %11 {offsets = [0, 0], sizes = [1, 64], strides = [1, 1]} : vector<1x128xf32> to vector<1x64xf32>
    %99 = vector.broadcast %98 : vector<1x64xf32> to vector<2x64xf32>
    %100 = arith.addf %97, %99 : vector<2x64xf32>
    %101 = arith.negf %100 : vector<2x64xf32>
    %102 = math.exp %101 : vector<2x64xf32>
    %cst_50 = arith.constant 1.000000e+00 : f32
    %103 = vector.broadcast %cst_50 : f32 to vector<2x64xf32>
    %104 = arith.addf %103, %102 : vector<2x64xf32>
    %105 = arith.divf %103, %104 : vector<2x64xf32>
    %106 = vector.extract_strided_slice %105 {offsets = [0, 0], sizes = [2, 32], strides = [1, 1]} : vector<2x64xf32> to vector<2x32xf32>
    %107 = vector.extract_strided_slice %105 {offsets = [0, 32], sizes = [2, 32], strides = [1, 1]} : vector<2x64xf32> to vector<2x32xf32>
    %108 = vector.extract_strided_slice %92 {offsets = [0, 64], sizes = [2, 32], strides = [1, 1]} : vector<2x96xf32> to vector<2x32xf32>
    %109 = vector.extract_strided_slice %11 {offsets = [0, 64], sizes = [1, 32], strides = [1, 1]} : vector<1x128xf32> to vector<1x32xf32>
    %110 = vector.broadcast %109 : vector<1x32xf32> to vector<2x32xf32>
    %111 = arith.addf %108, %110 : vector<2x32xf32>
    %112 = vector.extract_strided_slice %94 {offsets = [0, 64], sizes = [2, 32], strides = [1, 1]} : vector<2x96xf32> to vector<2x32xf32>
    %113 = vector.extract_strided_slice %11 {offsets = [0, 96], sizes = [1, 32], strides = [1, 1]} : vector<1x128xf32> to vector<1x32xf32>
    %114 = vector.broadcast %113 : vector<1x32xf32> to vector<2x32xf32>
    %115 = arith.addf %112, %114 : vector<2x32xf32>
    %116 = arith.mulf %106, %115 : vector<2x32xf32>
    %117 = arith.addf %111, %116 : vector<2x32xf32>
    %118 = math.tanh %117 : vector<2x32xf32>
    %cst_51 = arith.constant 1.000000e+00 : f32
    %119 = vector.broadcast %cst_51 : f32 to vector<2x32xf32>
    %120 = arith.subf %119, %107 : vector<2x32xf32>
    %121 = arith.mulf %120, %118 : vector<2x32xf32>
    %122 = arith.mulf %107, %50 : vector<2x32xf32>
    %123 = arith.addf %121, %122 : vector<2x32xf32>
    %124 = arith.truncf %4 : vector<2x16xf32> to vector<2x16xbf16>
    %cst_52 = arith.constant dense<0.000000e+00> : vector<2x32xf32>
    %125 = tpu.matmul %124, %14, %cst_52 {dimension_numbers = #tpu.dot_dimension_numbers<[1], [0], [0], [1], [0, 0, 1, 1], [], []>} : vector<2x16xbf16>, vector<16x32xbf16>, vector<2x32xf32> -> vector<2x32xf32>
    %126 = arith.truncf %123 : vector<2x32xf32> to vector<2x32xbf16>
    %cst_53 = arith.constant dense<0.000000e+00> : vector<2x32xf32>
    %127 = tpu.matmul %126, %15, %cst_53 {dimension_numbers = #tpu.dot_dimension_numbers<[1], [0], [0], [1], [0, 0, 1, 1], [], []>} : vector<2x32xbf16>, vector<32x32xbf16>, vector<2x32xf32> -> vector<2x32xf32>
    %128 = arith.addf %125, %127 : vector<2x32xf32>
    %129 = arith.truncf %90 : vector<2x24xf32> to vector<2x24xbf16>
    %cst_54 = arith.constant dense<0.000000e+00> : vector<2x32xf32>
    %130 = tpu.matmul %129, %16, %cst_54 {dimension_numbers = #tpu.dot_dimension_numbers<[1], [0], [0], [1], [0, 0, 1, 1], [], []>} : vector<2x24xbf16>, vector<24x32xbf16>, vector<2x32xf32> -> vector<2x32xf32>
    %131 = arith.addf %128, %130 : vector<2x32xf32>
    %132 = vector.broadcast %17 : vector<1x32xf32> to vector<2x32xf32>
    %133 = arith.addf %131, %132 : vector<2x32xf32>
    %134 = math.tanh %133 : vector<2x32xf32>
    %135 = arith.truncf %134 : vector<2x32xf32> to vector<2x32xbf16>
    %c0_55 = arith.constant 0 : index
    %c0_56 = arith.constant 0 : index
    %c0_57 = arith.constant 0 : index
    %136 = vector.load %arg20[%c0_55, %c0_56, %c0_57] : memref<1x2x32xbf16, #tpu.memory_space<vmem>>, vector<1x2x32xbf16>
    %137 = vector.shape_cast %136 : vector<1x2x32xbf16> to vector<2x32xbf16>
    %138 = vector.shape_cast %135 : vector<2x32xbf16> to vector<1x2x32xbf16>
    tpu.vector_store %arg20[%c0_55, %c0_56, %c0_57], %138 {strides = array<i32>} : memref<1x2x32xbf16, #tpu.memory_space<vmem>>, vector<1x2x32xbf16>,
    %c0_58 = arith.constant 0 : index
    %c0_59 = arith.constant 0 : index
    %139 = vector.load %arg21[%c0_58, %c0_59] : memref<2x32xf32, #tpu.memory_space<vmem>>, vector<2x32xf32>
    tpu.vector_store %arg21[%c0_58, %c0_59], %123 {strides = array<i32>} : memref<2x32xf32, #tpu.memory_space<vmem>>, vector<2x32xf32>,
    return
  }
  func.func @transform_0(%arg0: i32, %arg1: i32) -> (i32, i32, i32) {
    %c0_i32 = arith.constant 0 : i32
    %c0_i32_0 = arith.constant 0 : i32
    return %arg1, %arg0, %c0_i32 : i32, i32, i32
  }
  func.func @transform_1(%arg0: i32, %arg1: i32) -> (i32, i32) {
    %c0_i32 = arith.constant 0 : i32
    %c0_i32_0 = arith.constant 0 : i32
    return %arg0, %c0_i32 : i32, i32
  }
  func.func @transform_2(%arg0: i32, %arg1: i32) -> (i32, i32) {
    %c0_i32 = arith.constant 0 : i32
    %c0_i32_0 = arith.constant 0 : i32
    return %arg0, %c0_i32 : i32, i32
  }
  func.func @transform_3(%arg0: i32, %arg1: i32) -> (i32, i32, i32) {
    %c0_i32 = arith.constant 0 : i32
    %c0_i32_0 = arith.constant 0 : i32
    %c0_i32_1 = arith.constant 0 : i32
    return %arg0, %c0_i32, %c0_i32_0 : i32, i32, i32
  }
  func.func @transform_4(%arg0: i32, %arg1: i32) -> (i32, i32) {
    %c0_i32 = arith.constant 0 : i32
    %c0_i32_0 = arith.constant 0 : i32
    %c0_i32_1 = arith.constant 0 : i32
    return %c0_i32, %c0_i32_0 : i32, i32
  }
  func.func @transform_5(%arg0: i32, %arg1: i32) -> (i32, i32) {
    %c0_i32 = arith.constant 0 : i32
    %c0_i32_0 = arith.constant 0 : i32
    %c0_i32_1 = arith.constant 0 : i32
    return %c0_i32, %c0_i32_0 : i32, i32
  }
  func.func @transform_6(%arg0: i32, %arg1: i32) -> (i32, i32) {
    %c0_i32 = arith.constant 0 : i32
    %c0_i32_0 = arith.constant 0 : i32
    %c0_i32_1 = arith.constant 0 : i32
    return %c0_i32, %c0_i32_0 : i32, i32
  }
  func.func @transform_7(%arg0: i32, %arg1: i32) -> (i32, i32) {
    %c0_i32 = arith.constant 0 : i32
    %c0_i32_0 = arith.constant 0 : i32
    %c0_i32_1 = arith.constant 0 : i32
    return %c0_i32, %c0_i32_0 : i32, i32
  }
  func.func @transform_8(%arg0: i32, %arg1: i32) -> (i32, i32) {
    %c0_i32 = arith.constant 0 : i32
    %c0_i32_0 = arith.constant 0 : i32
    %c0_i32_1 = arith.constant 0 : i32
    return %c0_i32, %c0_i32_0 : i32, i32
  }
  func.func @transform_9(%arg0: i32, %arg1: i32) -> (i32, i32) {
    %c0_i32 = arith.constant 0 : i32
    %c0_i32_0 = arith.constant 0 : i32
    %c0_i32_1 = arith.constant 0 : i32
    return %c0_i32, %c0_i32_0 : i32, i32
  }
  func.func @transform_10(%arg0: i32, %arg1: i32) -> (i32, i32) {
    %c0_i32 = arith.constant 0 : i32
    %c0_i32_0 = arith.constant 0 : i32
    %c0_i32_1 = arith.constant 0 : i32
    return %c0_i32, %c0_i32_0 : i32, i32
  }
  func.func @transform_11(%arg0: i32, %arg1: i32) -> (i32, i32) {
    %c0_i32 = arith.constant 0 : i32
    %c0_i32_0 = arith.constant 0 : i32
    %c0_i32_1 = arith.constant 0 : i32
    return %c0_i32, %c0_i32_0 : i32, i32
  }
  func.func @transform_12(%arg0: i32, %arg1: i32) -> (i32, i32) {
    %c0_i32 = arith.constant 0 : i32
    %c0_i32_0 = arith.constant 0 : i32
    %c0_i32_1 = arith.constant 0 : i32
    return %c0_i32, %c0_i32_0 : i32, i32
  }
  func.func @transform_13(%arg0: i32, %arg1: i32) -> (i32, i32) {
    %c0_i32 = arith.constant 0 : i32
    %c0_i32_0 = arith.constant 0 : i32
    %c0_i32_1 = arith.constant 0 : i32
    return %c0_i32, %c0_i32_0 : i32, i32
  }
  func.func @transform_14(%arg0: i32, %arg1: i32) -> (i32, i32) {
    %c0_i32 = arith.constant 0 : i32
    %c0_i32_0 = arith.constant 0 : i32
    %c0_i32_1 = arith.constant 0 : i32
    return %c0_i32, %c0_i32_0 : i32, i32
  }
  func.func @transform_15(%arg0: i32, %arg1: i32) -> (i32, i32) {
    %c0_i32 = arith.constant 0 : i32
    %c0_i32_0 = arith.constant 0 : i32
    %c0_i32_1 = arith.constant 0 : i32
    return %c0_i32, %c0_i32_0 : i32, i32
  }
  func.func @transform_16(%arg0: i32, %arg1: i32) -> (i32, i32) {
    %c0_i32 = arith.constant 0 : i32
    %c0_i32_0 = arith.constant 0 : i32
    %c0_i32_1 = arith.constant 0 : i32
    return %c0_i32, %c0_i32_0 : i32, i32
  }
  func.func @transform_17(%arg0: i32, %arg1: i32) -> (i32, i32) {
    %c0_i32 = arith.constant 0 : i32
    %c0_i32_0 = arith.constant 0 : i32
    %c0_i32_1 = arith.constant 0 : i32
    return %c0_i32, %c0_i32_0 : i32, i32
  }
  func.func @transform_18(%arg0: i32, %arg1: i32) -> (i32, i32, i32) {
    %c0_i32 = arith.constant 0 : i32
    %c0_i32_0 = arith.constant 0 : i32
    return %arg1, %arg0, %c0_i32 : i32, i32, i32
  }
  func.func @transform_19(%arg0: i32, %arg1: i32) -> (i32, i32) {
    %c0_i32 = arith.constant 0 : i32
    %c0_i32_0 = arith.constant 0 : i32
    return %arg0, %c0_i32 : i32, i32
  }
}

module attributes {stable_mosaic.version = 11 : i64} {
  func.func @decoder_seq_kernel(%arg0: i32, %arg1: i32, %arg2: memref<1x2x16xf32, #tpu.memory_space<vmem>>, %arg3: memref<2x32xf32, #tpu.memory_space<vmem>>, %arg4: memref<2x8xf32, #tpu.memory_space<vmem>>, %arg5: memref<2x8x24xbf16, #tpu.memory_space<vmem>>, %arg6: memref<16x96xbf16, #tpu.memory_space<vmem>>, %arg7: memref<32x96xbf16, #tpu.memory_space<vmem>>, %arg8: memref<1x128xf32, #tpu.memory_space<vmem>>, %arg9: memref<24x96xbf16, #tpu.memory_space<vmem>>, %arg10: memref<32x96xbf16, #tpu.memory_space<vmem>>, %arg11: memref<1x128xf32, #tpu.memory_space<vmem>>, %arg12: memref<32x16xbf16, #tpu.memory_space<vmem>>, %arg13: memref<24x16xbf16, #tpu.memory_space<vmem>>, %arg14: memref<1x16xf32, #tpu.memory_space<vmem>>, %arg15: memref<1x16xf32, #tpu.memory_space<vmem>>, %arg16: memref<16x32xbf16, #tpu.memory_space<vmem>>, %arg17: memref<32x32xbf16, #tpu.memory_space<vmem>>, %arg18: memref<24x32xbf16, #tpu.memory_space<vmem>>, %arg19: memref<1x32xf32, #tpu.memory_space<vmem>>, %arg20: memref<1x2x32xbf16, #tpu.memory_space<vmem>>, %arg21: memref<2x32xf32, #tpu.memory_space<vmem>>, %arg22: memref<2x8x16xbf16, #tpu.memory_space<vmem>>) attributes {dimension_semantics = [#tpu.dimension_semantics<parallel>, #tpu.dimension_semantics<arbitrary>], iteration_bounds = array<i64: 1, 4>, scalar_prefetch = 0 : i64, scratch_operands = 1 : i64, tpu.core_type = #tpu.core_type<tc>, window_params = [{transform_indices = @transform_0, window_bounds = array<i64: 1, 2, 16>}, {transform_indices = @transform_1, window_bounds = array<i64: 2, 32>}, {transform_indices = @transform_2, window_bounds = array<i64: 2, 8>}, {transform_indices = @transform_3, window_bounds = array<i64: 2, 8, 24>}, {pipeline_mode = #tpu.pipeline_mode<synchronous>, transform_indices = @transform_4, window_bounds = array<i64: 16, 96>}, {pipeline_mode = #tpu.pipeline_mode<synchronous>, transform_indices = @transform_5, window_bounds = array<i64: 32, 96>}, {pipeline_mode = #tpu.pipeline_mode<synchronous>, transform_indices = @transform_6, window_bounds = array<i64: 1, 128>}, {pipeline_mode = #tpu.pipeline_mode<synchronous>, transform_indices = @transform_7, window_bounds = array<i64: 24, 96>}, {pipeline_mode = #tpu.pipeline_mode<synchronous>, transform_indices = @transform_8, window_bounds = array<i64: 32, 96>}, {pipeline_mode = #tpu.pipeline_mode<synchronous>, transform_indices = @transform_9, window_bounds = array<i64: 1, 128>}, {pipeline_mode = #tpu.pipeline_mode<synchronous>, transform_indices = @transform_10, window_bounds = array<i64: 32, 16>}, {pipeline_mode = #tpu.pipeline_mode<synchronous>, transform_indices = @transform_11, window_bounds = array<i64: 24, 16>}, {pipeline_mode = #tpu.pipeline_mode<synchronous>, transform_indices = @transform_12, window_bounds = array<i64: 1, 16>}, {pipeline_mode = #tpu.pipeline_mode<synchronous>, transform_indices = @transform_13, window_bounds = array<i64: 1, 16>}, {pipeline_mode = #tpu.pipeline_mode<synchronous>, transform_indices = @transform_14, window_bounds = array<i64: 16, 32>}, {pipeline_mode = #tpu.pipeline_mode<synchronous>, transform_indices = @transform_15, window_bounds = array<i64: 32, 32>}, {pipeline_mode = #tpu.pipeline_mode<synchronous>, transform_indices = @transform_16, window_bounds = array<i64: 24, 32>}, {pipeline_mode = #tpu.pipeline_mode<synchronous>, transform_indices = @transform_17, window_bounds = array<i64: 1, 32>}, {transform_indices = @transform_18, window_bounds = array<i64: 1, 2, 32>}, {transform_indices = @transform_19, window_bounds = array<i64: 2, 32>}]} {
    %c0_i32 = arith.constant 0 : i32
    %0 = arith.cmpi eq, %arg1, %c0_i32 : i32
    %1 = arith.extui %0 : i1 to i32
    %c0_i32_0 = arith.constant 0 : i32
    %2 = arith.cmpi ne, %1, %c0_i32_0 : i32
    scf.if %2 {
      %c0_60 = arith.constant 0 : index
      %c0_61 = arith.constant 0 : index
      %140 = vector.load %arg3[%c0_60, %c0_61] : memref<2x32xf32, #tpu.memory_space<vmem>>, vector<2x32xf32>
      %c0_62 = arith.constant 0 : index
      %c0_63 = arith.constant 0 : index
      %141 = vector.load %arg21[%c0_62, %c0_63] : memref<2x32xf32, #tpu.memory_space<vmem>>, vector<2x32xf32>
      tpu.vector_store %arg21[%c0_62, %c0_63], %140 {strides = array<i32>} : memref<2x32xf32, #tpu.memory_space<vmem>>, vector<2x32xf32>,
      %c0_64 = arith.constant 0 : index
      %c0_65 = arith.constant 0 : index
      %c0_66 = arith.constant 0 : index
      %142 = vector.load %arg5[%c0_64, %c0_65, %c0_66] : memref<2x8x24xbf16, #tpu.memory_space<vmem>>, vector<2x8x24xbf16>
      %c0_67 = arith.constant 0 : index
      %c0_68 = arith.constant 0 : index
      %143 = vector.load %arg13[%c0_67, %c0_68] : memref<24x16xbf16, #tpu.memory_space<vmem>>, vector<24x16xbf16>
      "tpu.trace_start"() <{level = 10 : i32, message = "bsc,ca->bsa"}> : () -> ()
      %cst_69 = arith.constant dense<0.000000e+00> : vector<2x8x16xf32>
      %144 = tpu.matmul %142, %143, %cst_69 {dimension_numbers = #tpu.dot_dimension_numbers<[2], [0], [0, 1], [1], [0, 0, 0, 1, 1, 1], [], []>} : vector<2x8x24xbf16>, vector<24x16xbf16>, vector<2x8x16xf32> -> vector<2x8x16xf32>
      "tpu.trace_stop"() : () -> ()
      %c0_70 = arith.constant 0 : index
      %c0_71 = arith.constant 0 : index
      %145 = vector.load %arg14[%c0_70, %c0_71] : memref<1x16xf32, #tpu.memory_space<vmem>>, vector<1x16xf32>
      %146 = vector.shape_cast %145 : vector<1x16xf32> to vector<1x1x16xf32>
      %147 = vector.broadcast %146 : vector<1x1x16xf32> to vector<2x8x16xf32>
      %148 = arith.addf %144, %147 : vector<2x8x16xf32>
      %149 = arith.truncf %148 : vector<2x8x16xf32> to vector<2x8x16xbf16>
      %c0_72 = arith.constant 0 : index
      %c0_73 = arith.constant 0 : index
      %c0_74 = arith.constant 0 : index
      %150 = vector.load %arg22[%c0_72, %c0_73, %c0_74] : memref<2x8x16xbf16, #tpu.memory_space<vmem>>, vector<2x8x16xbf16>
      tpu.vector_store %arg22[%c0_72, %c0_73, %c0_74], %149 {strides = array<i32>} : memref<2x8x16xbf16, #tpu.memory_space<vmem>>, vector<2x8x16xbf16>,
    } else {
    }
    %c0 = arith.constant 0 : index
    %c0_1 = arith.constant 0 : index
    %c0_2 = arith.constant 0 : index
    %3 = vector.load %arg2[%c0, %c0_1, %c0_2] : memref<1x2x16xf32, #tpu.memory_space<vmem>>, vector<1x2x16xf32>
    %4 = vector.shape_cast %3 : vector<1x2x16xf32> to vector<2x16xf32>
    %c0_3 = arith.constant 0 : index
    %c0_4 = arith.constant 0 : index
    %5 = vector.load %arg21[%c0_3, %c0_4] : memref<2x32xf32, #tpu.memory_space<vmem>>, vector<2x32xf32>
    %c0_5 = arith.constant 0 : index
    %c0_6 = arith.constant 0 : index
    %6 = vector.load %arg6[%c0_5, %c0_6] : memref<16x96xbf16, #tpu.memory_space<vmem>>, vector<16x96xbf16>
    %c0_7 = arith.constant 0 : index
    %c0_8 = arith.constant 0 : index
    %7 = vector.load %arg7[%c0_7, %c0_8] : memref<32x96xbf16, #tpu.memory_space<vmem>>, vector<32x96xbf16>
    %c0_9 = arith.constant 0 : index
    %c0_10 = arith.constant 0 : index
    %8 = vector.load %arg8[%c0_9, %c0_10] : memref<1x128xf32, #tpu.memory_space<vmem>>, vector<1x128xf32>
    %c0_11 = arith.constant 0 : index
    %c0_12 = arith.constant 0 : index
    %9 = vector.load %arg9[%c0_11, %c0_12] : memref<24x96xbf16, #tpu.memory_space<vmem>>, vector<24x96xbf16>
    %c0_13 = arith.constant 0 : index
    %c0_14 = arith.constant 0 : index
    %10 = vector.load %arg10[%c0_13, %c0_14] : memref<32x96xbf16, #tpu.memory_space<vmem>>, vector<32x96xbf16>
    %c0_15 = arith.constant 0 : index
    %c0_16 = arith.constant 0 : index
    %11 = vector.load %arg11[%c0_15, %c0_16] : memref<1x128xf32, #tpu.memory_space<vmem>>, vector<1x128xf32>
    %c0_17 = arith.constant 0 : index
    %c0_18 = arith.constant 0 : index
    %12 = vector.load %arg12[%c0_17, %c0_18] : memref<32x16xbf16, #tpu.memory_space<vmem>>, vector<32x16xbf16>
    %c0_19 = arith.constant 0 : index
    %c0_20 = arith.constant 0 : index
    %13 = vector.load %arg15[%c0_19, %c0_20] : memref<1x16xf32, #tpu.memory_space<vmem>>, vector<1x16xf32>
    %c0_21 = arith.constant 0 : index
    %c0_22 = arith.constant 0 : index
    %14 = vector.load %arg16[%c0_21, %c0_22] : memref<16x32xbf16, #tpu.memory_space<vmem>>, vector<16x32xbf16>
    %c0_23 = arith.constant 0 : index
    %c0_24 = arith.constant 0 : index
    %15 = vector.load %arg17[%c0_23, %c0_24] : memref<32x32xbf16, #tpu.memory_space<vmem>>, vector<32x32xbf16>
    %c0_25 = arith.constant 0 : index
    %c0_26 = arith.constant 0 : index
    %16 = vector.load %arg18[%c0_25, %c0_26] : memref<24x32xbf16, #tpu.memory_space<vmem>>, vector<24x32xbf16>
    %c0_27 = arith.constant 0 : index
    %c0_28 = arith.constant 0 : index
    %17 = vector.load %arg19[%c0_27, %c0_28] : memref<1x32xf32, #tpu.memory_space<vmem>>, vector<1x32xf32>
    %18 = arith.truncf %4 : vector<2x16xf32> to vector<2x16xbf16>
    %cst = arith.constant dense<0.000000e+00> : vector<2x96xf32>
    %19 = tpu.matmul %18, %6, %cst {dimension_numbers = #tpu.dot_dimension_numbers<[1], [0], [0], [1], [0, 0, 1, 1], [], []>} : vector<2x16xbf16>, vector<16x96xbf16>, vector<2x96xf32> -> vector<2x96xf32>
    %20 = arith.truncf %5 : vector<2x32xf32> to vector<2x32xbf16>
    %cst_29 = arith.constant dense<0.000000e+00> : vector<2x96xf32>
    %21 = tpu.matmul %20, %7, %cst_29 {dimension_numbers = #tpu.dot_dimension_numbers<[1], [0], [0], [1], [0, 0, 1, 1], [], []>} : vector<2x32xbf16>, vector<32x96xbf16>, vector<2x96xf32> -> vector<2x96xf32>
    %22 = vector.extract_strided_slice %19 {offsets = [0, 0], sizes = [2, 64], strides = [1, 1]} : vector<2x96xf32> to vector<2x64xf32>
    %23 = vector.extract_strided_slice %21 {offsets = [0, 0], sizes = [2, 64], strides = [1, 1]} : vector<2x96xf32> to vector<2x64xf32>
    %24 = arith.addf %22, %23 : vector<2x64xf32>
    %25 = vector.extract_strided_slice %8 {offsets = [0, 0], sizes = [1, 64], strides = [1, 1]} : vector<1x128xf32> to vector<1x64xf32>
    %26 = vector.broadcast %25 : vector<1x64xf32> to vector<2x64xf32>
    %27 = arith.addf %24, %26 : vector<2x64xf32>
    %28 = arith.negf %27 : vector<2x64xf32>
    %29 = math.exp %28 : vector<2x64xf32>
    %cst_30 = arith.constant 1.000000e+00 : f32
    %30 = vector.broadcast %cst_30 : f32 to vector<2x64xf32>
    %31 = arith.addf %30, %29 : vector<2x64xf32>
    %32 = arith.divf %30, %31 : vector<2x64xf32>
    %33 = vector.extract_strided_slice %32 {offsets = [0, 0], sizes = [2, 32], strides = [1, 1]} : vector<2x64xf32> to vector<2x32xf32>
    %34 = vector.extract_strided_slice %32 {offsets = [0, 32], sizes = [2, 32], strides = [1, 1]} : vector<2x64xf32> to vector<2x32xf32>
    %35 = vector.extract_strided_slice %19 {offsets = [0, 64], sizes = [2, 32], strides = [1, 1]} : vector<2x96xf32> to vector<2x32xf32>
    %36 = vector.extract_strided_slice %8 {offsets = [0, 64], sizes = [1, 32], strides = [1, 1]} : vector<1x128xf32> to vector<1x32xf32>
    %37 = vector.broadcast %36 : vector<1x32xf32> to vector<2x32xf32>
    %38 = arith.addf %35, %37 : vector<2x32xf32>
    %39 = vector.extract_strided_slice %21 {offsets = [0, 64], sizes = [2, 32], strides = [1, 1]} : vector<2x96xf32> to vector<2x32xf32>
    %40 = vector.extract_strided_slice %8 {offsets = [0, 96], sizes = [1, 32], strides = [1, 1]} : vector<1x128xf32> to vector<1x32xf32>
    %41 = vector.broadcast %40 : vector<1x32xf32> to vector<2x32xf32>
    %42 = arith.addf %39, %41 : vector<2x32xf32>
    %43 = arith.mulf %33, %42 : vector<2x32xf32>
    %44 = arith.addf %38, %43 : vector<2x32xf32>
    %45 = math.tanh %44 : vector<2x32xf32>
    %cst_31 = arith.constant 1.000000e+00 : f32
    %46 = vector.broadcast %cst_31 : f32 to vector<2x32xf32>
    %47 = arith.subf %46, %34 : vector<2x32xf32>
    %48 = arith.mulf %47, %45 : vector<2x32xf32>
    %49 = arith.mulf %34, %5 : vector<2x32xf32>
    %50 = arith.addf %48, %49 : vector<2x32xf32>
    %51 = arith.truncf %50 : vector<2x32xf32> to vector<2x32xbf16>
    %cst_32 = arith.constant dense<0.000000e+00> : vector<2x16xf32>
    %52 = tpu.matmul %51, %12, %cst_32 {dimension_numbers = #tpu.dot_dimension_numbers<[1], [0], [0], [1], [0, 0, 1, 1], [], []>} : vector<2x32xbf16>, vector<32x16xbf16>, vector<2x16xf32> -> vector<2x16xf32>
    %cst_33 = arith.constant -1.000000e+30 : f32
    %53 = vector.broadcast %cst_33 : f32 to vector<2x1xf32>
    %cst_34 = arith.constant 0.000000e+00 : f32
    %54 = vector.broadcast %cst_34 : f32 to vector<2x1xf32>
    %cst_35 = arith.constant 0.000000e+00 : f32
    %55 = vector.broadcast %cst_35 : f32 to vector<2x24xf32>
    %c0_36 = arith.constant 0 : index
    %c0_37 = arith.constant 0 : index
    %c0_38 = arith.constant 0 : index
    %56 = vector.load %arg22[%c0_36, %c0_37, %c0_38] : memref<2x8x16xbf16, #tpu.memory_space<vmem>>, vector<2x8x16xbf16>
    %57 = arith.extf %56 : vector<2x8x16xbf16> to vector<2x8x16xf32>
    %c0_39 = arith.constant 0 : index
    %c0_40 = arith.constant 0 : index
    %58 = vector.load %arg4[%c0_39, %c0_40] : memref<2x8xf32, #tpu.memory_space<vmem>>, vector<2x8xf32>
    %c0_41 = arith.constant 0 : index
    %c0_42 = arith.constant 0 : index
    %c0_43 = arith.constant 0 : index
    %59 = vector.load %arg5[%c0_41, %c0_42, %c0_43] : memref<2x8x24xbf16, #tpu.memory_space<vmem>>, vector<2x8x24xbf16>
    %60 = vector.shape_cast %52 : vector<2x16xf32> to vector<2x1x16xf32>
    %61 = vector.broadcast %60 : vector<2x1x16xf32> to vector<2x8x16xf32>
    %62 = arith.addf %57, %61 : vector<2x8x16xf32>
    %63 = math.tanh %62 : vector<2x8x16xf32>
    %64 = vector.shape_cast %13 : vector<1x16xf32> to vector<1x1x16xf32>
    %65 = vector.broadcast %64 : vector<1x1x16xf32> to vector<2x8x16xf32>
    %66 = arith.mulf %63, %65 : vector<2x8x16xf32>
    %cst_44 = arith.constant dense<0.000000e+00> : vector<2x8xf32>
    %67 = vector.multi_reduction <add>, %66, %cst_44 [2] : vector<2x8x16xf32> to vector<2x8xf32>
    %68 = arith.addf %67, %58 : vector<2x8xf32>
    %cst_45 = arith.constant dense<0xFF800000> : vector<2xf32>
    %69 = vector.multi_reduction <maximumf>, %68, %cst_45 [1] : vector<2x8xf32> to vector<2xf32>
    %70 = vector.shape_cast %69 : vector<2xf32> to vector<2x1xf32>
    %71 = arith.maximumf %53, %70 : vector<2x1xf32>
    %72 = arith.subf %53, %71 : vector<2x1xf32>
    %73 = math.exp %72 : vector<2x1xf32>
    %74 = vector.broadcast %71 : vector<2x1xf32> to vector<2x8xf32>
    %75 = arith.subf %68, %74 : vector<2x8xf32>
    %76 = math.exp %75 : vector<2x8xf32>
    %77 = arith.mulf %73, %54 : vector<2x1xf32>
    %cst_46 = arith.constant dense<0.000000e+00> : vector<2xf32>
    %78 = vector.multi_reduction <add>, %76, %cst_46 [1] : vector<2x8xf32> to vector<2xf32>
    %79 = vector.shape_cast %78 : vector<2xf32> to vector<2x1xf32>
    %80 = arith.addf %77, %79 : vector<2x1xf32>
    %81 = arith.truncf %76 : vector<2x8xf32> to vector<2x8xbf16>
    %82 = vector.shape_cast %81 : vector<2x8xbf16> to vector<2x1x8xbf16>
    "tpu.trace_start"() <{level = 10 : i32, message = "bqs,bsc->bqc"}> : () -> ()
    %cst_47 = arith.constant dense<0.000000e+00> : vector<2x1x24xf32>
    %83 = tpu.matmul %82, %59, %cst_47 {dimension_numbers = #tpu.dot_dimension_numbers<[2], [1], [1], [2], [0, 0, 0, 1, 1, 2], [0], [0]>} : vector<2x1x8xbf16>, vector<2x8x24xbf16>, vector<2x1x24xf32> -> vector<2x1x24xf32>
    "tpu.trace_stop"() : () -> ()
    %84 = vector.shape_cast %83 : vector<2x1x24xf32> to vector<2x24xf32>
    %85 = vector.broadcast %73 : vector<2x1xf32> to vector<2x24xf32>
    %86 = arith.mulf %85, %55 : vector<2x24xf32>
    %87 = arith.addf %86, %84 : vector<2x24xf32>
    %88 = tpu.reciprocal %80 {approx = true} : vector<2x1xf32> -> vector<2x1xf32>
    %89 = vector.broadcast %88 : vector<2x1xf32> to vector<2x24xf32>
    %90 = arith.mulf %87, %89 : vector<2x24xf32>
    %91 = arith.truncf %90 : vector<2x24xf32> to vector<2x24xbf16>
    %cst_48 = arith.constant dense<0.000000e+00> : vector<2x96xf32>
    %92 = tpu.matmul %91, %9, %cst_48 {dimension_numbers = #tpu.dot_dimension_numbers<[1], [0], [0], [1], [0, 0, 1, 1], [], []>} : vector<2x24xbf16>, vector<24x96xbf16>, vector<2x96xf32> -> vector<2x96xf32>
    %93 = arith.truncf %50 : vector<2x32xf32> to vector<2x32xbf16>
    %cst_49 = arith.constant dense<0.000000e+00> : vector<2x96xf32>
    %94 = tpu.matmul %93, %10, %cst_49 {dimension_numbers = #tpu.dot_dimension_numbers<[1], [0], [0], [1], [0, 0, 1, 1], [], []>} : vector<2x32xbf16>, vector<32x96xbf16>, vector<2x96xf32> -> vector<2x96xf32>
    %95 = vector.extract_strided_slice %92 {offsets = [0, 0], sizes = [2, 64], strides = [1, 1]} : vector<2x96xf32> to vector<2x64xf32>
    %96 = vector.extract_strided_slice %94 {offsets = [0, 0], sizes = [2, 64], strides = [1, 1]} : vector<2x96xf32> to vector<2x64xf32>
    %97 = arith.addf %95, %96 : vector<2x64xf32>
    %98 = vector.extract_strided_slice %11 {offsets = [0, 0], sizes = [1, 64], strides = [1, 1]} : vector<1x128xf32> to vector<1x64xf32>
    %99 = vector.broadcast %98 : vector<1x64xf32> to vector<2x64xf32>
    %100 = arith.addf %97, %99 : vector<2x64xf32>
    %101 = arith.negf %100 : vector<2x64xf32>
    %102 = math.exp %101 : vector<2x64xf32>
    %cst_50 = arith.constant 1.000000e+00 : f32
    %103 = vector.broadcast %cst_50 : f32 to vector<2x64xf32>
    %104 = arith.addf %103, %102 : vector<2x64xf32>
    %105 = arith.divf %103, %104 : vector<2x64xf32>
    %106 = vector.extract_strided_slice %105 {offsets = [0, 0], sizes = [2, 32], strides = [1, 1]} : vector<2x64xf32> to vector<2x32xf32>
    %107 = vector.extract_strided_slice %105 {offsets = [0, 32], sizes = [2, 32], strides = [1, 1]} : vector<2x64xf32> to vector<2x32xf32>
    %108 = vector.extract_strided_slice %92 {offsets = [0, 64], sizes = [2, 32], strides = [1, 1]} : vector<2x96xf32> to vector<2x32xf32>
    %109 = vector.extract_strided_slice %11 {offsets = [0, 64], sizes = [1, 32], strides = [1, 1]} : vector<1x128xf32> to vector<1x32xf32>
    %110 = vector.broadcast %109 : vector<1x32xf32> to vector<2x32xf32>
    %111 = arith.addf %108, %110 : vector<2x32xf32>
    %112 = vector.extract_strided_slice %94 {offsets = [0, 64], sizes = [2, 32], strides = [1, 1]} : vector<2x96xf32> to vector<2x32xf32>
    %113 = vector.extract_strided_slice %11 {offsets = [0, 96], sizes = [1, 32], strides = [1, 1]} : vector<1x128xf32> to vector<1x32xf32>
    %114 = vector.broadcast %113 : vector<1x32xf32> to vector<2x32xf32>
    %115 = arith.addf %112, %114 : vector<2x32xf32>
    %116 = arith.mulf %106, %115 : vector<2x32xf32>
    %117 = arith.addf %111, %116 : vector<2x32xf32>
    %118 = math.tanh %117 : vector<2x32xf32>
    %cst_51 = arith.constant 1.000000e+00 : f32
    %119 = vector.broadcast %cst_51 : f32 to vector<2x32xf32>
    %120 = arith.subf %119, %107 : vector<2x32xf32>
    %121 = arith.mulf %120, %118 : vector<2x32xf32>
    %122 = arith.mulf %107, %50 : vector<2x32xf32>
    %123 = arith.addf %121, %122 : vector<2x32xf32>
    %124 = arith.truncf %4 : vector<2x16xf32> to vector<2x16xbf16>
    %cst_52 = arith.constant dense<0.000000e+00> : vector<2x32xf32>
    %125 = tpu.matmul %124, %14, %cst_52 {dimension_numbers = #tpu.dot_dimension_numbers<[1], [0], [0], [1], [0, 0, 1, 1], [], []>} : vector<2x16xbf16>, vector<16x32xbf16>, vector<2x32xf32> -> vector<2x32xf32>
    %126 = arith.truncf %123 : vector<2x32xf32> to vector<2x32xbf16>
    %cst_53 = arith.constant dense<0.000000e+00> : vector<2x32xf32>
    %127 = tpu.matmul %126, %15, %cst_53 {dimension_numbers = #tpu.dot_dimension_numbers<[1], [0], [0], [1], [0, 0, 1, 1], [], []>} : vector<2x32xbf16>, vector<32x32xbf16>, vector<2x32xf32> -> vector<2x32xf32>
    %128 = arith.addf %125, %127 : vector<2x32xf32>
    %129 = arith.truncf %90 : vector<2x24xf32> to vector<2x24xbf16>
    %cst_54 = arith.constant dense<0.000000e+00> : vector<2x32xf32>
    %130 = tpu.matmul %129, %16, %cst_54 {dimension_numbers = #tpu.dot_dimension_numbers<[1], [0], [0], [1], [0, 0, 1, 1], [], []>} : vector<2x24xbf16>, vector<24x32xbf16>, vector<2x32xf32> -> vector<2x32xf32>
    %131 = arith.addf %128, %130 : vector<2x32xf32>
    %132 = vector.broadcast %17 : vector<1x32xf32> to vector<2x32xf32>
    %133 = arith.addf %131, %132 : vector<2x32xf32>
    %134 = math.tanh %133 : vector<2x32xf32>
    %135 = arith.truncf %134 : vector<2x32xf32> to vector<2x32xbf16>
    %c0_55 = arith.constant 0 : index
    %c0_56 = arith.constant 0 : index
    %c0_57 = arith.constant 0 : index
    %136 = vector.load %arg20[%c0_55, %c0_56, %c0_57] : memref<1x2x32xbf16, #tpu.memory_space<vmem>>, vector<1x2x32xbf16>
    %137 = vector.shape_cast %136 : vector<1x2x32xbf16> to vector<2x32xbf16>
    %138 = vector.shape_cast %135 : vector<2x32xbf16> to vector<1x2x32xbf16>
    tpu.vector_store %arg20[%c0_55, %c0_56, %c0_57], %138 {strides = array<i32>} : memref<1x2x32xbf16, #tpu.memory_space<vmem>>, vector<1x2x32xbf16>,
    %c0_58 = arith.constant 0 : index
    %c0_59 = arith.constant 0 : index
    %139 = vector.load %arg21[%c0_58, %c0_59] : memref<2x32xf32, #tpu.memory_space<vmem>>, vector<2x32xf32>
    tpu.vector_store %arg21[%c0_58, %c0_59], %123 {strides = array<i32>} : memref<2x32xf32, #tpu.memory_space<vmem>>, vector<2x32xf32>,
    return
  }
  func.func @transform_0(%arg0: i32, %arg1: i32) -> (i32, i32, i32) {
    %c0_i32 = arith.constant 0 : i32
    %c0_i32_0 = arith.constant 0 : i32
    return %arg1, %arg0, %c0_i32 : i32, i32, i32
  }
  func.func @transform_1(%arg0: i32, %arg1: i32) -> (i32, i32) {
    %c0_i32 = arith.constant 0 : i32
    %c0_i32_0 = arith.constant 0 : i32
    return %arg0, %c0_i32 : i32, i32
  }
  func.func @transform_2(%arg0: i32, %arg1: i32) -> (i32, i32) {
    %c0_i32 = arith.constant 0 : i32
    %c0_i32_0 = arith.constant 0 : i32
    return %arg0, %c0_i32 : i32, i32
  }
  func.func @transform_3(%arg0: i32, %arg1: i32) -> (i32, i32, i32) {
    %c0_i32 = arith.constant 0 : i32
    %c0_i32_0 = arith.constant 0 : i32
    %c0_i32_1 = arith.constant 0 : i32
    return %arg0, %c0_i32, %c0_i32_0 : i32, i32, i32
  }
  func.func @transform_4(%arg0: i32, %arg1: i32) -> (i32, i32) {
    %c0_i32 = arith.constant 0 : i32
    %c0_i32_0 = arith.constant 0 : i32
    %c0_i32_1 = arith.constant 0 : i32
    return %c0_i32, %c0_i32_0 : i32, i32
  }
  func.func @transform_5(%arg0: i32, %arg1: i32) -> (i32, i32) {
    %c0_i32 = arith.constant 0 : i32
    %c0_i32_0 = arith.constant 0 : i32
    %c0_i32_1 = arith.constant 0 : i32
    return %c0_i32, %c0_i32_0 : i32, i32
  }
  func.func @transform_6(%arg0: i32, %arg1: i32) -> (i32, i32) {
    %c0_i32 = arith.constant 0 : i32
    %c0_i32_0 = arith.constant 0 : i32
    %c0_i32_1 = arith.constant 0 : i32
    return %c0_i32, %c0_i32_0 : i32, i32
  }
  func.func @transform_7(%arg0: i32, %arg1: i32) -> (i32, i32) {
    %c0_i32 = arith.constant 0 : i32
    %c0_i32_0 = arith.constant 0 : i32
    %c0_i32_1 = arith.constant 0 : i32
    return %c0_i32, %c0_i32_0 : i32, i32
  }
  func.func @transform_8(%arg0: i32, %arg1: i32) -> (i32, i32) {
    %c0_i32 = arith.constant 0 : i32
    %c0_i32_0 = arith.constant 0 : i32
    %c0_i32_1 = arith.constant 0 : i32
    return %c0_i32, %c0_i32_0 : i32, i32
  }
  func.func @transform_9(%arg0: i32, %arg1: i32) -> (i32, i32) {
    %c0_i32 = arith.constant 0 : i32
    %c0_i32_0 = arith.constant 0 : i32
    %c0_i32_1 = arith.constant 0 : i32
    return %c0_i32, %c0_i32_0 : i32, i32
  }
  func.func @transform_10(%arg0: i32, %arg1: i32) -> (i32, i32) {
    %c0_i32 = arith.constant 0 : i32
    %c0_i32_0 = arith.constant 0 : i32
    %c0_i32_1 = arith.constant 0 : i32
    return %c0_i32, %c0_i32_0 : i32, i32
  }
  func.func @transform_11(%arg0: i32, %arg1: i32) -> (i32, i32) {
    %c0_i32 = arith.constant 0 : i32
    %c0_i32_0 = arith.constant 0 : i32
    %c0_i32_1 = arith.constant 0 : i32
    return %c0_i32, %c0_i32_0 : i32, i32
  }
  func.func @transform_12(%arg0: i32, %arg1: i32) -> (i32, i32) {
    %c0_i32 = arith.constant 0 : i32
    %c0_i32_0 = arith.constant 0 : i32
    %c0_i32_1 = arith.constant 0 : i32
    return %c0_i32, %c0_i32_0 : i32, i32
  }
  func.func @transform_13(%arg0: i32, %arg1: i32) -> (i32, i32) {
    %c0_i32 = arith.constant 0 : i32
    %c0_i32_0 = arith.constant 0 : i32
    %c0_i32_1 = arith.constant 0 : i32
    return %c0_i32, %c0_i32_0 : i32, i32
  }
  func.func @transform_14(%arg0: i32, %arg1: i32) -> (i32, i32) {
    %c0_i32 = arith.constant 0 : i32
    %c0_i32_0 = arith.constant 0 : i32
    %c0_i32_1 = arith.constant 0 : i32
    return %c0_i32, %c0_i32_0 : i32, i32
  }
  func.func @transform_15(%arg0: i32, %arg1: i32) -> (i32, i32) {
    %c0_i32 = arith.constant 0 : i32
    %c0_i32_0 = arith.constant 0 : i32
    %c0_i32_1 = arith.constant 0 : i32
    return %c0_i32, %c0_i32_0 : i32, i32
  }
  func.func @transform_16(%arg0: i32, %arg1: i32) -> (i32, i32) {
    %c0_i32 = arith.constant 0 : i32
    %c0_i32_0 = arith.constant 0 : i32
    %c0_i32_1 = arith.constant 0 : i32
    return %c0_i32, %c0_i32_0 : i32, i32
  }
  func.func @transform_17(%arg0: i32, %arg1: i32) -> (i32, i32) {
    %c0_i32 = arith.constant 0 : i32
    %c0_i32_0 = arith.constant 0 : i32
    %c0_i32_1 = arith.constant 0 : i32
    return %c0_i32, %c0_i32_0 : i32, i32
  }
  func.func @transform_18(%arg0: i32, %arg1: i32) -> (i32, i32, i32) {
    %c0_i32 = arith.constant 0 : i32
    %c0_i32_0 = arith.constant 0 : i32
    return %arg1, %arg0, %c0_i32 : i32, i32, i32
  }
  func.func @transform_19(%arg0: i32, %arg1: i32) -> (i32, i32) {
    %c0_i32 = arith.constant 0 : i32
    %c0_i32_0 = arith.constant 0 : i32
    return %arg0, %c0_i32 : i32, i32
  }
}

</mosaic_0001>

<bundles_post_ra>
// kernel: tpu_custom_call.1
= control target key start
LH: loop header
LB: loop body
LE: loop exit
PB: predicated region body
PF: predicated region fallthrough
CT: control target
= control target key end

     0   :  { %s3165_s0 = inlined_call_operand.hbm [shape: f32[4,2,16], index: 0, kind: input, shape index: {}]   ;;  %s3166_s1 = inlined_call_operand.hbm [shape: f32[2,32], index: 1, kind: input, shape index: {}]   ;;  %s3167_s2 = inlined_call_operand.hbm [shape: f32[2,8], index: 2, kind: input, shape index: {}]   ;;  %s3168_s3 = inlined_call_operand.hbm [shape: bf16[2,8,24], index: 3, kind: input, shape index: {}]   ;;  %s3169_s4 = inlined_call_operand.hbm [shape: bf16[16,96], index: 4, kind: input, shape index: {}]   ;;  %s3170_s5 = inlined_call_operand.vmem [shape: bf16[32,96], index: 5, kind: input, shape index: {}]   ;;  %s3171_s6 = inlined_call_operand.vmem [shape: f32[1,128], index: 6, kind: input, shape index: {}]   ;;  %s3172_s7 = inlined_call_operand.vmem [shape: bf16[24,96], index: 7, kind: input, shape index: {}]   ;;  %s3173_s8 = inlined_call_operand.vmem [shape: bf16[32,96], index: 8, kind: input, shape index: {}]   ;;  %s3174_s9 = inlined_call_operand.hbm [shape: f32[1,128], index: 9, kind: input, shape index: {}]   ;;  %s3175_s10 = inlined_call_operand.vmem [shape: bf16[32,16], index: 10, kind: input, shape index: {}]   ;;  %s3176_s11 = inlined_call_operand.vmem [shape: bf16[24,16], index: 11, kind: input, shape index: {}]   ;;  %s3177_s12 = inlined_call_operand.hbm [shape: f32[1,16], index: 12, kind: input, shape index: {}]   ;;  %s3178_s13 = inlined_call_operand.vmem [shape: f32[1,16], index: 13, kind: input, shape index: {}]   ;;  %s3179_s14 = inlined_call_operand.vmem [shape: bf16[16,32], index: 14, kind: input, shape index: {}]   ;;  %s3180_s15 = inlined_call_operand.vmem [shape: bf16[32,32], index: 15, kind: input, shape index: {}]   ;;  %s3181_s16 = inlined_call_operand.vmem [shape: bf16[24,32], index: 16, kind: input, shape index: {}]   ;;  %s3182_s17 = inlined_call_operand.vmem [shape: f32[1,32], index: 17, kind: input, shape index: {}]   ;;  %s3183_s18 = inlined_call_operand.hbm [shape: bf16[4,2,32], index: 18, kind: output, shape index: {0}]   ;;  %s3184_s19 = inlined_call_operand.hbm [shape: f32[2,32], index: 19, kind: output, shape index: {1}]  }
   0x1   :  { %3208 = sst [smem:[#allocation24_spill]] %s3165_s0 }
   0x2   :  { %3209 = sst [smem:[#allocation25_spill]] %s3166_s1 }
   0x3   :  { %3210 = sst [smem:[#allocation26_spill]] %s3167_s2 }
   0x4   :  { %3211 = sst [smem:[#allocation27_spill]] %s3168_s3 }
   0x5   :  { %3212 = sst [smem:[#allocation28_spill]] %s3169_s4 }
   0x6   :  { %3213 = sst [smem:[#allocation29_spill]] %s3170_s5 }
   0x7   :  { %3214 = sst [smem:[#allocation30_spill]] %s3172_s7 }
   0x8   :  { %3215 = sst [smem:[#allocation31_spill]] %s3173_s8 }
   0x9   :  { %3216 = sst [smem:[#allocation32_spill]] %s3174_s9 }
   0xa   :  { %3217 = sst [smem:[#allocation33_spill]] %s3177_s12 }
   0xb   :  { %3218 = sst [smem:[#allocation34_spill]] %s3178_s13 }
   0xc   :  { %3219 = sst [smem:[#allocation35_spill]] %s3179_s14 }
   0xd   :  { %3220 = sst [smem:[#allocation36_spill]] %s3180_s15 }
   0xe   :  { %3221 = sst [smem:[#allocation37_spill]] %s3181_s16 }
   0xf   :  { %3222 = sst [smem:[#allocation38_spill]] %s3182_s17 }
  0x10   :  { %3223 = sst [smem:[#allocation39_spill]] %s3183_s18 }
  0x11   :  { %3224 = sst [smem:[#allocation40_spill]] %s3184_s19 }
  0x12   :  { %25 = vsyncpa [#allocation4], 0 }
  0x13   :  { %27 = vsyncpa [#allocation4 + $0x1], 0 }
  0x14   :  { %28 = vsyncpa [#allocation7], 0 }
  0x15   :  { %29 = vsyncpa [#allocation10], 0 }
  0x16   :  { %30 = vsyncpa [#allocation13], 0 }
  0x17   :  { %31 = vsyncpa [#allocation5], 0 }
  0x18   :  { %33 = vsyncpa [#allocation5 + $0x1], 0 }
  0x19   :  { %34 = vsyncpa [#allocation17], 0  ;;  %s2644_s0 = smov 0   ;;  %s2646_s30 = smov 0  }
  0x1a   :  { %s2648_s20 = smov 0   ;;  %s2650_s21 = smov 0  }
  0x1b   :  { %s2652_s1 = smov 0   ;;  %s2654_s22 = smov 0  }
  0x1c LB: > { %s3189_s2 = sadd.s32 4294967295, %s2522_s22   ;;  %p1842_p0 = scmp.ge.s32.totalorder %s2522_s22, 1  ;;  %s2522_s22 = sphi %s2654_s22, %s40_s22   ;;  %s2518_s1 = sphi %s2652_s1, %s3267_s1   ;;  %s2514_s21 = sphi %s2650_s21, %s3266_s21   ;;  %s2510_s20 = sphi %s2648_s20, %s3265_s20   ;;  %s2506_s30 = sphi %s2646_s30, %s3264_s30   ;;  %s2502_s0 = sphi %s2644_s0, %s3263_s0  }
  0x1d   : > { %p2678_p1 = scmp.eq.s32.totalorder %s3189_s2, 0  ;;  %p511_p2 = scmp.lt.s32.totalorder %s2522_s22, 5 }
  0x1e   : > { %s2524_s25 = smov [#allocation6]   ;;  %s2525_s26 = smov [#allocation9]  }
  0x1f   : > { %s3225_s23 = scalar_select %p2678_p1, 1, 0 }
  0x20   : > { %p2683_p3 = pnand %p1842_p0, %p511_p2  ;;  %s526_s3 = sshll.u32 %s2524_s25, 4  ;;  %s527_s3 = int_to_ptr.vmem [resolvable:$true] %s526_s3 }
  0x21   : > { %s552_s27 = sshll.u32 %s2525_s26, 4  ;;  %s2526_s29 = smov [#allocation12]   ;;  %s2695_s27 = int_to_ptr.vmem [resolvable:$true] %s552_s27 }
  0x22   : > { %s3226_s24 = scalar_select %p2683_p3, 1, 0 }
  0x23   : > { %p2046_p4 = pneg %p2683_p3  ;;  %s2697_s2 = sshll.u32 %s2526_s29, 4  ;;  %s592_s2 = int_to_ptr.vmem [resolvable:$true] %s2697_s2 }
  0x24   : > { %s3228_s19 = sld [smem:[#allocation25_spill]] }
  0x25   : > { %p2691_p5 = pnand %p2046_p4, %p2678_p1 }
  0x27   : > { %p2707_p7 = pneg %p2691_p5 }
  0x2a   : > { %s2200_s25 = scalar_lea.hbm %s3228_s19, 32 }
  0x2b   : > { %p2201_p6 = scmp.ne.s32.totalorder %s3228_s19, %s2200_s25  ;;  %p2207_p10 = scmp.lt.u32.totalorder %s2200_s25, %s3228_s19 }
  0x2d   : > { %p2203_p8 = pnand %p2707_p7, %p2201_p6 }
  0x2f   : > { %p2204_p9 = pneg %p2203_p8 }
  0x31   : > { %p2209_p11 = pnand %p2207_p10, %p2204_p9 }
  0x33   : > { %2212 = shalt.err (!%p2209_p11)
}
  0x34   : > { %s2213_s17 = scalar_lea.vmem %s527_s3, 32  ;;  %p2221_p2 = scmp.lt.s32.totalorder %s527_s3, %s527_s3 }
  0x35   : > { %p2214_p12 = scmp.ne.s32.totalorder %s527_s3, %s2213_s17  ;;  %p2222_p4 = scmp.lt.s32.totalorder %s2213_s17, %s2213_s17 }
  0x37   : > { %p2216_p13 = pnand %p2214_p12, %p2707_p7  ;;  %p2223_p3 = por %p2222_p4, %p2221_p2 }
  0x39   : > { %p2217_p0 = pneg %p2216_p13 }
  0x3b   : > { %p2224_p1 = pnand %p2223_p3, %p2217_p0 }
  0x3d   : > { %2227 = shalt.err (!%p2224_p1)
}
  0x3e   : > { %2049 = dma.hbm_to_vmem [thread:$0]  (!%p2691_p5), %s3228_s19, 32, %s527_s3, [#allocation7]  }
  0x3f   : > { %s3230_s25 = sld [smem:[#allocation27_spill]] }
  0x45   : > { %s2228_s29 = scalar_lea.hbm %s3230_s25, 128 }
  0x46   : > { %p2229_p6 = scmp.ne.s32.totalorder %s3230_s25, %s2228_s29  ;;  %p2235_p1 = scmp.lt.u32.totalorder %s2228_s29, %s3230_s25 }
  0x48   : > { %p2231_p8 = pnand %p2229_p6, %p2707_p7 }
  0x4a   : > { %p2232_p9 = pneg %p2231_p8 }
  0x4c   : > { %p2237_p3 = pnand %p2235_p1, %p2232_p9 }
  0x4e   : > { %2240 = shalt.err (!%p2237_p3)
}
  0x4f   : > { %s2241_s3 = scalar_lea.vmem %s2695_s27, 128  ;;  %p2249_p13 = scmp.lt.s32.totalorder %s2695_s27, %s2695_s27 }
  0x50   : > { %p2242_p10 = scmp.ne.s32.totalorder %s2695_s27, %s2241_s3  ;;  %p2250_p0 = scmp.lt.s32.totalorder %s2241_s3, %s2241_s3 }
  0x52   : > { %p2244_p11 = pnand %p2242_p10, %p2707_p7  ;;  %p2251_p2 = por %p2250_p0, %p2249_p13 }
  0x54   : > { %p2245_p12 = pneg %p2244_p11 }
  0x56   : > { %p2252_p4 = pnand %p2251_p2, %p2245_p12 }
  0x58   : > { %2255 = shalt.err (!%p2252_p4)
}
  0x59   : > { %s3200_s7 = smov 64   ;;  %s3201_s8 = smov 4  }
  0x5a   : > { %2055 = dma.hbm_to_vmem [thread:$0]  (!%p2691_p5), %s3230_s25, 128, %s2695_s27, [#allocation10], %s3200_s7, %s3200_s7, %s3201_s8  }
  0x5b   : > { %s3231_s9 = sld [smem:[#allocation32_spill]] }
  0x61   : > { %s2256_s18 = scalar_lea.hbm %s3231_s9, 16 }
  0x62   : > { %p2257_p6 = scmp.ne.s32.totalorder %s3231_s9, %s2256_s18  ;;  %p2263_p1 = scmp.lt.u32.totalorder %s2256_s18, %s3231_s9 }
  0x64   : > { %p2259_p8 = pnand %p2257_p6, %p2707_p7 }
  0x66   : > { %p2260_p9 = pneg %p2259_p8 }
  0x68   : > { %p2265_p3 = pnand %p2263_p1, %p2260_p9 }
  0x6a   : > { %2268 = shalt.err (!%p2265_p3)
}
  0x6b   : > { %s2269_s13 = scalar_lea.vmem %s592_s2, 16  ;;  %s2276_s27 = scalar_lea.vmem %s592_s2, 32 }
  0x6c   : > { %p2270_p10 = scmp.ne.s32.totalorder %s592_s2, %s2269_s13  ;;  %p2277_p13 = scmp.lt.s32.totalorder %s592_s2, %s592_s2 }
  0x6d   : > { %p2278_p0 = scmp.lt.s32.totalorder %s2276_s27, %s2269_s13 }
  0x6e   : > { %p2272_p11 = pnand %p2270_p10, %p2707_p7 }
  0x6f   : > { %p2279_p2 = por %p2278_p0, %p2277_p13 }
  0x70   : > { %p2273_p12 = pneg %p2272_p11 }
  0x72   : > { %p2280_p4 = pnand %p2279_p2, %p2273_p12 }
  0x74   : > { %2283 = shalt.err (!%p2280_p4)
}
  0x75   : > { %2061 = dma.hbm_to_vmem [thread:$0]  (!%p2691_p5), %s3231_s9, 16, %s592_s2, [#allocation13]  }
  0x76   : > { %s2529_s19 = smov [#allocation8]   ;;  %s2530_s18 = smov [#allocation11]  }
  0x77   : > { %s539_s15 = sshll.u32 %s2529_s19, 4  ;;  %s565_s29 = sshll.u32 %s2530_s18, 4  ;;  %s540_s15 = int_to_ptr.vmem [resolvable:$true] %s539_s15  ;;  %s566_s29 = int_to_ptr.vmem [resolvable:$true] %s565_s29 }
  0x78   : > { %s3232_s7 = sld [smem:[#allocation26_spill]] }
  0x7e   : > { %s2284_s8 = scalar_lea.hbm %s3232_s7, 32 }
  0x7f   : > { %p2285_p6 = scmp.ne.s32.totalorder %s3232_s7, %s2284_s8  ;;  %p2291_p1 = scmp.lt.u32.totalorder %s2284_s8, %s3232_s7 }
  0x81   : > { %p2287_p8 = pnand %p2285_p6, %p2707_p7 }
  0x83   : > { %p2288_p9 = pneg %p2287_p8 }
  0x85   : > { %p2293_p3 = pnand %p2291_p1, %p2288_p9 }
  0x87   : > { %2296 = shalt.err (!%p2293_p3)
}
  0x88   : > { %s2297_s2 = scalar_lea.vmem %s540_s15, 32  ;;  %p2305_p13 = scmp.lt.s32.totalorder %s540_s15, %s540_s15 }
  0x89   : > { %p2298_p10 = scmp.ne.s32.totalorder %s540_s15, %s2297_s2  ;;  %p2306_p0 = scmp.lt.s32.totalorder %s2297_s2, %s2297_s2 }
  0x8b   : > { %p2300_p11 = pnand %p2298_p10, %p2707_p7  ;;  %p2307_p2 = por %p2306_p0, %p2305_p13 }
  0x8d   : > { %p2301_p12 = pneg %p2300_p11 }
  0x8f   : > { %p2308_p4 = pnand %p2307_p2, %p2301_p12 }
  0x91   : > { %2311 = shalt.err (!%p2308_p4)
}
  0x92   : > { %2052 = dma.hbm_to_vmem [thread:$0]  (!%p2691_p5), %s3232_s7, 32, %s540_s15, [#allocation7]  }
  0x93   : > { %s3233_s4 = sld [smem:[#allocation28_spill]] }
  0x99   : > { %s2312_s18 = scalar_lea.hbm %s3233_s4, 128 }
  0x9a   : > { %p2313_p6 = scmp.ne.s32.totalorder %s3233_s4, %s2312_s18  ;;  %p2319_p1 = scmp.lt.u32.totalorder %s2312_s18, %s3233_s4 }
  0x9c   : > { %p2315_p8 = pnand %p2313_p6, %p2707_p7 }
  0x9e   : > { %p2316_p9 = pneg %p2315_p8 }
  0xa0   : > { %p2321_p3 = pnand %p2319_p1, %p2316_p9 }
  0xa2   : > { %2324 = shalt.err (!%p2321_p3)
}
  0xa3   : > { %s2325_s14 = scalar_lea.vmem %s566_s29, 128  ;;  %p2333_p13 = scmp.lt.s32.totalorder %s566_s29, %s566_s29 }
  0xa4   : > { %p2326_p10 = scmp.ne.s32.totalorder %s566_s29, %s2325_s14  ;;  %p2334_p0 = scmp.lt.s32.totalorder %s2325_s14, %s2325_s14 }
  0xa6   : > { %p2328_p11 = pnand %p2326_p10, %p2707_p7  ;;  %p2335_p2 = por %p2334_p0, %p2333_p13 }
  0xa8   : > { %p2329_p12 = pneg %p2328_p11 }
  0xaa   : > { %p2336_p4 = pnand %p2335_p2, %p2329_p12 }
  0xac   : > { %2339 = shalt.err (!%p2336_p4)
}
  0xad   : > { %s3234_s15 = smov 4   ;;  %s3235_s2 = smov 64  }
  0xae   : > { %2058 = dma.hbm_to_vmem [thread:$0]  (!%p2691_p5), %s3233_s4, 128, %s566_s29, [#allocation10], %s3235_s2, %s3235_s2, %s3234_s15  }
  0xaf   : > { %s2531_s25 = smov [#allocation14]   ;;  %s3236_s12 = sld [smem:[#allocation33_spill]] }
  0xb0   : > { %s608_s8 = sshll.u32 %s2531_s25, 4  ;;  %s609_s8 = int_to_ptr.vmem [resolvable:$true] %s608_s8 }
  0xb5   : > { %s2340_s3 = scalar_lea.hbm %s3236_s12, 16 }
  0xb6   : > { %p2341_p6 = scmp.ne.s32.totalorder %s3236_s12, %s2340_s3  ;;  %p2347_p1 = scmp.lt.u32.totalorder %s2340_s3, %s3236_s12 }
  0xb8   : > { %p2343_p8 = pnand %p2341_p6, %p2707_p7 }
  0xba   : > { %p2344_p9 = pneg %p2343_p8 }
  0xbc   : > { %p2349_p3 = pnand %p2347_p1, %p2344_p9 }
  0xbe   : > { %2352 = shalt.err (!%p2349_p3)
}
  0xbf   : > { %s2353_s29 = scalar_lea.vmem %s609_s8, 16  ;;  %s2360_s15 = scalar_lea.vmem %s609_s8, 32 }
  0xc0   : > { %p2354_p10 = scmp.ne.s32.totalorder %s609_s8, %s2353_s29  ;;  %p2361_p13 = scmp.lt.s32.totalorder %s609_s8, %s609_s8 }
  0xc1   : > { %p2362_p0 = scmp.lt.s32.totalorder %s2360_s15, %s2353_s29 }
  0xc2   : > { %p2356_p11 = pnand %p2354_p10, %p2707_p7 }
  0xc3   : > { %p2363_p2 = por %p2362_p0, %p2361_p13 }
  0xc4   : > { %p2357_p12 = pneg %p2356_p11 }
  0xc6   : > { %p2364_p4 = pnand %p2363_p2, %p2357_p12 }
  0xc8   : > { %2367 = shalt.err (!%p2364_p4)
}
  0xc9   : > { %2064 = dma.hbm_to_vmem [thread:$0]  (!%p2691_p5), %s3236_s12, 16, %s609_s8, [#allocation13]  }
  0xca   : > { %s1841_s26 = sadd.s32 4294967294, %s2522_s22   ;;  %s49_s7 = sadd.s32 1, %s2518_s1 }
  0xcb   : > { %p50_p7 = scmp.ge.s32.totalorder %s49_s7, 4  ;;  %s61_s28 = sadd.s32 1, %s2510_s20 }
  0xcc   : > { %p68_p6 = scmp.ne.s32.totalorder %s2510_s20, %s2506_s30  ;;  %p69_p8 = scmp.eq.s32.totalorder %s2522_s22, 0 }
  0xcd   : > { %s3269_s7 = smov (%p50_p7, %s49_s7), 0  ;;  %p74_p1 = scmp.ne.s32.totalorder %s2506_s30, %s2502_s0 }
  0xce   : > { %p2833_p9 = por %p69_p8, %p68_p6  ;;  %s56_s25 = ssub.s32 %s2518_s1, %s3269_s7 }
  0xcf   : > { %s3238_s8 = sadd.s32 4294967295, %s2522_s22   ;;  %p59_p3 = scmp.eq.s32.totalorder %s56_s25, 0 }
  0xd0   : > { %p2843_p5 = scmp.eq.s32.totalorder %s3238_s8, 3  ;;  %p3240_p10 = scmp.ne.s32.totalorder %s3225_s23, 0 }
  0xd1   : > { %p478_p13 = scmp.eq.s32.totalorder %s1841_s26, 3  ;;  %p2079_p2 = scmp.lt.s32.totalorder %s2522_s22, 4 }
  0xd2   : > { %s3239_s18 = scalar_select %p2843_p5, 1, 0 }
  0xd3   : > { %p2849_p11 = por %p3240_p10, %p74_p1  ;;  %p2855_p12 = por %p2843_p5, %p68_p6 }
  0xd4   : > { %s2860_s13 = scalar_select %p59_p3, %s2510_s20, %s61_s28  }
  0xd5   : > { %s3242_s3 = scalar_select %p2855_p12, 1, 0 }
  0xd6   : > { %p2862_p0 = por %p478_p13, %p74_p1  ;;  %s634_s14 = sand.u32 1, %s2510_s20  }
  0xd7   : > { %s1851_s29 = sshll.u32 %s2518_s1, 5  ;;  %s1850_s15 = sshll.u32 %s634_s14, 1 }
  0xd8   : > { %s3243_s27 = scalar_select %p2862_p0, 1, 0 }
  0xd9   : > { %s3244_s25 = sld [smem:[#allocation24_spill]]  ;;  %s638_s26 = scalar_lea.vmem [#allocation3], %s1850_s15 }
  0xda   : > { %s646_s28 = sshll.u32 %s638_s26, 4  ;;  %p2876_p4 = pnand %p2079_p2, %p2833_p9  ;;  %s2880_s28 = int_to_ptr.vmem [resolvable:$true] %s646_s28 }
  0xdb   : > { %s635_s9 = scalar_lea.sflag [#allocation4], %s634_s14 }
  0xdc   : > { %p2370_p6 = pneg %p2876_p4 }
  0xdf   : > { %s2872_s8 = scalar_lea.hbm %s3244_s25, %s1851_s29  ;;  %s2373_s19 = scalar_lea.hbm %s3244_s25, 128 }
  0xe0   : > { %s2368_s12 = scalar_lea.hbm %s2872_s8, 32  ;;  %p2374_p9 = scmp.lt.u32.totalorder %s2872_s8, %s3244_s25 }
  0xe1   : > { %p2369_p7 = scmp.ne.s32.totalorder %s2872_s8, %s2368_s12  ;;  %p2375_p3 = scmp.lt.u32.totalorder %s2373_s19, %s2368_s12 }
  0xe2   : > { %p2377_p13 = scmp.lt.u32.totalorder %s2368_s12, %s2872_s8 }
  0xe3   : > { %p2371_p8 = pnand %p2370_p6, %p2369_p7  ;;  %p2376_p10 = por %p2375_p3, %p2374_p9 }
  0xe5   : > { %p2372_p1 = pneg %p2371_p8  ;;  %p2378_p2 = por %p2377_p13, %p2376_p10 }
  0xe7   : > { %p2379_p0 = pnand %p2378_p2, %p2372_p1 }
  0xe9   : > { %2382 = shalt.err (!%p2379_p0)
}
  0xea   : > { %s2383_s14 = scalar_lea.vmem %s2880_s28, 32  ;;  %s2532_s26 = smov [#allocation3]  }
  0xeb   : > { %p2384_p7 = scmp.ne.s32.totalorder %s2880_s28, %s2383_s14  ;;  %s2388_s29 = sshll.u32 %s2532_s26, 4  ;;  %s2389_s29 = int_to_ptr.vmem [resolvable:$false] %s2388_s29 }
  0xec   : > { %s2390_s15 = scalar_lea.vmem %s2389_s29, 64  ;;  %p2391_p5 = scmp.lt.s32.totalorder %s2880_s28, %s2389_s29 }
  0xed   : > { %p2386_p8 = pnand %p2384_p7, %p2370_p6  ;;  %p2392_p9 = scmp.lt.s32.totalorder %s2390_s15, %s2383_s14 }
  0xef   : > { %p2387_p12 = pneg %p2386_p8  ;;  %p2393_p3 = por %p2392_p9, %p2391_p5 }
  0xf1   : > { %p2394_p10 = pnand %p2393_p3, %p2387_p12 }
  0xf3   : > { %2397 = shalt.err (!%p2394_p10)
}
  0xf4   : > { %2068 = dma.hbm_to_vmem [thread:$0]  (!%p2876_p4), %s2872_s8, 32, %s2880_s28, %s635_s9  }
  0xf5   : > { %p3246_p0 = scmp.ne.s32.totalorder %s3226_s24, 0 }
  0xf6   : > { %s2910_s12 = sand.u32 (!%p3246_p0), 1, %s2506_s30  }
  0xf7   : > { %655 = sbr.rel (%p3246_p0) target bundleno = 3098 (0xc1a), region = 92  ;;  %s1853_s19 = sshll.u32 (!%p3246_p0), %s2910_s12, 1 }
  0xf8   : > { %s658_s2 = scalar_lea.sflag (!%p3246_p0), [#allocation4], %s2910_s12  ;;  %s2914_s16 = scalar_lea.vmem (!%p3246_p0), [#allocation3], %s1853_s19 }
  0xfe   : > { %2477 = dma.done.wait (%p2849_p11), %s658_s2, 32  }
  0xff   : > { %2479 = vsyncadd (%p2849_p11), %s658_s2, 4294967264  ;;  %p3247_p5 = scmp.ne.s32.totalorder %s3225_s23, 0 }
 0x101   : > { %2481 = dma.done.wait (%p3247_p5), [#allocation7], 64  }
 0x102   : > { %2483 = vsyncadd (%p3247_p5), [#allocation7], 4294967232 }
 0x103   : > { %2485 = dma.done.wait (%p3247_p5), [#allocation10], 256  }
 0x104   : > { %2487 = vsyncadd (%p3247_p5), [#allocation10], 4294967040 }
 0x105   : > { %2489 = dma.done.wait (%p3247_p5), [#allocation13], 32  }
 0x106   : > { %2491 = vsyncadd (%p3247_p5), [#allocation13], 4294967264  ;;  %p1860_p11 = scmp.ne.s32.totalorder %s2514_s21, 0 }
 0x107   : > { %v745_v0 = vld [vmem:[#allocation6] sm:$0x3] (!%p1860_p11)  ;;  %vm746_vm0 = vcmask (!%p1860_p11), 254976   ;;  %v2533_v1 = vmov (!%p1860_p11), 0.0   ;;  %v2155_v2 = vld [vmem:[%s3176_s11] sm:$0xff] (!%p1860_p11)   ;;  %vm778_vm1 = vcmask (!%p1860_p11), 1043456  }
 0x108   : > { %744 = sbr.rel (%p1860_p11) target bundleno = 491 (0x1eb), region = 124  ;;  %747 = vst.msk [vmem:[#allocation16] sm:$0x3] (!%p1860_p11), %vm746_vm0, %v745_v0  ;;  %1934 = vmatprep.subr.bf16.mxu0 (!%p1860_p11), %v2533_v1  ;;  %v2156_v3 = vld [vmem:[%s3176_s11 + $0x8] ss:$0 sps:$4 sm:$0xff] (!%p1860_p11)   ;;  %vm2534_vm2 = vmmov (!%p1860_p11), 0  }
 0x109   : > { %1935 = vmatpush3.bf16.msra.mxu0 (!%p1860_p11), %v2155_v2  ;;  %1938 = vmatprep.mubr.msk.bf16.mxu0 (!%p1860_p11), %vm2534_vm2, %v2533_v1  ;;  %v780_v4 = vsel (!%p1860_p11), %vm778_vm1, %v2156_v3, 0  ;;  %v2157_v5 = vld [vmem:[#allocation9] sm:$0xff] (!%p1860_p11)   ;;  %vm774_vm3 = vcmask (!%p1860_p11), 195584   ;;  %v1861_v6 = vld [vmem:[#allocation14] ss:$0 sm:$0xff] (!%p1860_p11)  ;;  %vm825_vm4 = vcmask (!%p1860_p11), 125952  }
 0x10a   : > { %1936 = vmatprep.subr.bf16.mxu0 (!%p1860_p11), %v2533_v1 }
 0x10d   : > { %1937 = vmatpush3.bf16.msra.mxu0 (!%p1860_p11), %v780_v4 }
 0x110   : > { %1939 = vmatmul.mubr.msk.bf16.vlgmr.msra.gmra.mrb[0].mxu0 %vm774_vm3, %v2157_v5 }
 0x1e3   : > { %v816_v7 = vpop.f32.mrb[0].mxu0 }
 0x1e4   : > { %v817_v8 = vadd.f32 %v1861_v6, %v816_v7  ;;  %v1940_v9 = vpop.f32.mrb[1].mxu0 }
 0x1e5   : > { %v819_v10 = vpop.f32.mrb[2].mxu0 }
 0x1e6   : > { %v823_v11 = vpack.c.bf16 %v817_v8, %v817_v8  ;;  %v820_v12 = vadd.f32 %v1861_v6, %v819_v10  ;;  %v1941_v13 = vpop.f32.mrb[3].mxu0 }
 0x1e8   : > { %826 = vst.msk [vmem:[#allocation2] sm:$0xf] %vm825_vm4, %v823_v11  ;;  %v824_v14 = vpack.c.bf16 %v820_v12, %v820_v12 }
 0x1ea   : > { %827 = vst.msk [vmem:[#allocation2 + $0x4] sm:$0xf] %vm825_vm4, %v824_v14 }
 0x1eb PF: > { %s3248_s5 = sld [smem:[#allocation29_spill]]  ;;  %v2535_v16 = vmov 0.0   ;;  %v2161_v17 = vld [vmem:[#allocation11] sm:$0xff]   ;;  %vm2536_vm5 = vmmov 0   ;;  %vm867_vm6 = vcmask 130048   ;;  %vm924_vm7 = vcmask 261120  }
 0x1ec   : > { %1948 = vmatprep.subr.bf16.mxu1 %v2535_v16  ;;  %1942 = vmatprep.subr.bf16.mxu0 %v2535_v16  ;;  %v828_v19 = vld [vmem:[%s2914_s16] sm:$0x3]  ;;  %v829_v20 = vld [vmem:[#allocation16] sm:$0x3]  ;;  %v1871_v22 = vld [vmem:[%s3171_s6] ss:$0 sm:$0xff]  ;;  %v1080_v58 = vlaneseq }
 0x1ed   : > { %1944 = vmatprep.mubr.msk.bf16.mxu0 %vm2536_vm5, %v2535_v16  ;;  %1943 = vmatpush3.bf16.msra.mxu0 %v2161_v17  ;;  %v2954_v21 = vpack.c.bf16 %v828_v19, %v828_v19  ;;  %v911_v23 = vpack.c.bf16 %v829_v20, %v829_v20  ;;  %s2537_s19 = smov 96   ;;  %s2538_s2 = smov 64   ;;  %v2163_v45 = vld [vmem:[%s3175_s10] sm:$0xff]   ;;  %v2164_v46 = vld [vmem:[%s3175_s10 + $0x8] sm:$0xff]   ;;  %v2540_v56 = vmov 1966171168  }
 0x1ee   : > { %1952 = vmatprep.mubr.msk.bf16.mxu1 %vm2536_vm5, %v2535_v16  ;;  %1956 = vmatprep.subr.bf16.mxu0 %v2535_v16  ;;  %s2539_s16 = smov 32   ;;  %v1078_v57 = vunpack.c.l.s4 %v2540_v56  ;;  %v2991_v60 = vshrl.u32 %v1080_v58, 7  ;;  %s3249_s14 = sld [smem:[#allocation34_spill]]  ;;  %vm1164_vm8 = vcmask 1041409   ;;  %vm1167_vm9 = vcmask 58368  }
 0x1ef   : > { %983 = vrot.lane.b32.xlu0 %v1871_v22, %s2537_s19  ;;  %vm1231_vm10 = vcmask 1043456   ;;  %vm1227_vm11 = vcmask 64512   ;;  %s3250_s15 = sld [smem:[#allocation31_spill]]  ;;  %s3251_s8 = sld [smem:[#allocation30_spill]]  ;;  %vm1349_vm12 = vcmask 195584   ;;  %vm1659_vm13 = vcmask 254976  }
 0x1f0   : > { %1945 = vmatmul.mubr.msk.bf16.vlgmr.msra.gmra.mrb[0].mxu0 %vm867_vm6, %v2954_v21  ;;  %v1079_v59 = vunpack.c.0.s8 %v1078_v57  ;;  %v1101_v1 = vsub.s32 0, %v2991_v60  ;;  %s3252_s29 = sld [smem:[#allocation36_spill]]  ;;  %s3253_s24 = sld [smem:[#allocation35_spill]] }
 0x1f1   : > { %v2160_v15 = vld [vmem:[%s3248_s5] sm:$0xff]   ;;  %v2162_v18 = vld [vmem:[%s3248_s5 + $0x8] sm:$0xff]   ;;  %1960 = vmatprep.mubr.msk.bf16.mxu0 %vm2536_vm5, %v2535_v16  ;;  %1957 = vmatpush3.bf16.msra.mxu0 %v2163_v45  ;;  %p3255_p4 = scmp.ne.s32.totalorder %s3239_s18, 0 }
 0x1f2   : > { %1949 = vmatpush3.bf16.msra.mxu1 %v2160_v15  ;;  %1958 = vmatprep.subr.bf16.mxu0 %v2535_v16  ;;  %v1082_v61 = vsub.s32 %v1079_v59, %v2991_v60  ;;  %v1902_v63 = vld [vmem:[#allocation2] sm:$0xff]  }
 0x1f3   : > { %1950 = vmatprep.subr.bf16.mxu1 %v2535_v16  ;;  %v1903_v4 = vunpack.c.l.bf16 %v1902_v63  ;;  %v1904_v8 = vunpack.c.h.bf16 %v1902_v63 }
 0x1f4   : > { %v1876_v14 = vld [vmem:[%s3249_s14] ss:$0 sm:$0xff]  ;;  %s3254_s14 = sld [smem:[#allocation37_spill]] }
 0x1f5   : > { %1959 = vmatpush3.bf16.msra.mxu0 %v2164_v46 }
 0x1f6   : > { %1951 = vmatpush3.bf16.msra.mxu1 %v2162_v18  ;;  %1970 = vmatprep.subr.bf16.mxu0 %v2535_v16 }
 0x1f7   : > { %1964 = vmatprep.subr.bf16.mxu1 %v2535_v16 }
 0x1f9   : > { %1953 = vmatmul.mubr.msk.bf16.vlgmr.msra.gmra.mrb[0].mxu1 %vm924_vm7, %v911_v23  ;;  %v1137_v23 = vsub.s32 1, %v2991_v60 }
 0x1fa   : > { %1966 = vmatprep.mubr.msk.bf16.mxu1 %vm2536_vm5, %v2535_v16 }
 0x261   : > { %v984_v25 = vpop.permute.xlu0 %983 }
 0x2c3   : > { %v905_v24 = vpop.f32.mrb[0].mxu0 }
 0x2c4   : > { %v1946_v26 = vpop.f32.mrb[1].mxu0  ;;  %v982_v42 = vadd.f32 %v1871_v22, %v905_v24 }
 0x2c5   : > { %v908_v27 = vpop.f32.mrb[2].mxu0 }
 0x2c6   : > { %v1947_v29 = vpop.f32.mrb[3].mxu0  ;;  %v2541_v27 = vmov 0  }
 0x2c7   : > { %2158 = vset.pattern.permute.xlu0 %v2541_v27  ;;  %2159 = vset.pattern.permute.xlu1 %v2541_v27 }
 0x2cc   : > { %v962_v28 = vpop.f32.mrb[0].mxu1 }
 0x2cd   : > { %v968_v30 = vadd.f32 %v962_v28, %v905_v24  ;;  %v986_v31 = vadd.f32 %v984_v25, %v962_v28  ;;  %v1954_v32 = vpop.f32.mrb[1].mxu1  ;;  %v1073_v24 = vld [vmem:[#allocation8] sm:$0x3] }
 0x2ce   : > { %v965_v33 = vpop.f32.mrb[2].mxu1  ;;  %v1138_v25 = vrot.slane %v1073_v24, %v1137_v23  ;;  %v1131_v26 = vrot.slane %v1073_v24, %v1101_v1 }
 0x2cf   : > { %988 = vrot.lane.b32.xlu0 %v986_v31, %s2538_s2  ;;  %v1955_v34 = vpop.f32.mrb[3].mxu1  ;;  %v975_v35 = vadd.f32 %v1871_v22, %v968_v30 }
 0x2d0   : > { %v1155_v34 = vand.u32 127, %v1080_v58 }
 0x2d1   : > { %v1872_v36 = vmul.f32 -1.442695, %v975_v35 }
 0x2d2   : > { %v3002_v35 = vsub.s32 %v1155_v34, %v2991_v60  ;;  %v1074_v60 = vld [vmem:[#allocation9] sm:$0xf] }
 0x2d3   : > { %1005 = vrot.lane.b32.xlu0 %v829_v20, %s2539_s16  ;;  %2174 = vpow2.f32 %v1872_v36 }
 0x2dd   : > { %v2175_v37 = vpop.eup %2174 }
 0x2de   : > { %v979_v38 = vadd.f32 1.0, %v2175_v37 }
 0x2e0   : > { %2176 = vrcp.f32 %v979_v38 }
 0x2ea   : > { %v2177_v39 = vpop.eup %2176 }
 0x2eb   : > { %v998_v49 = vsub.f32 1.0, %v2177_v39 }
 0x341   : > { %v989_v40 = vpop.permute.xlu0 %988 }
 0x342   : > { %v991_v41 = vmul.f32 %v2177_v39, %v989_v40 }
 0x344   : > { %993 = vrot.lane.b32.xlu1 %v991_v41, %s2538_s2 }
 0x345   : > { %v1006_v48 = vpop.permute.xlu0 %1005 }
 0x346   : > { %v1008_v51 = vmul.f32 %v2177_v39, %v1006_v48 }
 0x3b6   : > { %v994_v43 = vpop.permute.xlu1 %993 }
 0x3b7   : > { %v996_v44 = vadd.f32 %v994_v43, %v982_v42  ;;  %v1075_v42 = vld [vmem:[#allocation9 + $0x4] sm:$0xf] }
 0x3b8   : > { %v1289_v43 = vsel %vm1231_vm10, %v1075_v42, 0 }
 0x3b9   : > { %2178 = vtanh.f32 %v996_v44 }
 0x3c3   : > { %v2179_v47 = vpop.eup %2178 }
 0x3c4   : > { %1000 = vrot.lane.b32.xlu1 %v2179_v47, %s2537_s19 }
 0x436   : > { %v1001_v50 = vpop.permute.xlu1 %1000 }
 0x437   : > { %v1003_v52 = vmul.f32 %v1001_v50, %v998_v49 }
 0x439   : > { %v2980_v53 = vadd.f32 %v1008_v51, %v1003_v52 }
 0x43b   : > { %v1010_v54 = vpack.c.bf16 %v2980_v53, %v2980_v53 }
 0x43d   : > { %1012 = vrot.lane.b32.xlu1 %v1010_v54, %s2537_s19 }
 0x4af   : > { %v2985_v55 = vpop.permute.xlu1 %1012 }
 0x4b0   : > { %1961 = vmatmul.mubr.msk.bf16.vlgmr.msra.gmra.mrb[4].mxu0 %vm924_vm7, %v2985_v55 }
 0x4b1   : > { %1972 = vmatprep.mubr.msk.bf16.mxu0 %vm2536_vm5, %v2535_v16  ;;  %1971 = vmatpush3.bf16.msra.mxu0 %v1289_v43 }
 0x4b2   : > { %1984 = vmatprep.subr.bf16.mxu0 %v2535_v16 }
 0x583   : > { %v1063_v62 = vpop.f32.mrb[4].mxu0 }
 0x584   : > { %v1083_v0 = vrot.slane %v1063_v62, %v1082_v61  ;;  %v1962_v2 = vpop.f32.mrb[5].mxu0  ;;  %v3012_v62 = vld [vmem:[#allocation12] ss:$0 sm:$0xff] }
 0x585   : > { %v1066_v3 = vpop.f32.mrb[6].mxu0 }
 0x586   : > { %v1084_v5 = vcombine.high %v1083_v0, %v1083_v0  ;;  %v1091_v6 = vrot.slane %v1083_v0, %v1082_v61  ;;  %v1963_v7 = vpop.f32.mrb[7].mxu0 }
 0x588   : > { %v1098_v9 = vrot.slane %v1084_v5, %v1082_v61  ;;  %v1102_v10 = vrot.slane %v1091_v6, %v1101_v1  ;;  %v1233_v61 = vsel %vm1231_vm10, %v1074_v60, 0  ;;  %v2166_v5 = vld [vmem:[%s3250_s15 + $0x8] sm:$0xff]   ;;  %v2169_v60 = vld [vmem:[%s3252_s29] sm:$0xff]  }
 0x589   : > { %1965 = vmatpush3.bf16.msra.mxu1 %v1233_v61  ;;  %v2171_v61 = vld [vmem:[%s3253_s24] sm:$0xff]  }
 0x58a   : > { %v1106_v11 = vrot.slane %v1098_v9, %v1101_v1  ;;  %v1109_v12 = vadd.f32 %v1903_v4, %v1102_v10  ;;  %1976 = vmatprep.subr.bf16.mxu1 %v2535_v16 }
 0x58c   : > { %v1110_v13 = vadd.f32 %v1904_v8, %v1106_v11  ;;  %2180 = vtanh.f32 %v1109_v12 }
 0x58e   : > { %2182 = vtanh.f32 %v1110_v13  ;;  %v2167_v13 = vld [vmem:[%s3251_s8] sm:$0xff]  }
 0x596   : > { %v2181_v15 = vpop.eup %2180 }
 0x597   : > { %v1119_v17 = vmul.f32 %v2181_v15, %v1876_v14 }
 0x598   : > { %v2183_v18 = vpop.eup %2182 }
 0x599   : > { %v1121_v19 = vsel %vm867_vm6, %v1119_v17, 0.0  ;;  %v1120_v20 = vmul.f32 %v2183_v18, %v1876_v14  ;;  %v2168_v14 = vld [vmem:[%s3251_s8 + $0x8] ss:$0 sps:$4 sm:$0xff]  }
 0x59a   : > { %1122 = vadd.xlane.f32.xlu0 %v1121_v19 }
 0x59b   : > { %v1124_v22 = vsel %vm867_vm6, %v1120_v20, 0.0 }
 0x59c   : > { %1125 = vadd.xlane.f32.xlu1 %v1124_v22 }
 0x5ad   : > { %1140 = vbcast.lane.b32.xlu1 %v1138_v25, 256 }
 0x5b0   : > { %1133 = vbcast.lane.b32.xlu0 %v1131_v26, 256 }
 0x627   : > { %v1123_v28 = vpop.xlane.xlu0 %1122 }
 0x629   : > { %v1126_v29 = vpop.xlane.xlu1 %1125 }
 0x62b   : > { %v1134_v30 = vpop.permute.xlu0 %1133 }
 0x62c   : > { %v1144_v31 = vadd.f32 %v1134_v30, %v1123_v28 }
 0x62d   : > { %v1141_v32 = vpop.permute.xlu1 %1140 }
 0x62e   : > { %v1145_v33 = vadd.f32 %v1141_v32, %v1126_v29  ;;  %1149 = vperm.xlu0 %2158, %v1144_v31  }
 0x630   : > { %1152 = vperm.xlu1 %2159, %v1145_v33  }
 0x6ad   : > { %v1150_v36 = vpop.permute.xlu0 %1149 }
 0x6ae   : > { %v1159_v38 = vrot.slane %v1150_v36, %v3002_v35 }
 0x6af   : > { %v1153_v37 = vpop.permute.xlu1 %1152 }
 0x6b0   : > { %v1163_v39 = vrot.slane %v1153_v37, %v3002_v35 }
 0x6b2   : > { %v1165_v40 = vsel %vm1164_vm8, %v1163_v39, %v1159_v38 }
 0x6b3   : > { %v1168_v41 = vsel %vm1167_vm9, %v1165_v40, -inf }
 0x6b4   : > { %1169 = vmax.xlane.f32.xlu1 %v1168_v41 }
 0x6c5   : > { %1463 = vrot.lane.b32.xlu1 %v3012_v62, %s2537_s19 }
 0x741   : > { %v1170_v44 = vpop.xlane.xlu1 %1169 }
 0x742   : > { %v1171_v45 = vmax.f32 %v1170_v44, -1e+30 }
 0x744   : > { %v1179_v46 = vrot.slane %v1171_v45, %v1101_v1  ;;  %v1183_v47 = vrot.slane %v1171_v45, %v1137_v23  ;;  %v2165_v1 = vld [vmem:[%s3250_s15] sm:$0xff]   ;;  %v1172_v15 = vsub.f32 -1e+30, %v1171_v45 }
 0x746   : > { %v1186_v48 = vsub.f32 %v1144_v31, %v1179_v46  ;;  %v1187_v49 = vsub.f32 %v1145_v33, %v1183_v47  ;;  %v1173_v17 = vmul.f32 1.442695, %v1172_v15  ;;  %v1464_v33 = vpop.permute.xlu1 %1463 }
 0x748   : > { %v1188_v50 = vmul.f32 1.442695, %v1186_v48  ;;  %v1190_v51 = vmul.f32 1.442695, %v1187_v49 }
 0x74a   : > { %2184 = vpow2.f32 %v1188_v50 }
 0x74b   : > { %2186 = vpow2.f32 %v1190_v51 }
 0x74c   : > { %2188 = vpow2.f32 %v1173_v17 }
 0x754   : > { %v2185_v52 = vpop.eup %2184 }
 0x755   : > { %v2187_v54 = vpop.eup %2186  ;;  %v1215_v58 = vpack.c.bf16 %v2185_v52, %v2185_v52 }
 0x756   : > { %v1216_v56 = vpack.c.bf16 %v2187_v54, %v2187_v54  ;;  %v2189_v18 = vpop.eup %2188 }
 0x757   : > { %v1218_v59 = vunpack.c.l.b16 %v1215_v58  ;;  %v1192_v20 = vmul.f32 0.0, %v2189_v18 }
 0x758   : > { %v1276_v57 = vunpack.c.l.b16 %v1216_v56 }
 0x75a   : > { %1278 = vperm.xlu0 %2158, %v1276_v57  }
 0x75e   : > { %1220 = vperm.xlu0 %2158, %v1218_v59  }
 0x762   : > { %1196 = vperm.xlu0 %2158, %v2185_v52  }
 0x766   : > { %1199 = vperm.xlu0 %2158, %v2187_v54  }
 0x7d9   : > { %v1279_v63 = vpop.permute.xlu0 %1278 }
 0x7da   : > { %v1283_v0 = vrot.slane %v1279_v63, %v3002_v35 }
 0x7dc   : > { %v1284_v2 = vpack.c.b16 %v1283_v0, %v1283_v0  ;;  %v2170_v0 = vld [vmem:[%s3252_s29 + $0x8] sm:$0xff]  }
 0x7dd   : > { %v1221_v3 = vpop.permute.xlu0 %1220 }
 0x7de   : > { %v1225_v4 = vrot.slane %v1221_v3, %v3002_v35  ;;  %1973 = vmatmul.mubr.msk.bf16.vlgmr.msra.gmra.mrb[8].mxu0 %vm1227_vm11, %v1284_v2 }
 0x7df   : > { %1985 = vmatpush3.bf16.msra.mxu0 %v2165_v1  ;;  %1988 = vmatprep.mubr.msk.bf16.mxu0 %vm2536_vm5, %v2535_v16 }
 0x7e0   : > { %v1226_v6 = vpack.c.b16 %v1225_v4, %v1225_v4  ;;  %1986 = vmatprep.subr.bf16.mxu0 %v2535_v16 }
 0x7e1   : > { %v1197_v7 = vpop.permute.xlu0 %1196 }
 0x7e2   : > { %1967 = vmatmul.mubr.msk.bf16.vlgmr.msra.gmra.mrb[4].mxu1 %vm1227_vm11, %v1226_v6  ;;  %v1204_v9 = vrot.slane %v1197_v7, %v3002_v35  ;;  %v2172_v6 = vld [vmem:[%s3254_s14] sm:$0xff]  }
 0x7e3   : > { %1987 = vmatpush3.bf16.msra.mxu0 %v2166_v5  ;;  %1980 = vmatprep.mubr.msk.bf16.mxu1 %vm2536_vm5, %v2535_v16 }
 0x7e4   : > { %2000 = vmatprep.subr.bf16.mxu0 %v2535_v16  ;;  %1977 = vmatpush3.bf16.msra.mxu1 %v2167_v13 }
 0x7e5   : > { %v1200_v8 = vpop.permute.xlu0 %1199  ;;  %1978 = vmatprep.subr.bf16.mxu1 %v2535_v16 }
 0x7e6   : > { %v1208_v10 = vrot.slane %v1200_v8, %v3002_v35  ;;  %1989 = vmatmul.mubr.msk.bf16.vlgmr.msra.gmra.mrb[12].mxu0 %vm924_vm7, %v2985_v55  ;;  %v1354_v55 = vsel %vm1231_vm10, %v2168_v14, 0 }
 0x7e7   : > { %2002 = vmatprep.mubr.msk.bf16.mxu0 %vm2536_vm5, %v2535_v16  ;;  %2001 = vmatpush3.bf16.msra.mxu0 %v2171_v61 }
 0x7e8   : > { %v1209_v11 = vsel %vm1164_vm8, %v1208_v10, %v1204_v9  ;;  %1979 = vmatpush3.bf16.msra.mxu1 %v1354_v55 }
 0x7e9   : > { %v1211_v12 = vsel %vm1167_vm9, %v1209_v11, 0.0  ;;  %1992 = vmatprep.subr.bf16.mxu1 %v2535_v16 }
 0x7ea   : > { %1212 = vadd.xlane.f32.xlu0 %v1211_v12 }
 0x7ee   : > { %2003 = vmatmul.mubr.msk.bf16.vlgmr.msra.gmra.mrb[16].mxu0 %vm867_vm6, %v2954_v21  ;;  %v2173_v21 = vld [vmem:[%s3254_s14 + $0x8] ss:$0 sps:$4 sm:$0xff]  }
 0x877   : > { %v1213_v19 = vpop.xlane.xlu0 %1212 }
 0x878   : > { %v1214_v22 = vadd.f32 %v1213_v19, %v1192_v20 }
 0x87a   : > { %2190 = vrcp.f32 %v1214_v22 }
 0x884   : > { %v2191_v34 = vpop.eup %2190 }
 0x8b1   : > { %v1325_v23 = vpop.f32.mrb[8].mxu0 }
 0x8b2   : > { %v1974_v24 = vpop.f32.mrb[9].mxu0  ;;  %v1333_v26 = vrot.slane %v1325_v23, 7 }
 0x8b3   : > { %v1328_v25 = vpop.f32.mrb[10].mxu0 }
 0x8b4   : > { %v1975_v27 = vpop.f32.mrb[11].mxu0 }
 0x8b5   : > { %v1269_v28 = vpop.f32.mrb[4].mxu1 }
 0x8b6   : > { %v1334_v29 = vsel %vm1164_vm8, %v1333_v26, %v1269_v28  ;;  %v1968_v30 = vpop.f32.mrb[5].mxu1 }
 0x8b7   : > { %v1336_v31 = vadd.f32 %v1334_v29, %v1192_v20  ;;  %v1272_v32 = vpop.f32.mrb[6].mxu1 }
 0x8b8   : > { %v1969_v35 = vpop.f32.mrb[7].mxu1 }
 0x8b9   : > { %v1338_v36 = vmul.f32 %v2191_v34, %v1336_v31  ;;  %v1442_v37 = vpop.f32.mrb[12].mxu0 }
 0x8ba   : > { %v1466_v38 = vadd.f32 %v1464_v33, %v1442_v37  ;;  %v1990_v39 = vpop.f32.mrb[13].mxu0 }
 0x8bb   : > { %v1339_v40 = vpack.c.bf16 %v1338_v36, %v1338_v36  ;;  %v1445_v41 = vpop.f32.mrb[14].mxu0 }
 0x8bc   : > { %1468 = vrot.lane.b32.xlu0 %v1466_v38, %s2538_s2  ;;  %v1991_v42 = vpop.f32.mrb[15].mxu0 }
 0x8bd   : > { %1981 = vmatmul.mubr.msk.bf16.vlgmr.msra.gmra.mrb[8].mxu1 %vm1349_vm12, %v1339_v40 }
 0x8be   : > { %1996 = vmatprep.mubr.msk.bf16.mxu1 %vm2536_vm5, %v2535_v16  ;;  %1993 = vmatpush3.bf16.msra.mxu1 %v2169_v60 }
 0x8bf   : > { %1994 = vmatprep.subr.bf16.mxu1 %v2535_v16 }
 0x8c1   : > { %v1585_v9 = vpop.f32.mrb[16].mxu0 }
 0x8c2   : > { %1995 = vmatpush3.bf16.msra.mxu1 %v2170_v0  ;;  %v2004_v10 = vpop.f32.mrb[17].mxu0 }
 0x8c3   : > { %2006 = vmatprep.subr.bf16.mxu1 %v2535_v16  ;;  %v1588_v11 = vpop.f32.mrb[18].mxu0 }
 0x8c4   : > { %v2005_v12 = vpop.f32.mrb[19].mxu0 }
 0x92e   : > { %v1469_v54 = vpop.permute.xlu0 %1468 }
 0x990   : > { %v1390_v43 = vpop.f32.mrb[8].mxu1 }
 0x991   : > { %v1448_v44 = vadd.f32 %v1442_v37, %v1390_v43  ;;  %v1982_v45 = vpop.f32.mrb[9].mxu1  ;;  %v1462_v57 = vadd.f32 %v3012_v62, %v1390_v43 }
 0x992   : > { %v1393_v46 = vpop.f32.mrb[10].mxu1 }
 0x993   : > { %v1455_v47 = vadd.f32 %v3012_v62, %v1448_v44  ;;  %v1983_v48 = vpop.f32.mrb[11].mxu1 }
 0x995   : > { %v1886_v49 = vmul.f32 -1.442695, %v1455_v47 }
 0x997   : > { %2192 = vpow2.f32 %v1886_v49 }
 0x9a1   : > { %v2193_v50 = vpop.eup %2192 }
 0x9a2   : > { %v1459_v51 = vadd.f32 1.0, %v2193_v50 }
 0x9a4   : > { %2194 = vrcp.f32 %v1459_v51 }
 0x9ae   : > { %v2195_v52 = vpop.eup %2194 }
 0x9af   : > { %v1471_v56 = vmul.f32 %v2195_v52, %v1469_v54  ;;  %v1478_v62 = vsub.f32 1.0, %v2195_v52  ;;  %v1484_v2 = vmul.f32 %v2195_v52, %v2980_v53  ;;  %v1601_v53 = vsel %vm1231_vm10, %v2173_v21, 0 }
 0x9b1   : > { %1473 = vrot.lane.b32.xlu1 %v1471_v56, %s2538_s2 }
 0xa23   : > { %v1474_v58 = vpop.permute.xlu1 %1473 }
 0xa24   : > { %v1476_v59 = vadd.f32 %v1474_v58, %v1462_v57 }
 0xa26   : > { %2196 = vtanh.f32 %v1476_v59 }
 0xa30   : > { %v2197_v63 = vpop.eup %2196 }
 0xa31   : > { %1480 = vrot.lane.b32.xlu1 %v2197_v63, %s2537_s19 }
 0xaa3   : > { %v1481_v1 = vpop.permute.xlu1 %1480 }
 0xaa4   : > { %v1483_v3 = vmul.f32 %v1481_v1, %v1478_v62 }
 0xaa6   : > { %v1485_v4 = vadd.f32 %v1484_v2, %v1483_v3 }
 0xaa8   : > { %v1486_v5 = vpack.c.bf16 %v1485_v4, %v1485_v4 }
 0xaaa   : > { %1488 = vrot.lane.b32.xlu1 %v1486_v5, %s2537_s19 }
 0xaae   : > { %1656 = vrot.lane.b32.xlu1 %v1485_v4, %s2537_s19  ;;  %s2542_s19 = smov [#allocation16]  }
 0xaaf   : > { %s1688_s9 = sshll.u32 %s2542_s19, 4  ;;  %s1689_s9 = int_to_ptr.vmem [resolvable:$true] %s1688_s9 }
 0xab0   : > { %s2398_s24 = scalar_lea.vmem %s1689_s9, 32  ;;  %p2405_p13 = scmp.lt.s32.totalorder %s1689_s9, %s1689_s9 }
 0xab1   : > { %p2399_p12 = scmp.ne.s32.totalorder %s1689_s9, %s2398_s24  ;;  %p2406_p2 = scmp.lt.s32.totalorder %s2398_s24, %s2398_s24 }
 0xab3   : > { %p2400_p6 = pnand %p2399_p12, %p3255_p4  ;;  %p2407_p7 = por %p2406_p2, %p2405_p13 }
 0xab5   : > { %p2401_p1 = pneg %p2400_p6 }
 0xab7   : > { %p2408_p8 = pnand %p2407_p7, %p2401_p1 }
 0xb1c   : > { %v1489_v7 = vpop.permute.xlu1 %1488 }
 0xb1d   : > { %1997 = vmatmul.mubr.msk.bf16.vlgmr.msra.gmra.mrb[12].mxu1 %vm924_vm7, %v1489_v7 }
 0xb1e   : > { %2007 = vmatpush3.bf16.msra.mxu1 %v2172_v6  ;;  %2010 = vmatprep.mubr.msk.bf16.mxu1 %vm2536_vm5, %v2535_v16 }
 0xb1f   : > { %2008 = vmatprep.subr.bf16.mxu1 %v2535_v16 }
 0xb20   : > { %v1657_v8 = vpop.permute.xlu1 %1656 }
 0xb21   : > { %1660 = vst.msk [vmem:[#allocation16] sm:$0x3] %vm1659_vm13, %v1657_v8 }
 0xb22   : > { %2009 = vmatpush3.bf16.msra.mxu1 %v1601_v53 }
 0xb25   : > { %2011 = vmatmul.mubr.msk.bf16.vlgmr.msra.gmra.mrb[16].mxu1 %vm1349_vm12, %v1339_v40 }
 0xb26   : > { %2411 = shalt.err (!%p2408_p8)
}
 0xb27   : > { %s3256_s2 = sld [smem:[#allocation40_spill]] }
 0xb2d   : > { %s2412_s28 = scalar_lea.hbm %s3256_s2, 32 }
 0xb2e   : > { %p2413_p9 = scmp.ne.s32.totalorder %s3256_s2, %s2412_s28  ;;  %p2418_p0 = scmp.lt.u32.totalorder %s2412_s28, %s3256_s2 }
 0xb30   : > { %p2414_p3 = pnand %p2413_p9, %p3255_p4 }
 0xb32   : > { %p2415_p10 = pneg %p2414_p3 }
 0xb34   : > { %p2420_p5 = pnand %p2418_p0, %p2415_p10 }
 0xb36   : > { %2423 = shalt.err (!%p2420_p5)
}
 0xb37   : > { %2042 = dma.vmem_to_hbm [thread:$0]  (%p3255_p4), %s1689_s9, 32, %s3256_s2, [#allocation17]   ;;  %vm1653_vm14 = vcmask 253952  }
 0xb38   : > { %s3257_s26 = sld [smem:[#allocation38_spill]]  ;;  %s1896_s5 = sshll.u32 %s2514_s21, 4 }
 0xb39   : > { %s3258_s4 = scalar_lea.vmem [#allocation15], %s2910_s12  ;;  %s3259_s19 = sld [smem:[#allocation39_spill]] }
 0xb3a   : > { %s1675_s9 = sshll.u32 %s3258_s4, 4  ;;  %s3260_s17 = smov %s3258_s4  ;;  %s3113_s9 = int_to_ptr.vmem [resolvable:$true] %s1675_s9 }
 0xb3b   : > { %s1662_s23 = scalar_lea.sflag [#allocation5], %s2910_s12  ;;  %p3261_p12 = scmp.ne.s32.totalorder %s3242_s3, 0 }
 0xb3c   : > { %s2543_s21 = smov [#allocation15]  }
 0xb3d   : > { %s2428_s4 = sshll.u32 %s2543_s21, 4  ;;  %s2429_s4 = int_to_ptr.vmem [resolvable:$false] %s2428_s4 }
 0xb3e   : > { %v1895_v17 = vld [vmem:[%s3257_s26] ss:$0 sm:$0xff]  ;;  %s2424_s26 = scalar_lea.vmem %s3113_s9, 16  ;;  %s2430_s2 = scalar_lea.vmem %s2429_s4, 32 }
 0xb3f   : > { %s3111_s24 = scalar_lea.hbm %s3259_s19, %s1896_s5  ;;  %p2425_p11 = scmp.ne.s32.totalorder %s3113_s9, %s2424_s26 }
 0xb40   : > { %p2431_p13 = scmp.lt.s32.totalorder %s3113_s9, %s2429_s4  ;;  %p2432_p2 = scmp.lt.s32.totalorder %s2430_s2, %s2424_s26 }
 0xb41   : > { %p2426_p6 = pnand %p2425_p11, %p3261_p12 }
 0xb42   : > { %p2433_p7 = por %p2432_p2, %p2431_p13 }
 0xb43   : > { %p2427_p1 = pneg %p2426_p6 }
 0xb45   : > { %p2434_p8 = pnand %p2433_p7, %p2427_p1 }
 0xbf0   : > { %v1539_v16 = vpop.f32.mrb[12].mxu1 }
 0xbf1   : > { %v1586_v13 = vadd.f32 %v1585_v9, %v1539_v16  ;;  %v1998_v14 = vpop.f32.mrb[13].mxu1 }
 0xbf2   : > { %v1542_v55 = vpop.f32.mrb[14].mxu1 }
 0xbf3   : > { %v1999_v15 = vpop.f32.mrb[15].mxu1 }
 0xbf8   : > { %v1637_v18 = vpop.f32.mrb[16].mxu1 }
 0xbf9   : > { %v1643_v19 = vadd.f32 %v1637_v18, %v1586_v13  ;;  %v2012_v20 = vpop.f32.mrb[17].mxu1 }
 0xbfa   : > { %v1640_v22 = vpop.f32.mrb[18].mxu1 }
 0xbfb   : > { %v1650_v23 = vadd.f32 %v1895_v17, %v1643_v19  ;;  %v2013_v24 = vpop.f32.mrb[19].mxu1 }
 0xbfd   : > { %2198 = vtanh.f32 %v1650_v23 }
 0xc07   : > { %v2199_v25 = vpop.eup %2198 }
 0xc08   : > { %v1652_v26 = vpack.c.bf16 %v2199_v25, %v2199_v25 }
 0xc0a   : > { %1654 = vst.msk [vmem:[%s3260_s17] sm:$0x1] %vm1653_vm14, %v1652_v26 }
 0xc0b   : > { %2437 = shalt.err (!%p2434_p8)
}
 0xc0c   : > { %s2438_s12 = scalar_lea.hbm %s3111_s24, 16  ;;  %s2442_s16 = scalar_lea.hbm %s3259_s19, 64 }
 0xc0d   : > { %p2439_p9 = scmp.ne.s32.totalorder %s3111_s24, %s2438_s12  ;;  %p2443_p0 = scmp.lt.u32.totalorder %s3111_s24, %s3259_s19 }
 0xc0e   : > { %p2444_p5 = scmp.lt.u32.totalorder %s2442_s16, %s2438_s12  ;;  %p2446_p6 = scmp.lt.u32.totalorder %s2438_s12, %s3111_s24 }
 0xc0f   : > { %p2440_p3 = pnand %p2439_p9, %p3261_p12 }
 0xc10   : > { %p2445_p11 = por %p2444_p5, %p2443_p0 }
 0xc11   : > { %p2441_p10 = pneg %p2440_p3 }
 0xc12   : > { %p2447_p1 = por %p2446_p6, %p2445_p11 }
 0xc14   : > { %p2448_p13 = pnand %p2447_p1, %p2441_p10 }
 0xc16   : > { %2451 = shalt.err (!%p2448_p13)
}
 0xc17   : > { %2040 = dma.vmem_to_hbm [thread:$0]  (%p3261_p12), %s3113_s9, 16, %s3111_s24, %s1662_s23  }
 0xc18   : > { %2493 = dma.done.wait (%p3255_p4), [#allocation17], 32  }
 0xc19   : > { %2495 = vsyncadd (%p3255_p4), [#allocation17], 4294967264 }
 0xc1a PF: > { %p2088_p2 = scmp.ge.s32.totalorder %s2522_s22, 2  ;;  %s1704_s2 = sand.u32 1, %s2502_s0  }
 0xc1b   : > { %p3262_p7 = scmp.ne.s32.totalorder %s3243_s27, 0  ;;  %s1705_s26 = scalar_lea.sflag [#allocation5], %s1704_s2 }
 0xc1d   : > { %p2070_p8 = pnand %p2088_p2, %p3262_p7 }
 0xc1f   : > { %2497 = dma.done.wait (!%p2070_p8), %s1705_s26, 16  }
 0xc20   : > { %2499 = vsyncadd (!%p2070_p8), %s1705_s26, 4294967280  ;;  %s40_s22 = sadd.s32 1, %s2522_s22   ;;  %s3263_s0 = smov %s2506_s30 }
 0xc21   : > { %p37_p9 = scmp.ge.s32.totalorder %s40_s22, 6   ;;  %s3264_s30 = smov %s2510_s20 }
 0xc22   : > { %s3265_s20 = smov %s2860_s13  ;;  %s3266_s21 = smov %s2518_s1 }
 0xc23   : > { %s3267_s1 = smov %s3269_s7  ;;  %39 = sbr.rel (!%p37_p9) target bundleno = 28 (0x1c), region = 177 }
 0xc2a   :  { %1709 = vsyncpa [#allocation4], 1 }
 0xc2b   :  { %1711 = vsyncpa [#allocation4 + $0x1], 1 }
 0xc2c   :  { %1712 = vsyncpa [#allocation7], 1 }
 0xc2d   :  { %1713 = vsyncpa [#allocation10], 1 }
 0xc2e   :  { %1714 = vsyncpa [#allocation13], 1 }
 0xc2f   :  { %1715 = vsyncpa [#allocation5], 1 }
 0xc30   :  { %1717 = vsyncpa [#allocation5 + $0x1], 1 }
 0xc31   :  { %1718 = vsyncpa [#allocation17], 1 }

// kernel: tpu_custom_call.1
= control target key start
LH: loop header
LB: loop body
LE: loop exit
PB: predicated region body
PF: predicated region fallthrough
CT: control target
= control target key end

     0   :  { %s3165_s0 = inlined_call_operand.hbm [shape: f32[4,2,16], index: 0, kind: input, shape index: {}]   ;;  %s3166_s1 = inlined_call_operand.hbm [shape: f32[2,32], index: 1, kind: input, shape index: {}]   ;;  %s3167_s2 = inlined_call_operand.hbm [shape: f32[2,8], index: 2, kind: input, shape index: {}]   ;;  %s3168_s3 = inlined_call_operand.hbm [shape: bf16[2,8,24], index: 3, kind: input, shape index: {}]   ;;  %s3169_s4 = inlined_call_operand.hbm [shape: bf16[16,96], index: 4, kind: input, shape index: {}]   ;;  %s3170_s5 = inlined_call_operand.vmem [shape: bf16[32,96], index: 5, kind: input, shape index: {}]   ;;  %s3171_s6 = inlined_call_operand.vmem [shape: f32[1,128], index: 6, kind: input, shape index: {}]   ;;  %s3172_s7 = inlined_call_operand.vmem [shape: bf16[24,96], index: 7, kind: input, shape index: {}]   ;;  %s3173_s8 = inlined_call_operand.vmem [shape: bf16[32,96], index: 8, kind: input, shape index: {}]   ;;  %s3174_s9 = inlined_call_operand.hbm [shape: f32[1,128], index: 9, kind: input, shape index: {}]   ;;  %s3175_s10 = inlined_call_operand.vmem [shape: bf16[32,16], index: 10, kind: input, shape index: {}]   ;;  %s3176_s11 = inlined_call_operand.vmem [shape: bf16[24,16], index: 11, kind: input, shape index: {}]   ;;  %s3177_s12 = inlined_call_operand.hbm [shape: f32[1,16], index: 12, kind: input, shape index: {}]   ;;  %s3178_s13 = inlined_call_operand.vmem [shape: f32[1,16], index: 13, kind: input, shape index: {}]   ;;  %s3179_s14 = inlined_call_operand.vmem [shape: bf16[16,32], index: 14, kind: input, shape index: {}]   ;;  %s3180_s15 = inlined_call_operand.vmem [shape: bf16[32,32], index: 15, kind: input, shape index: {}]   ;;  %s3181_s16 = inlined_call_operand.vmem [shape: bf16[24,32], index: 16, kind: input, shape index: {}]   ;;  %s3182_s17 = inlined_call_operand.vmem [shape: f32[1,32], index: 17, kind: input, shape index: {}]   ;;  %s3183_s18 = inlined_call_operand.hbm [shape: bf16[4,2,32], index: 18, kind: output, shape index: {0}]   ;;  %s3184_s19 = inlined_call_operand.hbm [shape: f32[2,32], index: 19, kind: output, shape index: {1}]  }
   0x1   :  { %3208 = sst [smem:[#allocation24_spill]] %s3165_s0 }
   0x2   :  { %3209 = sst [smem:[#allocation25_spill]] %s3166_s1 }
   0x3   :  { %3210 = sst [smem:[#allocation26_spill]] %s3167_s2 }
   0x4   :  { %3211 = sst [smem:[#allocation27_spill]] %s3168_s3 }
   0x5   :  { %3212 = sst [smem:[#allocation28_spill]] %s3169_s4 }
   0x6   :  { %3213 = sst [smem:[#allocation29_spill]] %s3170_s5 }
   0x7   :  { %3214 = sst [smem:[#allocation30_spill]] %s3172_s7 }
   0x8   :  { %3215 = sst [smem:[#allocation31_spill]] %s3173_s8 }
   0x9   :  { %3216 = sst [smem:[#allocation32_spill]] %s3174_s9 }
   0xa   :  { %3217 = sst [smem:[#allocation33_spill]] %s3177_s12 }
   0xb   :  { %3218 = sst [smem:[#allocation34_spill]] %s3178_s13 }
   0xc   :  { %3219 = sst [smem:[#allocation35_spill]] %s3179_s14 }
   0xd   :  { %3220 = sst [smem:[#allocation36_spill]] %s3180_s15 }
   0xe   :  { %3221 = sst [smem:[#allocation37_spill]] %s3181_s16 }
   0xf   :  { %3222 = sst [smem:[#allocation38_spill]] %s3182_s17 }
  0x10   :  { %3223 = sst [smem:[#allocation39_spill]] %s3183_s18 }
  0x11   :  { %3224 = sst [smem:[#allocation40_spill]] %s3184_s19 }
  0x12   :  { %25 = vsyncpa [#allocation4], 0 }
  0x13   :  { %27 = vsyncpa [#allocation4 + $0x1], 0 }
  0x14   :  { %28 = vsyncpa [#allocation7], 0 }
  0x15   :  { %29 = vsyncpa [#allocation10], 0 }
  0x16   :  { %30 = vsyncpa [#allocation13], 0 }
  0x17   :  { %31 = vsyncpa [#allocation5], 0 }
  0x18   :  { %33 = vsyncpa [#allocation5 + $0x1], 0 }
  0x19   :  { %34 = vsyncpa [#allocation17], 0  ;;  %s2644_s0 = smov 0   ;;  %s2646_s30 = smov 0  }
  0x1a   :  { %s2648_s20 = smov 0   ;;  %s2650_s21 = smov 0  }
  0x1b   :  { %s2652_s1 = smov 0   ;;  %s2654_s22 = smov 0  }
  0x1c LB: > { %s3189_s2 = sadd.s32 4294967295, %s2522_s22   ;;  %p1842_p0 = scmp.ge.s32.totalorder %s2522_s22, 1  ;;  %s2522_s22 = sphi %s2654_s22, %s40_s22   ;;  %s2518_s1 = sphi %s2652_s1, %s3267_s1   ;;  %s2514_s21 = sphi %s2650_s21, %s3266_s21   ;;  %s2510_s20 = sphi %s2648_s20, %s3265_s20   ;;  %s2506_s30 = sphi %s2646_s30, %s3264_s30   ;;  %s2502_s0 = sphi %s2644_s0, %s3263_s0  }
  0x1d   : > { %p2678_p1 = scmp.eq.s32.totalorder %s3189_s2, 0  ;;  %p511_p2 = scmp.lt.s32.totalorder %s2522_s22, 5 }
  0x1e   : > { %s2524_s25 = smov [#allocation6]   ;;  %s2525_s26 = smov [#allocation9]  }
  0x1f   : > { %s3225_s23 = scalar_select %p2678_p1, 1, 0 }
  0x20   : > { %p2683_p3 = pnand %p1842_p0, %p511_p2  ;;  %s526_s3 = sshll.u32 %s2524_s25, 4  ;;  %s527_s3 = int_to_ptr.vmem [resolvable:$true] %s526_s3 }
  0x21   : > { %s552_s27 = sshll.u32 %s2525_s26, 4  ;;  %s2526_s29 = smov [#allocation12]   ;;  %s2695_s27 = int_to_ptr.vmem [resolvable:$true] %s552_s27 }
  0x22   : > { %s3226_s24 = scalar_select %p2683_p3, 1, 0 }
  0x23   : > { %p2046_p4 = pneg %p2683_p3  ;;  %s2697_s2 = sshll.u32 %s2526_s29, 4  ;;  %s592_s2 = int_to_ptr.vmem [resolvable:$true] %s2697_s2 }
  0x24   : > { %s3228_s19 = sld [smem:[#allocation25_spill]] }
  0x25   : > { %p2691_p5 = pnand %p2046_p4, %p2678_p1 }
  0x27   : > { %p2707_p7 = pneg %p2691_p5 }
  0x2a   : > { %s2200_s25 = scalar_lea.hbm %s3228_s19, 32 }
  0x2b   : > { %p2201_p6 = scmp.ne.s32.totalorder %s3228_s19, %s2200_s25  ;;  %p2207_p10 = scmp.lt.u32.totalorder %s2200_s25, %s3228_s19 }
  0x2d   : > { %p2203_p8 = pnand %p2707_p7, %p2201_p6 }
  0x2f   : > { %p2204_p9 = pneg %p2203_p8 }
  0x31   : > { %p2209_p11 = pnand %p2207_p10, %p2204_p9 }
  0x33   : > { %2212 = shalt.err (!%p2209_p11)
}
  0x34   : > { %s2213_s17 = scalar_lea.vmem %s527_s3, 32  ;;  %p2221_p2 = scmp.lt.s32.totalorder %s527_s3, %s527_s3 }
  0x35   : > { %p2214_p12 = scmp.ne.s32.totalorder %s527_s3, %s2213_s17  ;;  %p2222_p4 = scmp.lt.s32.totalorder %s2213_s17, %s2213_s17 }
  0x37   : > { %p2216_p13 = pnand %p2214_p12, %p2707_p7  ;;  %p2223_p3 = por %p2222_p4, %p2221_p2 }
  0x39   : > { %p2217_p0 = pneg %p2216_p13 }
  0x3b   : > { %p2224_p1 = pnand %p2223_p3, %p2217_p0 }
  0x3d   : > { %2227 = shalt.err (!%p2224_p1)
}
  0x3e   : > { %2049 = dma.hbm_to_vmem [thread:$0]  (!%p2691_p5), %s3228_s19, 32, %s527_s3, [#allocation7]  }
  0x3f   : > { %s3230_s25 = sld [smem:[#allocation27_spill]] }
  0x45   : > { %s2228_s29 = scalar_lea.hbm %s3230_s25, 128 }
  0x46   : > { %p2229_p6 = scmp.ne.s32.totalorder %s3230_s25, %s2228_s29  ;;  %p2235_p1 = scmp.lt.u32.totalorder %s2228_s29, %s3230_s25 }
  0x48   : > { %p2231_p8 = pnand %p2229_p6, %p2707_p7 }
  0x4a   : > { %p2232_p9 = pneg %p2231_p8 }
  0x4c   : > { %p2237_p3 = pnand %p2235_p1, %p2232_p9 }
  0x4e   : > { %2240 = shalt.err (!%p2237_p3)
}
  0x4f   : > { %s2241_s3 = scalar_lea.vmem %s2695_s27, 128  ;;  %p2249_p13 = scmp.lt.s32.totalorder %s2695_s27, %s2695_s27 }
  0x50   : > { %p2242_p10 = scmp.ne.s32.totalorder %s2695_s27, %s2241_s3  ;;  %p2250_p0 = scmp.lt.s32.totalorder %s2241_s3, %s2241_s3 }
  0x52   : > { %p2244_p11 = pnand %p2242_p10, %p2707_p7  ;;  %p2251_p2 = por %p2250_p0, %p2249_p13 }
  0x54   : > { %p2245_p12 = pneg %p2244_p11 }
  0x56   : > { %p2252_p4 = pnand %p2251_p2, %p2245_p12 }
  0x58   : > { %2255 = shalt.err (!%p2252_p4)
}
  0x59   : > { %s3200_s7 = smov 64   ;;  %s3201_s8 = smov 4  }
  0x5a   : > { %2055 = dma.hbm_to_vmem [thread:$0]  (!%p2691_p5), %s3230_s25, 128, %s2695_s27, [#allocation10], %s3200_s7, %s3200_s7, %s3201_s8  }
  0x5b   : > { %s3231_s9 = sld [smem:[#allocation32_spill]] }
  0x61   : > { %s2256_s18 = scalar_lea.hbm %s3231_s9, 16 }
  0x62   : > { %p2257_p6 = scmp.ne.s32.totalorder %s3231_s9, %s2256_s18  ;;  %p2263_p1 = scmp.lt.u32.totalorder %s2256_s18, %s3231_s9 }
  0x64   : > { %p2259_p8 = pnand %p2257_p6, %p2707_p7 }
  0x66   : > { %p2260_p9 = pneg %p2259_p8 }
  0x68   : > { %p2265_p3 = pnand %p2263_p1, %p2260_p9 }
  0x6a   : > { %2268 = shalt.err (!%p2265_p3)
}
  0x6b   : > { %s2269_s13 = scalar_lea.vmem %s592_s2, 16  ;;  %s2276_s27 = scalar_lea.vmem %s592_s2, 32 }
  0x6c   : > { %p2270_p10 = scmp.ne.s32.totalorder %s592_s2, %s2269_s13  ;;  %p2277_p13 = scmp.lt.s32.totalorder %s592_s2, %s592_s2 }
  0x6d   : > { %p2278_p0 = scmp.lt.s32.totalorder %s2276_s27, %s2269_s13 }
  0x6e   : > { %p2272_p11 = pnand %p2270_p10, %p2707_p7 }
  0x6f   : > { %p2279_p2 = por %p2278_p0, %p2277_p13 }
  0x70   : > { %p2273_p12 = pneg %p2272_p11 }
  0x72   : > { %p2280_p4 = pnand %p2279_p2, %p2273_p12 }
  0x74   : > { %2283 = shalt.err (!%p2280_p4)
}
  0x75   : > { %2061 = dma.hbm_to_vmem [thread:$0]  (!%p2691_p5), %s3231_s9, 16, %s592_s2, [#allocation13]  }
  0x76   : > { %s2529_s19 = smov [#allocation8]   ;;  %s2530_s18 = smov [#allocation11]  }
  0x77   : > { %s539_s15 = sshll.u32 %s2529_s19, 4  ;;  %s565_s29 = sshll.u32 %s2530_s18, 4  ;;  %s540_s15 = int_to_ptr.vmem [resolvable:$true] %s539_s15  ;;  %s566_s29 = int_to_ptr.vmem [resolvable:$true] %s565_s29 }
  0x78   : > { %s3232_s7 = sld [smem:[#allocation26_spill]] }
  0x7e   : > { %s2284_s8 = scalar_lea.hbm %s3232_s7, 32 }
  0x7f   : > { %p2285_p6 = scmp.ne.s32.totalorder %s3232_s7, %s2284_s8  ;;  %p2291_p1 = scmp.lt.u32.totalorder %s2284_s8, %s3232_s7 }
  0x81   : > { %p2287_p8 = pnand %p2285_p6, %p2707_p7 }
  0x83   : > { %p2288_p9 = pneg %p2287_p8 }
  0x85   : > { %p2293_p3 = pnand %p2291_p1, %p2288_p9 }
  0x87   : > { %2296 = shalt.err (!%p2293_p3)
}
  0x88   : > { %s2297_s2 = scalar_lea.vmem %s540_s15, 32  ;;  %p2305_p13 = scmp.lt.s32.totalorder %s540_s15, %s540_s15 }
  0x89   : > { %p2298_p10 = scmp.ne.s32.totalorder %s540_s15, %s2297_s2  ;;  %p2306_p0 = scmp.lt.s32.totalorder %s2297_s2, %s2297_s2 }
  0x8b   : > { %p2300_p11 = pnand %p2298_p10, %p2707_p7  ;;  %p2307_p2 = por %p2306_p0, %p2305_p13 }
  0x8d   : > { %p2301_p12 = pneg %p2300_p11 }
  0x8f   : > { %p2308_p4 = pnand %p2307_p2, %p2301_p12 }
  0x91   : > { %2311 = shalt.err (!%p2308_p4)
}
  0x92   : > { %2052 = dma.hbm_to_vmem [thread:$0]  (!%p2691_p5), %s3232_s7, 32, %s540_s15, [#allocation7]  }
  0x93   : > { %s3233_s4 = sld [smem:[#allocation28_spill]] }
  0x99   : > { %s2312_s18 = scalar_lea.hbm %s3233_s4, 128 }
  0x9a   : > { %p2313_p6 = scmp.ne.s32.totalorder %s3233_s4, %s2312_s18  ;;  %p2319_p1 = scmp.lt.u32.totalorder %s2312_s18, %s3233_s4 }
  0x9c   : > { %p2315_p8 = pnand %p2313_p6, %p2707_p7 }
  0x9e   : > { %p2316_p9 = pneg %p2315_p8 }
  0xa0   : > { %p2321_p3 = pnand %p2319_p1, %p2316_p9 }
  0xa2   : > { %2324 = shalt.err (!%p2321_p3)
}
  0xa3   : > { %s2325_s14 = scalar_lea.vmem %s566_s29, 128  ;;  %p2333_p13 = scmp.lt.s32.totalorder %s566_s29, %s566_s29 }
  0xa4   : > { %p2326_p10 = scmp.ne.s32.totalorder %s566_s29, %s2325_s14  ;;  %p2334_p0 = scmp.lt.s32.totalorder %s2325_s14, %s2325_s14 }
  0xa6   : > { %p2328_p11 = pnand %p2326_p10, %p2707_p7  ;;  %p2335_p2 = por %p2334_p0, %p2333_p13 }
  0xa8   : > { %p2329_p12 = pneg %p2328_p11 }
  0xaa   : > { %p2336_p4 = pnand %p2335_p2, %p2329_p12 }
  0xac   : > { %2339 = shalt.err (!%p2336_p4)
}
  0xad   : > { %s3234_s15 = smov 4   ;;  %s3235_s2 = smov 64  }
  0xae   : > { %2058 = dma.hbm_to_vmem [thread:$0]  (!%p2691_p5), %s3233_s4, 128, %s566_s29, [#allocation10], %s3235_s2, %s3235_s2, %s3234_s15  }
  0xaf   : > { %s2531_s25 = smov [#allocation14]   ;;  %s3236_s12 = sld [smem:[#allocation33_spill]] }
  0xb0   : > { %s608_s8 = sshll.u32 %s2531_s25, 4  ;;  %s609_s8 = int_to_ptr.vmem [resolvable:$true] %s608_s8 }
  0xb5   : > { %s2340_s3 = scalar_lea.hbm %s3236_s12, 16 }
  0xb6   : > { %p2341_p6 = scmp.ne.s32.totalorder %s3236_s12, %s2340_s3  ;;  %p2347_p1 = scmp.lt.u32.totalorder %s2340_s3, %s3236_s12 }
  0xb8   : > { %p2343_p8 = pnand %p2341_p6, %p2707_p7 }
  0xba   : > { %p2344_p9 = pneg %p2343_p8 }
  0xbc   : > { %p2349_p3 = pnand %p2347_p1, %p2344_p9 }
  0xbe   : > { %2352 = shalt.err (!%p2349_p3)
}
  0xbf   : > { %s2353_s29 = scalar_lea.vmem %s609_s8, 16  ;;  %s2360_s15 = scalar_lea.vmem %s609_s8, 32 }
  0xc0   : > { %p2354_p10 = scmp.ne.s32.totalorder %s609_s8, %s2353_s29  ;;  %p2361_p13 = scmp.lt.s32.totalorder %s609_s8, %s609_s8 }
  0xc1   : > { %p2362_p0 = scmp.lt.s32.totalorder %s2360_s15, %s2353_s29 }
  0xc2   : > { %p2356_p11 = pnand %p2354_p10, %p2707_p7 }
  0xc3   : > { %p2363_p2 = por %p2362_p0, %p2361_p13 }
  0xc4   : > { %p2357_p12 = pneg %p2356_p11 }
  0xc6   : > { %p2364_p4 = pnand %p2363_p2, %p2357_p12 }
  0xc8   : > { %2367 = shalt.err (!%p2364_p4)
}
  0xc9   : > { %2064 = dma.hbm_to_vmem [thread:$0]  (!%p2691_p5), %s3236_s12, 16, %s609_s8, [#allocation13]  }
  0xca   : > { %s1841_s26 = sadd.s32 4294967294, %s2522_s22   ;;  %s49_s7 = sadd.s32 1, %s2518_s1 }
  0xcb   : > { %p50_p7 = scmp.ge.s32.totalorder %s49_s7, 4  ;;  %s61_s28 = sadd.s32 1, %s2510_s20 }
  0xcc   : > { %p68_p6 = scmp.ne.s32.totalorder %s2510_s20, %s2506_s30  ;;  %p69_p8 = scmp.eq.s32.totalorder %s2522_s22, 0 }
  0xcd   : > { %s3269_s7 = smov (%p50_p7, %s49_s7), 0  ;;  %p74_p1 = scmp.ne.s32.totalorder %s2506_s30, %s2502_s0 }
  0xce   : > { %p2833_p9 = por %p69_p8, %p68_p6  ;;  %s56_s25 = ssub.s32 %s2518_s1, %s3269_s7 }
  0xcf   : > { %s3238_s8 = sadd.s32 4294967295, %s2522_s22   ;;  %p59_p3 = scmp.eq.s32.totalorder %s56_s25, 0 }
  0xd0   : > { %p2843_p5 = scmp.eq.s32.totalorder %s3238_s8, 3  ;;  %p3240_p10 = scmp.ne.s32.totalorder %s3225_s23, 0 }
  0xd1   : > { %p478_p13 = scmp.eq.s32.totalorder %s1841_s26, 3  ;;  %p2079_p2 = scmp.lt.s32.totalorder %s2522_s22, 4 }
  0xd2   : > { %s3239_s18 = scalar_select %p2843_p5, 1, 0 }
  0xd3   : > { %p2849_p11 = por %p3240_p10, %p74_p1  ;;  %p2855_p12 = por %p2843_p5, %p68_p6 }
  0xd4   : > { %s2860_s13 = scalar_select %p59_p3, %s2510_s20, %s61_s28  }
  0xd5   : > { %s3242_s3 = scalar_select %p2855_p12, 1, 0 }
  0xd6   : > { %p2862_p0 = por %p478_p13, %p74_p1  ;;  %s634_s14 = sand.u32 1, %s2510_s20  }
  0xd7   : > { %s1851_s29 = sshll.u32 %s2518_s1, 5  ;;  %s1850_s15 = sshll.u32 %s634_s14, 1 }
  0xd8   : > { %s3243_s27 = scalar_select %p2862_p0, 1, 0 }
  0xd9   : > { %s3244_s25 = sld [smem:[#allocation24_spill]]  ;;  %s638_s26 = scalar_lea.vmem [#allocation3], %s1850_s15 }
  0xda   : > { %s646_s28 = sshll.u32 %s638_s26, 4  ;;  %p2876_p4 = pnand %p2079_p2, %p2833_p9  ;;  %s2880_s28 = int_to_ptr.vmem [resolvable:$true] %s646_s28 }
  0xdb   : > { %s635_s9 = scalar_lea.sflag [#allocation4], %s634_s14 }
  0xdc   : > { %p2370_p6 = pneg %p2876_p4 }
  0xdf   : > { %s2872_s8 = scalar_lea.hbm %s3244_s25, %s1851_s29  ;;  %s2373_s19 = scalar_lea.hbm %s3244_s25, 128 }
  0xe0   : > { %s2368_s12 = scalar_lea.hbm %s2872_s8, 32  ;;  %p2374_p9 = scmp.lt.u32.totalorder %s2872_s8, %s3244_s25 }
  0xe1   : > { %p2369_p7 = scmp.ne.s32.totalorder %s2872_s8, %s2368_s12  ;;  %p2375_p3 = scmp.lt.u32.totalorder %s2373_s19, %s2368_s12 }
  0xe2   : > { %p2377_p13 = scmp.lt.u32.totalorder %s2368_s12, %s2872_s8 }
  0xe3   : > { %p2371_p8 = pnand %p2370_p6, %p2369_p7  ;;  %p2376_p10 = por %p2375_p3, %p2374_p9 }
  0xe5   : > { %p2372_p1 = pneg %p2371_p8  ;;  %p2378_p2 = por %p2377_p13, %p2376_p10 }
  0xe7   : > { %p2379_p0 = pnand %p2378_p2, %p2372_p1 }
  0xe9   : > { %2382 = shalt.err (!%p2379_p0)
}
  0xea   : > { %s2383_s14 = scalar_lea.vmem %s2880_s28, 32  ;;  %s2532_s26 = smov [#allocation3]  }
  0xeb   : > { %p2384_p7 = scmp.ne.s32.totalorder %s2880_s28, %s2383_s14  ;;  %s2388_s29 = sshll.u32 %s2532_s26, 4  ;;  %s2389_s29 = int_to_ptr.vmem [resolvable:$false] %s2388_s29 }
  0xec   : > { %s2390_s15 = scalar_lea.vmem %s2389_s29, 64  ;;  %p2391_p5 = scmp.lt.s32.totalorder %s2880_s28, %s2389_s29 }
  0xed   : > { %p2386_p8 = pnand %p2384_p7, %p2370_p6  ;;  %p2392_p9 = scmp.lt.s32.totalorder %s2390_s15, %s2383_s14 }
  0xef   : > { %p2387_p12 = pneg %p2386_p8  ;;  %p2393_p3 = por %p2392_p9, %p2391_p5 }
  0xf1   : > { %p2394_p10 = pnand %p2393_p3, %p2387_p12 }
  0xf3   : > { %2397 = shalt.err (!%p2394_p10)
}
  0xf4   : > { %2068 = dma.hbm_to_vmem [thread:$0]  (!%p2876_p4), %s2872_s8, 32, %s2880_s28, %s635_s9  }
  0xf5   : > { %p3246_p0 = scmp.ne.s32.totalorder %s3226_s24, 0 }
  0xf6   : > { %s2910_s12 = sand.u32 (!%p3246_p0), 1, %s2506_s30  }
  0xf7   : > { %655 = sbr.rel (%p3246_p0) target bundleno = 3098 (0xc1a), region = 92  ;;  %s1853_s19 = sshll.u32 (!%p3246_p0), %s2910_s12, 1 }
  0xf8   : > { %s658_s2 = scalar_lea.sflag (!%p3246_p0), [#allocation4], %s2910_s12  ;;  %s2914_s16 = scalar_lea.vmem (!%p3246_p0), [#allocation3], %s1853_s19 }
  0xfe   : > { %2477 = dma.done.wait (%p2849_p11), %s658_s2, 32  }
  0xff   : > { %2479 = vsyncadd (%p2849_p11), %s658_s2, 4294967264  ;;  %p3247_p5 = scmp.ne.s32.totalorder %s3225_s23, 0 }
 0x101   : > { %2481 = dma.done.wait (%p3247_p5), [#allocation7], 64  }
 0x102   : > { %2483 = vsyncadd (%p3247_p5), [#allocation7], 4294967232 }
 0x103   : > { %2485 = dma.done.wait (%p3247_p5), [#allocation10], 256  }
 0x104   : > { %2487 = vsyncadd (%p3247_p5), [#allocation10], 4294967040 }
 0x105   : > { %2489 = dma.done.wait (%p3247_p5), [#allocation13], 32  }
 0x106   : > { %2491 = vsyncadd (%p3247_p5), [#allocation13], 4294967264  ;;  %p1860_p11 = scmp.ne.s32.totalorder %s2514_s21, 0 }
 0x107   : > { %v745_v0 = vld [vmem:[#allocation6] sm:$0x3] (!%p1860_p11)  ;;  %vm746_vm0 = vcmask (!%p1860_p11), 254976   ;;  %v2533_v1 = vmov (!%p1860_p11), 0.0   ;;  %v2155_v2 = vld [vmem:[%s3176_s11] sm:$0xff] (!%p1860_p11)   ;;  %vm778_vm1 = vcmask (!%p1860_p11), 1043456  }
 0x108   : > { %744 = sbr.rel (%p1860_p11) target bundleno = 491 (0x1eb), region = 124  ;;  %747 = vst.msk [vmem:[#allocation16] sm:$0x3] (!%p1860_p11), %vm746_vm0, %v745_v0  ;;  %1934 = vmatprep.subr.bf16.mxu0 (!%p1860_p11), %v2533_v1  ;;  %v2156_v3 = vld [vmem:[%s3176_s11 + $0x8] ss:$0 sps:$4 sm:$0xff] (!%p1860_p11)   ;;  %vm2534_vm2 = vmmov (!%p1860_p11), 0  }
 0x109   : > { %1935 = vmatpush3.bf16.msra.mxu0 (!%p1860_p11), %v2155_v2  ;;  %1938 = vmatprep.mubr.msk.bf16.mxu0 (!%p1860_p11), %vm2534_vm2, %v2533_v1  ;;  %v780_v4 = vsel (!%p1860_p11), %vm778_vm1, %v2156_v3, 0  ;;  %v2157_v5 = vld [vmem:[#allocation9] sm:$0xff] (!%p1860_p11)   ;;  %vm774_vm3 = vcmask (!%p1860_p11), 195584   ;;  %v1861_v6 = vld [vmem:[#allocation14] ss:$0 sm:$0xff] (!%p1860_p11)  ;;  %vm825_vm4 = vcmask (!%p1860_p11), 125952  }
 0x10a   : > { %1936 = vmatprep.subr.bf16.mxu0 (!%p1860_p11), %v2533_v1 }
 0x10d   : > { %1937 = vmatpush3.bf16.msra.mxu0 (!%p1860_p11), %v780_v4 }
 0x110   : > { %1939 = vmatmul.mubr.msk.bf16.vlgmr.msra.gmra.mrb[0].mxu0 %vm774_vm3, %v2157_v5 }
 0x1e3   : > { %v816_v7 = vpop.f32.mrb[0].mxu0 }
 0x1e4   : > { %v817_v8 = vadd.f32 %v1861_v6, %v816_v7  ;;  %v1940_v9 = vpop.f32.mrb[1].mxu0 }
 0x1e5   : > { %v819_v10 = vpop.f32.mrb[2].mxu0 }
 0x1e6   : > { %v823_v11 = vpack.c.bf16 %v817_v8, %v817_v8  ;;  %v820_v12 = vadd.f32 %v1861_v6, %v819_v10  ;;  %v1941_v13 = vpop.f32.mrb[3].mxu0 }
 0x1e8   : > { %826 = vst.msk [vmem:[#allocation2] sm:$0xf] %vm825_vm4, %v823_v11  ;;  %v824_v14 = vpack.c.bf16 %v820_v12, %v820_v12 }
 0x1ea   : > { %827 = vst.msk [vmem:[#allocation2 + $0x4] sm:$0xf] %vm825_vm4, %v824_v14 }
 0x1eb PF: > { %s3248_s5 = sld [smem:[#allocation29_spill]]  ;;  %v2535_v16 = vmov 0.0   ;;  %v2161_v17 = vld [vmem:[#allocation11] sm:$0xff]   ;;  %vm2536_vm5 = vmmov 0   ;;  %vm867_vm6 = vcmask 130048   ;;  %vm924_vm7 = vcmask 261120  }
 0x1ec   : > { %1948 = vmatprep.subr.bf16.mxu1 %v2535_v16  ;;  %1942 = vmatprep.subr.bf16.mxu0 %v2535_v16  ;;  %v828_v19 = vld [vmem:[%s2914_s16] sm:$0x3]  ;;  %v829_v20 = vld [vmem:[#allocation16] sm:$0x3]  ;;  %v1871_v22 = vld [vmem:[%s3171_s6] ss:$0 sm:$0xff]  ;;  %v1080_v58 = vlaneseq }
 0x1ed   : > { %1944 = vmatprep.mubr.msk.bf16.mxu0 %vm2536_vm5, %v2535_v16  ;;  %1943 = vmatpush3.bf16.msra.mxu0 %v2161_v17  ;;  %v2954_v21 = vpack.c.bf16 %v828_v19, %v828_v19  ;;  %v911_v23 = vpack.c.bf16 %v829_v20, %v829_v20  ;;  %s2537_s19 = smov 96   ;;  %s2538_s2 = smov 64   ;;  %v2163_v45 = vld [vmem:[%s3175_s10] sm:$0xff]   ;;  %v2164_v46 = vld [vmem:[%s3175_s10 + $0x8] sm:$0xff]   ;;  %v2540_v56 = vmov 1966171168  }
 0x1ee   : > { %1952 = vmatprep.mubr.msk.bf16.mxu1 %vm2536_vm5, %v2535_v16  ;;  %1956 = vmatprep.subr.bf16.mxu0 %v2535_v16  ;;  %s2539_s16 = smov 32   ;;  %v1078_v57 = vunpack.c.l.s4 %v2540_v56  ;;  %v2991_v60 = vshrl.u32 %v1080_v58, 7  ;;  %s3249_s14 = sld [smem:[#allocation34_spill]]  ;;  %vm1164_vm8 = vcmask 1041409   ;;  %vm1167_vm9 = vcmask 58368  }
 0x1ef   : > { %983 = vrot.lane.b32.xlu0 %v1871_v22, %s2537_s19  ;;  %vm1231_vm10 = vcmask 1043456   ;;  %vm1227_vm11 = vcmask 64512   ;;  %s3250_s15 = sld [smem:[#allocation31_spill]]  ;;  %s3251_s8 = sld [smem:[#allocation30_spill]]  ;;  %vm1349_vm12 = vcmask 195584   ;;  %vm1659_vm13 = vcmask 254976  }
 0x1f0   : > { %1945 = vmatmul.mubr.msk.bf16.vlgmr.msra.gmra.mrb[0].mxu0 %vm867_vm6, %v2954_v21  ;;  %v1079_v59 = vunpack.c.0.s8 %v1078_v57  ;;  %v1101_v1 = vsub.s32 0, %v2991_v60  ;;  %s3252_s29 = sld [smem:[#allocation36_spill]]  ;;  %s3253_s24 = sld [smem:[#allocation35_spill]] }
 0x1f1   : > { %v2160_v15 = vld [vmem:[%s3248_s5] sm:$0xff]   ;;  %v2162_v18 = vld [vmem:[%s3248_s5 + $0x8] sm:$0xff]   ;;  %1960 = vmatprep.mubr.msk.bf16.mxu0 %vm2536_vm5, %v2535_v16  ;;  %1957 = vmatpush3.bf16.msra.mxu0 %v2163_v45  ;;  %p3255_p4 = scmp.ne.s32.totalorder %s3239_s18, 0 }
 0x1f2   : > { %1949 = vmatpush3.bf16.msra.mxu1 %v2160_v15  ;;  %1958 = vmatprep.subr.bf16.mxu0 %v2535_v16  ;;  %v1082_v61 = vsub.s32 %v1079_v59, %v2991_v60  ;;  %v1902_v63 = vld [vmem:[#allocation2] sm:$0xff]  }
 0x1f3   : > { %1950 = vmatprep.subr.bf16.mxu1 %v2535_v16  ;;  %v1903_v4 = vunpack.c.l.bf16 %v1902_v63  ;;  %v1904_v8 = vunpack.c.h.bf16 %v1902_v63 }
 0x1f4   : > { %v1876_v14 = vld [vmem:[%s3249_s14] ss:$0 sm:$0xff]  ;;  %s3254_s14 = sld [smem:[#allocation37_spill]] }
 0x1f5   : > { %1959 = vmatpush3.bf16.msra.mxu0 %v2164_v46 }
 0x1f6   : > { %1951 = vmatpush3.bf16.msra.mxu1 %v2162_v18  ;;  %1970 = vmatprep.subr.bf16.mxu0 %v2535_v16 }
 0x1f7   : > { %1964 = vmatprep.subr.bf16.mxu1 %v2535_v16 }
 0x1f9   : > { %1953 = vmatmul.mubr.msk.bf16.vlgmr.msra.gmra.mrb[0].mxu1 %vm924_vm7, %v911_v23  ;;  %v1137_v23 = vsub.s32 1, %v2991_v60 }
 0x1fa   : > { %1966 = vmatprep.mubr.msk.bf16.mxu1 %vm2536_vm5, %v2535_v16 }
 0x261   : > { %v984_v25 = vpop.permute.xlu0 %983 }
 0x2c3   : > { %v905_v24 = vpop.f32.mrb[0].mxu0 }
 0x2c4   : > { %v1946_v26 = vpop.f32.mrb[1].mxu0  ;;  %v982_v42 = vadd.f32 %v1871_v22, %v905_v24 }
 0x2c5   : > { %v908_v27 = vpop.f32.mrb[2].mxu0 }
 0x2c6   : > { %v1947_v29 = vpop.f32.mrb[3].mxu0  ;;  %v2541_v27 = vmov 0  }
 0x2c7   : > { %2158 = vset.pattern.permute.xlu0 %v2541_v27  ;;  %2159 = vset.pattern.permute.xlu1 %v2541_v27 }
 0x2cc   : > { %v962_v28 = vpop.f32.mrb[0].mxu1 }
 0x2cd   : > { %v968_v30 = vadd.f32 %v962_v28, %v905_v24  ;;  %v986_v31 = vadd.f32 %v984_v25, %v962_v28  ;;  %v1954_v32 = vpop.f32.mrb[1].mxu1  ;;  %v1073_v24 = vld [vmem:[#allocation8] sm:$0x3] }
 0x2ce   : > { %v965_v33 = vpop.f32.mrb[2].mxu1  ;;  %v1138_v25 = vrot.slane %v1073_v24, %v1137_v23  ;;  %v1131_v26 = vrot.slane %v1073_v24, %v1101_v1 }
 0x2cf   : > { %988 = vrot.lane.b32.xlu0 %v986_v31, %s2538_s2  ;;  %v1955_v34 = vpop.f32.mrb[3].mxu1  ;;  %v975_v35 = vadd.f32 %v1871_v22, %v968_v30 }
 0x2d0   : > { %v1155_v34 = vand.u32 127, %v1080_v58 }
 0x2d1   : > { %v1872_v36 = vmul.f32 -1.442695, %v975_v35 }
 0x2d2   : > { %v3002_v35 = vsub.s32 %v1155_v34, %v2991_v60  ;;  %v1074_v60 = vld [vmem:[#allocation9] sm:$0xf] }
 0x2d3   : > { %1005 = vrot.lane.b32.xlu0 %v829_v20, %s2539_s16  ;;  %2174 = vpow2.f32 %v1872_v36 }
 0x2dd   : > { %v2175_v37 = vpop.eup %2174 }
 0x2de   : > { %v979_v38 = vadd.f32 1.0, %v2175_v37 }
 0x2e0   : > { %2176 = vrcp.f32 %v979_v38 }
 0x2ea   : > { %v2177_v39 = vpop.eup %2176 }
 0x2eb   : > { %v998_v49 = vsub.f32 1.0, %v2177_v39 }
 0x341   : > { %v989_v40 = vpop.permute.xlu0 %988 }
 0x342   : > { %v991_v41 = vmul.f32 %v2177_v39, %v989_v40 }
 0x344   : > { %993 = vrot.lane.b32.xlu1 %v991_v41, %s2538_s2 }
 0x345   : > { %v1006_v48 = vpop.permute.xlu0 %1005 }
 0x346   : > { %v1008_v51 = vmul.f32 %v2177_v39, %v1006_v48 }
 0x3b6   : > { %v994_v43 = vpop.permute.xlu1 %993 }
 0x3b7   : > { %v996_v44 = vadd.f32 %v994_v43, %v982_v42  ;;  %v1075_v42 = vld [vmem:[#allocation9 + $0x4] sm:$0xf] }
 0x3b8   : > { %v1289_v43 = vsel %vm1231_vm10, %v1075_v42, 0 }
 0x3b9   : > { %2178 = vtanh.f32 %v996_v44 }
 0x3c3   : > { %v2179_v47 = vpop.eup %2178 }
 0x3c4   : > { %1000 = vrot.lane.b32.xlu1 %v2179_v47, %s2537_s19 }
 0x436   : > { %v1001_v50 = vpop.permute.xlu1 %1000 }
 0x437   : > { %v1003_v52 = vmul.f32 %v1001_v50, %v998_v49 }
 0x439   : > { %v2980_v53 = vadd.f32 %v1008_v51, %v1003_v52 }
 0x43b   : > { %v1010_v54 = vpack.c.bf16 %v2980_v53, %v2980_v53 }
 0x43d   : > { %1012 = vrot.lane.b32.xlu1 %v1010_v54, %s2537_s19 }
 0x4af   : > { %v2985_v55 = vpop.permute.xlu1 %1012 }
 0x4b0   : > { %1961 = vmatmul.mubr.msk.bf16.vlgmr.msra.gmra.mrb[4].mxu0 %vm924_vm7, %v2985_v55 }
 0x4b1   : > { %1972 = vmatprep.mubr.msk.bf16.mxu0 %vm2536_vm5, %v2535_v16  ;;  %1971 = vmatpush3.bf16.msra.mxu0 %v1289_v43 }
 0x4b2   : > { %1984 = vmatprep.subr.bf16.mxu0 %v2535_v16 }
 0x583   : > { %v1063_v62 = vpop.f32.mrb[4].mxu0 }
 0x584   : > { %v1083_v0 = vrot.slane %v1063_v62, %v1082_v61  ;;  %v1962_v2 = vpop.f32.mrb[5].mxu0  ;;  %v3012_v62 = vld [vmem:[#allocation12] ss:$0 sm:$0xff] }
 0x585   : > { %v1066_v3 = vpop.f32.mrb[6].mxu0 }
 0x586   : > { %v1084_v5 = vcombine.high %v1083_v0, %v1083_v0  ;;  %v1091_v6 = vrot.slane %v1083_v0, %v1082_v61  ;;  %v1963_v7 = vpop.f32.mrb[7].mxu0 }
 0x588   : > { %v1098_v9 = vrot.slane %v1084_v5, %v1082_v61  ;;  %v1102_v10 = vrot.slane %v1091_v6, %v1101_v1  ;;  %v1233_v61 = vsel %vm1231_vm10, %v1074_v60, 0  ;;  %v2166_v5 = vld [vmem:[%s3250_s15 + $0x8] sm:$0xff]   ;;  %v2169_v60 = vld [vmem:[%s3252_s29] sm:$0xff]  }
 0x589   : > { %1965 = vmatpush3.bf16.msra.mxu1 %v1233_v61  ;;  %v2171_v61 = vld [vmem:[%s3253_s24] sm:$0xff]  }
 0x58a   : > { %v1106_v11 = vrot.slane %v1098_v9, %v1101_v1  ;;  %v1109_v12 = vadd.f32 %v1903_v4, %v1102_v10  ;;  %1976 = vmatprep.subr.bf16.mxu1 %v2535_v16 }
 0x58c   : > { %v1110_v13 = vadd.f32 %v1904_v8, %v1106_v11  ;;  %2180 = vtanh.f32 %v1109_v12 }
 0x58e   : > { %2182 = vtanh.f32 %v1110_v13  ;;  %v2167_v13 = vld [vmem:[%s3251_s8] sm:$0xff]  }
 0x596   : > { %v2181_v15 = vpop.eup %2180 }
 0x597   : > { %v1119_v17 = vmul.f32 %v2181_v15, %v1876_v14 }
 0x598   : > { %v2183_v18 = vpop.eup %2182 }
 0x599   : > { %v1121_v19 = vsel %vm867_vm6, %v1119_v17, 0.0  ;;  %v1120_v20 = vmul.f32 %v2183_v18, %v1876_v14  ;;  %v2168_v14 = vld [vmem:[%s3251_s8 + $0x8] ss:$0 sps:$4 sm:$0xff]  }
 0x59a   : > { %1122 = vadd.xlane.f32.xlu0 %v1121_v19 }
 0x59b   : > { %v1124_v22 = vsel %vm867_vm6, %v1120_v20, 0.0 }
 0x59c   : > { %1125 = vadd.xlane.f32.xlu1 %v1124_v22 }
 0x5ad   : > { %1140 = vbcast.lane.b32.xlu1 %v1138_v25, 256 }
 0x5b0   : > { %1133 = vbcast.lane.b32.xlu0 %v1131_v26, 256 }
 0x627   : > { %v1123_v28 = vpop.xlane.xlu0 %1122 }
 0x629   : > { %v1126_v29 = vpop.xlane.xlu1 %1125 }
 0x62b   : > { %v1134_v30 = vpop.permute.xlu0 %1133 }
 0x62c   : > { %v1144_v31 = vadd.f32 %v1134_v30, %v1123_v28 }
 0x62d   : > { %v1141_v32 = vpop.permute.xlu1 %1140 }
 0x62e   : > { %v1145_v33 = vadd.f32 %v1141_v32, %v1126_v29  ;;  %1149 = vperm.xlu0 %2158, %v1144_v31  }
 0x630   : > { %1152 = vperm.xlu1 %2159, %v1145_v33  }
 0x6ad   : > { %v1150_v36 = vpop.permute.xlu0 %1149 }
 0x6ae   : > { %v1159_v38 = vrot.slane %v1150_v36, %v3002_v35 }
 0x6af   : > { %v1153_v37 = vpop.permute.xlu1 %1152 }
 0x6b0   : > { %v1163_v39 = vrot.slane %v1153_v37, %v3002_v35 }
 0x6b2   : > { %v1165_v40 = vsel %vm1164_vm8, %v1163_v39, %v1159_v38 }
 0x6b3   : > { %v1168_v41 = vsel %vm1167_vm9, %v1165_v40, -inf }
 0x6b4   : > { %1169 = vmax.xlane.f32.xlu1 %v1168_v41 }
 0x6c5   : > { %1463 = vrot.lane.b32.xlu1 %v3012_v62, %s2537_s19 }
 0x741   : > { %v1170_v44 = vpop.xlane.xlu1 %1169 }
 0x742   : > { %v1171_v45 = vmax.f32 %v1170_v44, -1e+30 }
 0x744   : > { %v1179_v46 = vrot.slane %v1171_v45, %v1101_v1  ;;  %v1183_v47 = vrot.slane %v1171_v45, %v1137_v23  ;;  %v2165_v1 = vld [vmem:[%s3250_s15] sm:$0xff]   ;;  %v1172_v15 = vsub.f32 -1e+30, %v1171_v45 }
 0x746   : > { %v1186_v48 = vsub.f32 %v1144_v31, %v1179_v46  ;;  %v1187_v49 = vsub.f32 %v1145_v33, %v1183_v47  ;;  %v1173_v17 = vmul.f32 1.442695, %v1172_v15  ;;  %v1464_v33 = vpop.permute.xlu1 %1463 }
 0x748   : > { %v1188_v50 = vmul.f32 1.442695, %v1186_v48  ;;  %v1190_v51 = vmul.f32 1.442695, %v1187_v49 }
 0x74a   : > { %2184 = vpow2.f32 %v1188_v50 }
 0x74b   : > { %2186 = vpow2.f32 %v1190_v51 }
 0x74c   : > { %2188 = vpow2.f32 %v1173_v17 }
 0x754   : > { %v2185_v52 = vpop.eup %2184 }
 0x755   : > { %v2187_v54 = vpop.eup %2186  ;;  %v1215_v58 = vpack.c.bf16 %v2185_v52, %v2185_v52 }
 0x756   : > { %v1216_v56 = vpack.c.bf16 %v2187_v54, %v2187_v54  ;;  %v2189_v18 = vpop.eup %2188 }
 0x757   : > { %v1218_v59 = vunpack.c.l.b16 %v1215_v58  ;;  %v1192_v20 = vmul.f32 0.0, %v2189_v18 }
 0x758   : > { %v1276_v57 = vunpack.c.l.b16 %v1216_v56 }
 0x75a   : > { %1278 = vperm.xlu0 %2158, %v1276_v57  }
 0x75e   : > { %1220 = vperm.xlu0 %2158, %v1218_v59  }
 0x762   : > { %1196 = vperm.xlu0 %2158, %v2185_v52  }
 0x766   : > { %1199 = vperm.xlu0 %2158, %v2187_v54  }
 0x7d9   : > { %v1279_v63 = vpop.permute.xlu0 %1278 }
 0x7da   : > { %v1283_v0 = vrot.slane %v1279_v63, %v3002_v35 }
 0x7dc   : > { %v1284_v2 = vpack.c.b16 %v1283_v0, %v1283_v0  ;;  %v2170_v0 = vld [vmem:[%s3252_s29 + $0x8] sm:$0xff]  }
 0x7dd   : > { %v1221_v3 = vpop.permute.xlu0 %1220 }
 0x7de   : > { %v1225_v4 = vrot.slane %v1221_v3, %v3002_v35  ;;  %1973 = vmatmul.mubr.msk.bf16.vlgmr.msra.gmra.mrb[8].mxu0 %vm1227_vm11, %v1284_v2 }
 0x7df   : > { %1985 = vmatpush3.bf16.msra.mxu0 %v2165_v1  ;;  %1988 = vmatprep.mubr.msk.bf16.mxu0 %vm2536_vm5, %v2535_v16 }
 0x7e0   : > { %v1226_v6 = vpack.c.b16 %v1225_v4, %v1225_v4  ;;  %1986 = vmatprep.subr.bf16.mxu0 %v2535_v16 }
 0x7e1   : > { %v1197_v7 = vpop.permute.xlu0 %1196 }
 0x7e2   : > { %1967 = vmatmul.mubr.msk.bf16.vlgmr.msra.gmra.mrb[4].mxu1 %vm1227_vm11, %v1226_v6  ;;  %v1204_v9 = vrot.slane %v1197_v7, %v3002_v35  ;;  %v2172_v6 = vld [vmem:[%s3254_s14] sm:$0xff]  }
 0x7e3   : > { %1987 = vmatpush3.bf16.msra.mxu0 %v2166_v5  ;;  %1980 = vmatprep.mubr.msk.bf16.mxu1 %vm2536_vm5, %v2535_v16 }
 0x7e4   : > { %2000 = vmatprep.subr.bf16.mxu0 %v2535_v16  ;;  %1977 = vmatpush3.bf16.msra.mxu1 %v2167_v13 }
 0x7e5   : > { %v1200_v8 = vpop.permute.xlu0 %1199  ;;  %1978 = vmatprep.subr.bf16.mxu1 %v2535_v16 }
 0x7e6   : > { %v1208_v10 = vrot.slane %v1200_v8, %v3002_v35  ;;  %1989 = vmatmul.mubr.msk.bf16.vlgmr.msra.gmra.mrb[12].mxu0 %vm924_vm7, %v2985_v55  ;;  %v1354_v55 = vsel %vm1231_vm10, %v2168_v14, 0 }
 0x7e7   : > { %2002 = vmatprep.mubr.msk.bf16.mxu0 %vm2536_vm5, %v2535_v16  ;;  %2001 = vmatpush3.bf16.msra.mxu0 %v2171_v61 }
 0x7e8   : > { %v1209_v11 = vsel %vm1164_vm8, %v1208_v10, %v1204_v9  ;;  %1979 = vmatpush3.bf16.msra.mxu1 %v1354_v55 }
 0x7e9   : > { %v1211_v12 = vsel %vm1167_vm9, %v1209_v11, 0.0  ;;  %1992 = vmatprep.subr.bf16.mxu1 %v2535_v16 }
 0x7ea   : > { %1212 = vadd.xlane.f32.xlu0 %v1211_v12 }
 0x7ee   : > { %2003 = vmatmul.mubr.msk.bf16.vlgmr.msra.gmra.mrb[16].mxu0 %vm867_vm6, %v2954_v21  ;;  %v2173_v21 = vld [vmem:[%s3254_s14 + $0x8] ss:$0 sps:$4 sm:$0xff]  }
 0x877   : > { %v1213_v19 = vpop.xlane.xlu0 %1212 }
 0x878   : > { %v1214_v22 = vadd.f32 %v1213_v19, %v1192_v20 }
 0x87a   : > { %2190 = vrcp.f32 %v1214_v22 }
 0x884   : > { %v2191_v34 = vpop.eup %2190 }
 0x8b1   : > { %v1325_v23 = vpop.f32.mrb[8].mxu0 }
 0x8b2   : > { %v1974_v24 = vpop.f32.mrb[9].mxu0  ;;  %v1333_v26 = vrot.slane %v1325_v23, 7 }
 0x8b3   : > { %v1328_v25 = vpop.f32.mrb[10].mxu0 }
 0x8b4   : > { %v1975_v27 = vpop.f32.mrb[11].mxu0 }
 0x8b5   : > { %v1269_v28 = vpop.f32.mrb[4].mxu1 }
 0x8b6   : > { %v1334_v29 = vsel %vm1164_vm8, %v1333_v26, %v1269_v28  ;;  %v1968_v30 = vpop.f32.mrb[5].mxu1 }
 0x8b7   : > { %v1336_v31 = vadd.f32 %v1334_v29, %v1192_v20  ;;  %v1272_v32 = vpop.f32.mrb[6].mxu1 }
 0x8b8   : > { %v1969_v35 = vpop.f32.mrb[7].mxu1 }
 0x8b9   : > { %v1338_v36 = vmul.f32 %v2191_v34, %v1336_v31  ;;  %v1442_v37 = vpop.f32.mrb[12].mxu0 }
 0x8ba   : > { %v1466_v38 = vadd.f32 %v1464_v33, %v1442_v37  ;;  %v1990_v39 = vpop.f32.mrb[13].mxu0 }
 0x8bb   : > { %v1339_v40 = vpack.c.bf16 %v1338_v36, %v1338_v36  ;;  %v1445_v41 = vpop.f32.mrb[14].mxu0 }
 0x8bc   : > { %1468 = vrot.lane.b32.xlu0 %v1466_v38, %s2538_s2  ;;  %v1991_v42 = vpop.f32.mrb[15].mxu0 }
 0x8bd   : > { %1981 = vmatmul.mubr.msk.bf16.vlgmr.msra.gmra.mrb[8].mxu1 %vm1349_vm12, %v1339_v40 }
 0x8be   : > { %1996 = vmatprep.mubr.msk.bf16.mxu1 %vm2536_vm5, %v2535_v16  ;;  %1993 = vmatpush3.bf16.msra.mxu1 %v2169_v60 }
 0x8bf   : > { %1994 = vmatprep.subr.bf16.mxu1 %v2535_v16 }
 0x8c1   : > { %v1585_v9 = vpop.f32.mrb[16].mxu0 }
 0x8c2   : > { %1995 = vmatpush3.bf16.msra.mxu1 %v2170_v0  ;;  %v2004_v10 = vpop.f32.mrb[17].mxu0 }
 0x8c3   : > { %2006 = vmatprep.subr.bf16.mxu1 %v2535_v16  ;;  %v1588_v11 = vpop.f32.mrb[18].mxu0 }
 0x8c4   : > { %v2005_v12 = vpop.f32.mrb[19].mxu0 }
 0x92e   : > { %v1469_v54 = vpop.permute.xlu0 %1468 }
 0x990   : > { %v1390_v43 = vpop.f32.mrb[8].mxu1 }
 0x991   : > { %v1448_v44 = vadd.f32 %v1442_v37, %v1390_v43  ;;  %v1982_v45 = vpop.f32.mrb[9].mxu1  ;;  %v1462_v57 = vadd.f32 %v3012_v62, %v1390_v43 }
 0x992   : > { %v1393_v46 = vpop.f32.mrb[10].mxu1 }
 0x993   : > { %v1455_v47 = vadd.f32 %v3012_v62, %v1448_v44  ;;  %v1983_v48 = vpop.f32.mrb[11].mxu1 }
 0x995   : > { %v1886_v49 = vmul.f32 -1.442695, %v1455_v47 }
 0x997   : > { %2192 = vpow2.f32 %v1886_v49 }
 0x9a1   : > { %v2193_v50 = vpop.eup %2192 }
 0x9a2   : > { %v1459_v51 = vadd.f32 1.0, %v2193_v50 }
 0x9a4   : > { %2194 = vrcp.f32 %v1459_v51 }
 0x9ae   : > { %v2195_v52 = vpop.eup %2194 }
 0x9af   : > { %v1471_v56 = vmul.f32 %v2195_v52, %v1469_v54  ;;  %v1478_v62 = vsub.f32 1.0, %v2195_v52  ;;  %v1484_v2 = vmul.f32 %v2195_v52, %v2980_v53  ;;  %v1601_v53 = vsel %vm1231_vm10, %v2173_v21, 0 }
 0x9b1   : > { %1473 = vrot.lane.b32.xlu1 %v1471_v56, %s2538_s2 }
 0xa23   : > { %v1474_v58 = vpop.permute.xlu1 %1473 }
 0xa24   : > { %v1476_v59 = vadd.f32 %v1474_v58, %v1462_v57 }
 0xa26   : > { %2196 = vtanh.f32 %v1476_v59 }
 0xa30   : > { %v2197_v63 = vpop.eup %2196 }
 0xa31   : > { %1480 = vrot.lane.b32.xlu1 %v2197_v63, %s2537_s19 }
 0xaa3   : > { %v1481_v1 = vpop.permute.xlu1 %1480 }
 0xaa4   : > { %v1483_v3 = vmul.f32 %v1481_v1, %v1478_v62 }
 0xaa6   : > { %v1485_v4 = vadd.f32 %v1484_v2, %v1483_v3 }
 0xaa8   : > { %v1486_v5 = vpack.c.bf16 %v1485_v4, %v1485_v4 }
 0xaaa   : > { %1488 = vrot.lane.b32.xlu1 %v1486_v5, %s2537_s19 }
 0xaae   : > { %1656 = vrot.lane.b32.xlu1 %v1485_v4, %s2537_s19  ;;  %s2542_s19 = smov [#allocation16]  }
 0xaaf   : > { %s1688_s9 = sshll.u32 %s2542_s19, 4  ;;  %s1689_s9 = int_to_ptr.vmem [resolvable:$true] %s1688_s9 }
 0xab0   : > { %s2398_s24 = scalar_lea.vmem %s1689_s9, 32  ;;  %p2405_p13 = scmp.lt.s32.totalorder %s1689_s9, %s1689_s9 }
 0xab1   : > { %p2399_p12 = scmp.ne.s32.totalorder %s1689_s9, %s2398_s24  ;;  %p2406_p2 = scmp.lt.s32.totalorder %s2398_s24, %s2398_s24 }
 0xab3   : > { %p2400_p6 = pnand %p2399_p12, %p3255_p4  ;;  %p2407_p7 = por %p2406_p2, %p2405_p13 }
 0xab5   : > { %p2401_p1 = pneg %p2400_p6 }
 0xab7   : > { %p2408_p8 = pnand %p2407_p7, %p2401_p1 }
 0xb1c   : > { %v1489_v7 = vpop.permute.xlu1 %1488 }
 0xb1d   : > { %1997 = vmatmul.mubr.msk.bf16.vlgmr.msra.gmra.mrb[12].mxu1 %vm924_vm7, %v1489_v7 }
 0xb1e   : > { %2007 = vmatpush3.bf16.msra.mxu1 %v2172_v6  ;;  %2010 = vmatprep.mubr.msk.bf16.mxu1 %vm2536_vm5, %v2535_v16 }
 0xb1f   : > { %2008 = vmatprep.subr.bf16.mxu1 %v2535_v16 }
 0xb20   : > { %v1657_v8 = vpop.permute.xlu1 %1656 }
 0xb21   : > { %1660 = vst.msk [vmem:[#allocation16] sm:$0x3] %vm1659_vm13, %v1657_v8 }
 0xb22   : > { %2009 = vmatpush3.bf16.msra.mxu1 %v1601_v53 }
 0xb25   : > { %2011 = vmatmul.mubr.msk.bf16.vlgmr.msra.gmra.mrb[16].mxu1 %vm1349_vm12, %v1339_v40 }
 0xb26   : > { %2411 = shalt.err (!%p2408_p8)
}
 0xb27   : > { %s3256_s2 = sld [smem:[#allocation40_spill]] }
 0xb2d   : > { %s2412_s28 = scalar_lea.hbm %s3256_s2, 32 }
 0xb2e   : > { %p2413_p9 = scmp.ne.s32.totalorder %s3256_s2, %s2412_s28  ;;  %p2418_p0 = scmp.lt.u32.totalorder %s2412_s28, %s3256_s2 }
 0xb30   : > { %p2414_p3 = pnand %p2413_p9, %p3255_p4 }
 0xb32   : > { %p2415_p10 = pneg %p2414_p3 }
 0xb34   : > { %p2420_p5 = pnand %p2418_p0, %p2415_p10 }
 0xb36   : > { %2423 = shalt.err (!%p2420_p5)
}
 0xb37   : > { %2042 = dma.vmem_to_hbm [thread:$0]  (%p3255_p4), %s1689_s9, 32, %s3256_s2, [#allocation17]   ;;  %vm1653_vm14 = vcmask 253952  }
 0xb38   : > { %s3257_s26 = sld [smem:[#allocation38_spill]]  ;;  %s1896_s5 = sshll.u32 %s2514_s21, 4 }
 0xb39   : > { %s3258_s4 = scalar_lea.vmem [#allocation15], %s2910_s12  ;;  %s3259_s19 = sld [smem:[#allocation39_spill]] }
 0xb3a   : > { %s1675_s9 = sshll.u32 %s3258_s4, 4  ;;  %s3260_s17 = smov %s3258_s4  ;;  %s3113_s9 = int_to_ptr.vmem [resolvable:$true] %s1675_s9 }
 0xb3b   : > { %s1662_s23 = scalar_lea.sflag [#allocation5], %s2910_s12  ;;  %p3261_p12 = scmp.ne.s32.totalorder %s3242_s3, 0 }
 0xb3c   : > { %s2543_s21 = smov [#allocation15]  }
 0xb3d   : > { %s2428_s4 = sshll.u32 %s2543_s21, 4  ;;  %s2429_s4 = int_to_ptr.vmem [resolvable:$false] %s2428_s4 }
 0xb3e   : > { %v1895_v17 = vld [vmem:[%s3257_s26] ss:$0 sm:$0xff]  ;;  %s2424_s26 = scalar_lea.vmem %s3113_s9, 16  ;;  %s2430_s2 = scalar_lea.vmem %s2429_s4, 32 }
 0xb3f   : > { %s3111_s24 = scalar_lea.hbm %s3259_s19, %s1896_s5  ;;  %p2425_p11 = scmp.ne.s32.totalorder %s3113_s9, %s2424_s26 }
 0xb40   : > { %p2431_p13 = scmp.lt.s32.totalorder %s3113_s9, %s2429_s4  ;;  %p2432_p2 = scmp.lt.s32.totalorder %s2430_s2, %s2424_s26 }
 0xb41   : > { %p2426_p6 = pnand %p2425_p11, %p3261_p12 }
 0xb42   : > { %p2433_p7 = por %p2432_p2, %p2431_p13 }
 0xb43   : > { %p2427_p1 = pneg %p2426_p6 }
 0xb45   : > { %p2434_p8 = pnand %p2433_p7, %p2427_p1 }
 0xbf0   : > { %v1539_v16 = vpop.f32.mrb[12].mxu1 }
 0xbf1   : > { %v1586_v13 = vadd.f32 %v1585_v9, %v1539_v16  ;;  %v1998_v14 = vpop.f32.mrb[13].mxu1 }
 0xbf2   : > { %v1542_v55 = vpop.f32.mrb[14].mxu1 }
 0xbf3   : > { %v1999_v15 = vpop.f32.mrb[15].mxu1 }
 0xbf8   : > { %v1637_v18 = vpop.f32.mrb[16].mxu1 }
 0xbf9   : > { %v1643_v19 = vadd.f32 %v1637_v18, %v1586_v13  ;;  %v2012_v20 = vpop.f32.mrb[17].mxu1 }
 0xbfa   : > { %v1640_v22 = vpop.f32.mrb[18].mxu1 }
 0xbfb   : > { %v1650_v23 = vadd.f32 %v1895_v17, %v1643_v19  ;;  %v2013_v24 = vpop.f32.mrb[19].mxu1 }
 0xbfd   : > { %2198 = vtanh.f32 %v1650_v23 }
 0xc07   : > { %v2199_v25 = vpop.eup %2198 }
 0xc08   : > { %v1652_v26 = vpack.c.bf16 %v2199_v25, %v2199_v25 }
 0xc0a   : > { %1654 = vst.msk [vmem:[%s3260_s17] sm:$0x1] %vm1653_vm14, %v1652_v26 }
 0xc0b   : > { %2437 = shalt.err (!%p2434_p8)
}
 0xc0c   : > { %s2438_s12 = scalar_lea.hbm %s3111_s24, 16  ;;  %s2442_s16 = scalar_lea.hbm %s3259_s19, 64 }
 0xc0d   : > { %p2439_p9 = scmp.ne.s32.totalorder %s3111_s24, %s2438_s12  ;;  %p2443_p0 = scmp.lt.u32.totalorder %s3111_s24, %s3259_s19 }
 0xc0e   : > { %p2444_p5 = scmp.lt.u32.totalorder %s2442_s16, %s2438_s12  ;;  %p2446_p6 = scmp.lt.u32.totalorder %s2438_s12, %s3111_s24 }
 0xc0f   : > { %p2440_p3 = pnand %p2439_p9, %p3261_p12 }
 0xc10   : > { %p2445_p11 = por %p2444_p5, %p2443_p0 }
 0xc11   : > { %p2441_p10 = pneg %p2440_p3 }
 0xc12   : > { %p2447_p1 = por %p2446_p6, %p2445_p11 }
 0xc14   : > { %p2448_p13 = pnand %p2447_p1, %p2441_p10 }
 0xc16   : > { %2451 = shalt.err (!%p2448_p13)
}
 0xc17   : > { %2040 = dma.vmem_to_hbm [thread:$0]  (%p3261_p12), %s3113_s9, 16, %s3111_s24, %s1662_s23  }
 0xc18   : > { %2493 = dma.done.wait (%p3255_p4), [#allocation17], 32  }
 0xc19   : > { %2495 = vsyncadd (%p3255_p4), [#allocation17], 4294967264 }
 0xc1a PF: > { %p2088_p2 = scmp.ge.s32.totalorder %s2522_s22, 2  ;;  %s1704_s2 = sand.u32 1, %s2502_s0  }
 0xc1b   : > { %p3262_p7 = scmp.ne.s32.totalorder %s3243_s27, 0  ;;  %s1705_s26 = scalar_lea.sflag [#allocation5], %s1704_s2 }
 0xc1d   : > { %p2070_p8 = pnand %p2088_p2, %p3262_p7 }
 0xc1f   : > { %2497 = dma.done.wait (!%p2070_p8), %s1705_s26, 16  }
 0xc20   : > { %2499 = vsyncadd (!%p2070_p8), %s1705_s26, 4294967280  ;;  %s40_s22 = sadd.s32 1, %s2522_s22   ;;  %s3263_s0 = smov %s2506_s30 }
 0xc21   : > { %p37_p9 = scmp.ge.s32.totalorder %s40_s22, 6   ;;  %s3264_s30 = smov %s2510_s20 }
 0xc22   : > { %s3265_s20 = smov %s2860_s13  ;;  %s3266_s21 = smov %s2518_s1 }
 0xc23   : > { %s3267_s1 = smov %s3269_s7  ;;  %39 = sbr.rel (!%p37_p9) target bundleno = 28 (0x1c), region = 177 }
 0xc2a   :  { %1709 = vsyncpa [#allocation4], 1 }
 0xc2b   :  { %1711 = vsyncpa [#allocation4 + $0x1], 1 }
 0xc2c   :  { %1712 = vsyncpa [#allocation7], 1 }
 0xc2d   :  { %1713 = vsyncpa [#allocation10], 1 }
 0xc2e   :  { %1714 = vsyncpa [#allocation13], 1 }
 0xc2f   :  { %1715 = vsyncpa [#allocation5], 1 }
 0xc30   :  { %1717 = vsyncpa [#allocation5 + $0x1], 1 }
 0xc31   :  { %1718 = vsyncpa [#allocation17], 1 }

</bundles_post_ra>
